<compile_context>
chip_gen: v7x
topology: tpu7x:2x2x1
jax: 0.10.0
libtpu: 0.0.40
codegen_flags: <defaults>
</compile_context>

<pallas_src>
import jax
import jax.numpy as jnp
from jax import lax
from jax.experimental import pallas as pl
from jax.experimental.pallas import tpu as pltpu


def _make_rdb_kernel(H, W, Cin, G, num_layers):
    """Builds the fused RDB kernel body for static shapes."""
    Ct = Cin + num_layers * G

    def kernel(*refs):
        # refs: x, (w_i, b_i) * num_layers, lff_w, lff_b, out, feat_scratch
        x_ref = refs[0]
        dense_refs = refs[1:1 + 2 * num_layers]
        lffw_ref = refs[1 + 2 * num_layers]
        lffb_ref = refs[2 + 2 * num_layers]
        o_ref = refs[3 + 2 * num_layers]
        feat_sc = refs[4 + 2 * num_layers]          # VMEM (H+2, W+2, Ct) f32

        # Zero the padded feature buffer: the 1-pixel halo stays zero and
        # implements the 'same' (zero) padding for every 3x3 conv in the block.
        feat_sc[...] = jnp.zeros_like(feat_sc)

        xv = x_ref[0]                                # (H, W, Cin)
        feat_sc[1:H + 1, 1:W + 1, 0:Cin] = xv        # channels [0, Cin)

        # Dense layers: conv3x3 + bias + ReLU, result appended as new channels.
        c_in = Cin
        for i in range(num_layers):
            w_ref = dense_refs[2 * i]                # (3, 3, c_in, G)
            b_ref = dense_refs[2 * i + 1]            # (1, G)
            acc = jnp.zeros((H * W, G), jnp.float32)
            for ky in range(3):
                for kx in range(3):
                    patch = feat_sc[ky:ky + H, kx:kx + W, 0:c_in]  # (H, W, c_in)
                    patch = patch.reshape(H * W, c_in)
                    acc = acc + jnp.dot(patch, w_ref[ky, kx],
                                        preferred_element_type=jnp.float32)
            y = jnp.maximum(acc + b_ref[...], 0.0)   # (H*W, G)
            # "torch.cat([x, relu(conv(x))], 1)" == write new channel block.
            feat_sc[1:H + 1, 1:W + 1, c_in:c_in + G] = y.reshape(H, W, G)
            c_in += G

        # Local feature fusion (1x1 conv == per-pixel matmul) + residual add.
        fused = feat_sc[1:H + 1, 1:W + 1, 0:Ct].reshape(H * W, Ct)
        y = jnp.dot(fused, lffw_ref[...], preferred_element_type=jnp.float32)
        y = y + lffb_ref[...]
        out = xv.reshape(H * W, Cin) + y             # residual (Cin == G)
        o_ref[0] = out.reshape(H, W, G).astype(o_ref.dtype)

    return kernel


def rdb_pallas(x, dense_params, lff_w, lff_b):
    """Fused RDB forward: x + lff(dense_layers(x)).

    x: (N, H, W, Cin) f32.  dense_params[i] = (w_i (3,3,Cin+i*G,G), b_i (G,)).
    lff_w: (Cin + L*G, G), lff_b: (G,).
    """
    N, H, W, Cin = x.shape
    G = lff_w.shape[-1]
    num_layers = len(dense_params)
    Ct = Cin + num_layers * G
    assert lff_w.shape[0] == Ct
    assert Cin == G, "residual add requires in_channels == growth_rate"

    kernel = _make_rdb_kernel(H, W, Cin, G, num_layers)

    in_specs = [pl.BlockSpec((1, H, W, Cin), lambda n: (n, 0, 0, 0))]
    args = [x]
    for i, (w, b) in enumerate(dense_params):
        c_in = Cin + i * G
        assert w.shape == (3, 3, c_in, G)
        in_specs.append(pl.BlockSpec((3, 3, c_in, G), lambda n: (0, 0, 0, 0)))
        in_specs.append(pl.BlockSpec((1, G), lambda n: (0, 0)))
        args.append(w)
        args.append(b.reshape(1, G))
    in_specs.append(pl.BlockSpec((Ct, G), lambda n: (0, 0)))
    in_specs.append(pl.BlockSpec((1, G), lambda n: (0, 0)))
    args.append(lff_w)
    args.append(lff_b.reshape(1, G))

    out = pl.pallas_call(
        kernel,
        out_shape=jax.ShapeDtypeStruct((N, H, W, G), x.dtype),
        grid=(N,),                                   # one image per grid step
        in_specs=in_specs,
        out_specs=pl.BlockSpec((1, H, W, G), lambda n: (n, 0, 0, 0)),
        scratch_shapes=[pltpu.VMEM((H + 2, W + 2, Ct), jnp.float32)],
        compiler_params=pltpu.CompilerParams(
            dimension_semantics=("parallel",),       # megacore / v7x 2-TC split
        ),
    )(*args)
    return out


def rdb_reference(x, dense_params, lff_w, lff_b):
    """Pure-JAX reference (lax convs) mirroring the PyTorch semantics."""
    dn = ("NHWC", "HWIO", "NHWC")
    feat = x
    for (w, b) in dense_params:
        y = lax.conv_general_dilated(feat, w, (1, 1), "SAME",
                                     dimension_numbers=dn) + b
        feat = jnp.concatenate([feat, jnp.maximum(y, 0.0)], axis=-1)
    y = lax.conv_general_dilated(feat, lff_w[None, None], (1, 1), "SAME",
                                 dimension_numbers=dn) + lff_b
    return x + y


if __name__ == "__main__":
    # Module hyperparameters. The residual `x + lff(...)` in the PyTorch module
    # implies in_channels == growth_rate (its standard RDN usage).
    in_channels = 8
    growth_rate = 8
    num_layers = 3
    N, H, W = 2, 16, 16

    key = jax.random.PRNGKey(0)
    keys = jax.random.split(key, 2 * num_layers + 3)

    dense_params = []
    for i in range(num_layers):
        cin = in_channels + growth_rate * i
        w = 0.05 * jax.random.normal(keys[2 * i], (3, 3, cin, growth_rate), jnp.float32)
        b = 0.01 * jax.random.normal(keys[2 * i + 1], (growth_rate,), jnp.float32)
        dense_params.append((w, b))
    ct = in_channels + growth_rate * num_layers
    lff_w = 0.05 * jax.random.normal(keys[-3], (ct, growth_rate), jnp.float32)
    lff_b = 0.01 * jax.random.normal(keys[-2], (growth_rate,), jnp.float32)

    x = jax.random.normal(keys[-1], (N, H, W, in_channels), jnp.float32)

    out = jax.block_until_ready(rdb_pallas(x, dense_params, lff_w, lff_b))
    ref = jax.block_until_ready(rdb_reference(x, dense_params, lff_w, lff_b))

    assert out.shape == (N, H, W, growth_rate)
    if not jnp.allclose(out, ref, rtol=1e-4, atol=1e-4):
        max_err = float(jnp.max(jnp.abs(out - ref)))
        raise AssertionError(
            f"Pallas RDB output does not match JAX reference (max abs err {max_err})")
    print("KERNEL_OK")
</pallas_src>

<mosaic_0001>
module attributes {stable_mosaic.version = 11 : i64} {
  func.func @kernel(%arg0: i32, %arg1: memref<1x16x16x8xf32, #tpu.memory_space<vmem>>, %arg2: memref<3x3x8x8xf32, #tpu.memory_space<vmem>>, %arg3: memref<1x8xf32, #tpu.memory_space<vmem>>, %arg4: memref<3x3x16x8xf32, #tpu.memory_space<vmem>>, %arg5: memref<1x8xf32, #tpu.memory_space<vmem>>, %arg6: memref<3x3x24x8xf32, #tpu.memory_space<vmem>>, %arg7: memref<1x8xf32, #tpu.memory_space<vmem>>, %arg8: memref<32x8xf32, #tpu.memory_space<vmem>>, %arg9: memref<1x8xf32, #tpu.memory_space<vmem>>, %arg10: memref<1x16x16x8xf32, #tpu.memory_space<vmem>>, %arg11: memref<18x18x32xf32, #tpu.memory_space<vmem>>) attributes {dimension_semantics = [#tpu.dimension_semantics<parallel>], iteration_bounds = array<i64: 2>, scalar_prefetch = 0 : i64, scratch_operands = 1 : i64, tpu.core_type = #tpu.core_type<tc>, window_params = [{transform_indices = @transform_0, window_bounds = array<i64: 1, 16, 16, 8>}, {pipeline_mode = #tpu.pipeline_mode<synchronous>, transform_indices = @transform_1, window_bounds = array<i64: 3, 3, 8, 8>}, {pipeline_mode = #tpu.pipeline_mode<synchronous>, transform_indices = @transform_2, window_bounds = array<i64: 1, 8>}, {pipeline_mode = #tpu.pipeline_mode<synchronous>, transform_indices = @transform_3, window_bounds = array<i64: 3, 3, 16, 8>}, {pipeline_mode = #tpu.pipeline_mode<synchronous>, transform_indices = @transform_4, window_bounds = array<i64: 1, 8>}, {pipeline_mode = #tpu.pipeline_mode<synchronous>, transform_indices = @transform_5, window_bounds = array<i64: 3, 3, 24, 8>}, {pipeline_mode = #tpu.pipeline_mode<synchronous>, transform_indices = @transform_6, window_bounds = array<i64: 1, 8>}, {pipeline_mode = #tpu.pipeline_mode<synchronous>, transform_indices = @transform_7, window_bounds = array<i64: 32, 8>}, {pipeline_mode = #tpu.pipeline_mode<synchronous>, transform_indices = @transform_8, window_bounds = array<i64: 1, 8>}, {transform_indices = @transform_9, window_bounds = array<i64: 1, 16, 16, 8>}]} {
    %cst = arith.constant 0.000000e+00 : f32
    %0 = vector.broadcast %cst : f32 to vector<18x18x32xf32>
    %c0 = arith.constant 0 : index
    %c0_0 = arith.constant 0 : index
    %c0_1 = arith.constant 0 : index
    %1 = vector.load %arg11[%c0, %c0_0, %c0_1] : memref<18x18x32xf32, #tpu.memory_space<vmem>>, vector<18x18x32xf32>
    tpu.vector_store %arg11[%c0, %c0_0, %c0_1], %0 {strides = array<i32>} : memref<18x18x32xf32, #tpu.memory_space<vmem>>, vector<18x18x32xf32>,
    %c0_2 = arith.constant 0 : index
    %c0_3 = arith.constant 0 : index
    %c0_4 = arith.constant 0 : index
    %c0_5 = arith.constant 0 : index
    %2 = vector.load %arg1[%c0_2, %c0_3, %c0_4, %c0_5] : memref<1x16x16x8xf32, #tpu.memory_space<vmem>>, vector<1x16x16x8xf32>
    %3 = vector.shape_cast %2 : vector<1x16x16x8xf32> to vector<16x16x8xf32>
    %c1 = arith.constant 1 : index
    %c1_6 = arith.constant 1 : index
    %c0_7 = arith.constant 0 : index
    %4 = vector.load %arg11[%c1, %c1_6, %c0_7] : memref<18x18x32xf32, #tpu.memory_space<vmem>>, vector<16x16x8xf32>
    tpu.vector_store %arg11[%c1, %c1_6, %c0_7], %3 {strides = array<i32>} : memref<18x18x32xf32, #tpu.memory_space<vmem>>, vector<16x16x8xf32>,
    %cst_8 = arith.constant 0.000000e+00 : f32
    %5 = vector.broadcast %cst_8 : f32 to vector<256x8xf32>
    %c0_9 = arith.constant 0 : index
    %c0_10 = arith.constant 0 : index
    %c0_11 = arith.constant 0 : index
    %6 = vector.load %arg11[%c0_9, %c0_10, %c0_11] : memref<18x18x32xf32, #tpu.memory_space<vmem>>, vector<16x16x8xf32>
    %7 = vector.shape_cast %6 : vector<16x16x8xf32> to vector<256x8xf32>
    %c0_12 = arith.constant 0 : index
    %c0_13 = arith.constant 0 : index
    %c0_14 = arith.constant 0 : index
    %c0_15 = arith.constant 0 : index
    %8 = vector.load %arg2[%c0_12, %c0_13, %c0_14, %c0_15] : memref<3x3x8x8xf32, #tpu.memory_space<vmem>>, vector<1x1x8x8xf32>
    %9 = vector.shape_cast %8 : vector<1x1x8x8xf32> to vector<8x8xf32>
    %cst_16 = arith.constant dense<0.000000e+00> : vector<256x8xf32>
    %10 = tpu.matmul %7, %9, %cst_16 {dimension_numbers = #tpu.dot_dimension_numbers<[1], [0], [0], [1], [0, 0, 1, 1], [], []>} : vector<256x8xf32>, vector<8x8xf32>, vector<256x8xf32> -> vector<256x8xf32>
    %11 = arith.addf %5, %10 : vector<256x8xf32>
    %c0_17 = arith.constant 0 : index
    %c1_18 = arith.constant 1 : index
    %c0_19 = arith.constant 0 : index
    %12 = vector.load %arg11[%c0_17, %c1_18, %c0_19] : memref<18x18x32xf32, #tpu.memory_space<vmem>>, vector<16x16x8xf32>
    %13 = vector.shape_cast %12 : vector<16x16x8xf32> to vector<256x8xf32>
    %c0_20 = arith.constant 0 : index
    %c1_21 = arith.constant 1 : index
    %c0_22 = arith.constant 0 : index
    %c0_23 = arith.constant 0 : index
    %14 = vector.load %arg2[%c0_20, %c1_21, %c0_22, %c0_23] : memref<3x3x8x8xf32, #tpu.memory_space<vmem>>, vector<1x1x8x8xf32>
    %15 = vector.shape_cast %14 : vector<1x1x8x8xf32> to vector<8x8xf32>
    %cst_24 = arith.constant dense<0.000000e+00> : vector<256x8xf32>
    %16 = tpu.matmul %13, %15, %cst_24 {dimension_numbers = #tpu.dot_dimension_numbers<[1], [0], [0], [1], [0, 0, 1, 1], [], []>} : vector<256x8xf32>, vector<8x8xf32>, vector<256x8xf32> -> vector<256x8xf32>
    %17 = arith.addf %11, %16 : vector<256x8xf32>
    %c0_25 = arith.constant 0 : index
    %c2 = arith.constant 2 : index
    %c0_26 = arith.constant 0 : index
    %18 = vector.load %arg11[%c0_25, %c2, %c0_26] : memref<18x18x32xf32, #tpu.memory_space<vmem>>, vector<16x16x8xf32>
    %19 = vector.shape_cast %18 : vector<16x16x8xf32> to vector<256x8xf32>
    %c0_27 = arith.constant 0 : index
    %c2_28 = arith.constant 2 : index
    %c0_29 = arith.constant 0 : index
    %c0_30 = arith.constant 0 : index
    %20 = vector.load %arg2[%c0_27, %c2_28, %c0_29, %c0_30] : memref<3x3x8x8xf32, #tpu.memory_space<vmem>>, vector<1x1x8x8xf32>
    %21 = vector.shape_cast %20 : vector<1x1x8x8xf32> to vector<8x8xf32>
    %cst_31 = arith.constant dense<0.000000e+00> : vector<256x8xf32>
    %22 = tpu.matmul %19, %21, %cst_31 {dimension_numbers = #tpu.dot_dimension_numbers<[1], [0], [0], [1], [0, 0, 1, 1], [], []>} : vector<256x8xf32>, vector<8x8xf32>, vector<256x8xf32> -> vector<256x8xf32>
    %23 = arith.addf %17, %22 : vector<256x8xf32>
    %c1_32 = arith.constant 1 : index
    %c0_33 = arith.constant 0 : index
    %c0_34 = arith.constant 0 : index
    %24 = vector.load %arg11[%c1_32, %c0_33, %c0_34] : memref<18x18x32xf32, #tpu.memory_space<vmem>>, vector<16x16x8xf32>
    %25 = vector.shape_cast %24 : vector<16x16x8xf32> to vector<256x8xf32>
    %c1_35 = arith.constant 1 : index
    %c0_36 = arith.constant 0 : index
    %c0_37 = arith.constant 0 : index
    %c0_38 = arith.constant 0 : index
    %26 = vector.load %arg2[%c1_35, %c0_36, %c0_37, %c0_38] : memref<3x3x8x8xf32, #tpu.memory_space<vmem>>, vector<1x1x8x8xf32>
    %27 = vector.shape_cast %26 : vector<1x1x8x8xf32> to vector<8x8xf32>
    %cst_39 = arith.constant dense<0.000000e+00> : vector<256x8xf32>
    %28 = tpu.matmul %25, %27, %cst_39 {dimension_numbers = #tpu.dot_dimension_numbers<[1], [0], [0], [1], [0, 0, 1, 1], [], []>} : vector<256x8xf32>, vector<8x8xf32>, vector<256x8xf32> -> vector<256x8xf32>
    %29 = arith.addf %23, %28 : vector<256x8xf32>
    %c1_40 = arith.constant 1 : index
    %c1_41 = arith.constant 1 : index
    %c0_42 = arith.constant 0 : index
    %30 = vector.load %arg11[%c1_40, %c1_41, %c0_42] : memref<18x18x32xf32, #tpu.memory_space<vmem>>, vector<16x16x8xf32>
    %31 = vector.shape_cast %30 : vector<16x16x8xf32> to vector<256x8xf32>
    %c1_43 = arith.constant 1 : index
    %c1_44 = arith.constant 1 : index
    %c0_45 = arith.constant 0 : index
    %c0_46 = arith.constant 0 : index
    %32 = vector.load %arg2[%c1_43, %c1_44, %c0_45, %c0_46] : memref<3x3x8x8xf32, #tpu.memory_space<vmem>>, vector<1x1x8x8xf32>
    %33 = vector.shape_cast %32 : vector<1x1x8x8xf32> to vector<8x8xf32>
    %cst_47 = arith.constant dense<0.000000e+00> : vector<256x8xf32>
    %34 = tpu.matmul %31, %33, %cst_47 {dimension_numbers = #tpu.dot_dimension_numbers<[1], [0], [0], [1], [0, 0, 1, 1], [], []>} : vector<256x8xf32>, vector<8x8xf32>, vector<256x8xf32> -> vector<256x8xf32>
    %35 = arith.addf %29, %34 : vector<256x8xf32>
    %c1_48 = arith.constant 1 : index
    %c2_49 = arith.constant 2 : index
    %c0_50 = arith.constant 0 : index
    %36 = vector.load %arg11[%c1_48, %c2_49, %c0_50] : memref<18x18x32xf32, #tpu.memory_space<vmem>>, vector<16x16x8xf32>
    %37 = vector.shape_cast %36 : vector<16x16x8xf32> to vector<256x8xf32>
    %c1_51 = arith.constant 1 : index
    %c2_52 = arith.constant 2 : index
    %c0_53 = arith.constant 0 : index
    %c0_54 = arith.constant 0 : index
    %38 = vector.load %arg2[%c1_51, %c2_52, %c0_53, %c0_54] : memref<3x3x8x8xf32, #tpu.memory_space<vmem>>, vector<1x1x8x8xf32>
    %39 = vector.shape_cast %38 : vector<1x1x8x8xf32> to vector<8x8xf32>
    %cst_55 = arith.constant dense<0.000000e+00> : vector<256x8xf32>
    %40 = tpu.matmul %37, %39, %cst_55 {dimension_numbers = #tpu.dot_dimension_numbers<[1], [0], [0], [1], [0, 0, 1, 1], [], []>} : vector<256x8xf32>, vector<8x8xf32>, vector<256x8xf32> -> vector<256x8xf32>
    %41 = arith.addf %35, %40 : vector<256x8xf32>
    %c2_56 = arith.constant 2 : index
    %c0_57 = arith.constant 0 : index
    %c0_58 = arith.constant 0 : index
    %42 = vector.load %arg11[%c2_56, %c0_57, %c0_58] : memref<18x18x32xf32, #tpu.memory_space<vmem>>, vector<16x16x8xf32>
    %43 = vector.shape_cast %42 : vector<16x16x8xf32> to vector<256x8xf32>
    %c2_59 = arith.constant 2 : index
    %c0_60 = arith.constant 0 : index
    %c0_61 = arith.constant 0 : index
    %c0_62 = arith.constant 0 : index
    %44 = vector.load %arg2[%c2_59, %c0_60, %c0_61, %c0_62] : memref<3x3x8x8xf32, #tpu.memory_space<vmem>>, vector<1x1x8x8xf32>
    %45 = vector.shape_cast %44 : vector<1x1x8x8xf32> to vector<8x8xf32>
    %cst_63 = arith.constant dense<0.000000e+00> : vector<256x8xf32>
    %46 = tpu.matmul %43, %45, %cst_63 {dimension_numbers = #tpu.dot_dimension_numbers<[1], [0], [0], [1], [0, 0, 1, 1], [], []>} : vector<256x8xf32>, vector<8x8xf32>, vector<256x8xf32> -> vector<256x8xf32>
    %47 = arith.addf %41, %46 : vector<256x8xf32>
    %c2_64 = arith.constant 2 : index
    %c1_65 = arith.constant 1 : index
    %c0_66 = arith.constant 0 : index
    %48 = vector.load %arg11[%c2_64, %c1_65, %c0_66] : memref<18x18x32xf32, #tpu.memory_space<vmem>>, vector<16x16x8xf32>
    %49 = vector.shape_cast %48 : vector<16x16x8xf32> to vector<256x8xf32>
    %c2_67 = arith.constant 2 : index
    %c1_68 = arith.constant 1 : index
    %c0_69 = arith.constant 0 : index
    %c0_70 = arith.constant 0 : index
    %50 = vector.load %arg2[%c2_67, %c1_68, %c0_69, %c0_70] : memref<3x3x8x8xf32, #tpu.memory_space<vmem>>, vector<1x1x8x8xf32>
    %51 = vector.shape_cast %50 : vector<1x1x8x8xf32> to vector<8x8xf32>
    %cst_71 = arith.constant dense<0.000000e+00> : vector<256x8xf32>
    %52 = tpu.matmul %49, %51, %cst_71 {dimension_numbers = #tpu.dot_dimension_numbers<[1], [0], [0], [1], [0, 0, 1, 1], [], []>} : vector<256x8xf32>, vector<8x8xf32>, vector<256x8xf32> -> vector<256x8xf32>
    %53 = arith.addf %47, %52 : vector<256x8xf32>
    %c2_72 = arith.constant 2 : index
    %c2_73 = arith.constant 2 : index
    %c0_74 = arith.constant 0 : index
    %54 = vector.load %arg11[%c2_72, %c2_73, %c0_74] : memref<18x18x32xf32, #tpu.memory_space<vmem>>, vector<16x16x8xf32>
    %55 = vector.shape_cast %54 : vector<16x16x8xf32> to vector<256x8xf32>
    %c2_75 = arith.constant 2 : index
    %c2_76 = arith.constant 2 : index
    %c0_77 = arith.constant 0 : index
    %c0_78 = arith.constant 0 : index
    %56 = vector.load %arg2[%c2_75, %c2_76, %c0_77, %c0_78] : memref<3x3x8x8xf32, #tpu.memory_space<vmem>>, vector<1x1x8x8xf32>
    %57 = vector.shape_cast %56 : vector<1x1x8x8xf32> to vector<8x8xf32>
    %cst_79 = arith.constant dense<0.000000e+00> : vector<256x8xf32>
    %58 = tpu.matmul %55, %57, %cst_79 {dimension_numbers = #tpu.dot_dimension_numbers<[1], [0], [0], [1], [0, 0, 1, 1], [], []>} : vector<256x8xf32>, vector<8x8xf32>, vector<256x8xf32> -> vector<256x8xf32>
    %59 = arith.addf %53, %58 : vector<256x8xf32>
    %c0_80 = arith.constant 0 : index
    %c0_81 = arith.constant 0 : index
    %60 = vector.load %arg3[%c0_80, %c0_81] : memref<1x8xf32, #tpu.memory_space<vmem>>, vector<1x8xf32>
    %61 = vector.broadcast %60 : vector<1x8xf32> to vector<256x8xf32>
    %62 = arith.addf %59, %61 : vector<256x8xf32>
    %cst_82 = arith.constant 0.000000e+00 : f32
    %63 = vector.broadcast %cst_82 : f32 to vector<256x8xf32>
    %64 = arith.maximumf %62, %63 : vector<256x8xf32>
    %65 = vector.shape_cast %64 : vector<256x8xf32> to vector<16x16x8xf32>
    %c1_83 = arith.constant 1 : index
    %c1_84 = arith.constant 1 : index
    %c8 = arith.constant 8 : index
    %66 = vector.load %arg11[%c1_83, %c1_84, %c8] : memref<18x18x32xf32, #tpu.memory_space<vmem>>, vector<16x16x8xf32>
    tpu.vector_store %arg11[%c1_83, %c1_84, %c8], %65 {strides = array<i32>} : memref<18x18x32xf32, #tpu.memory_space<vmem>>, vector<16x16x8xf32>,
    %cst_85 = arith.constant 0.000000e+00 : f32
    %67 = vector.broadcast %cst_85 : f32 to vector<256x8xf32>
    %c0_86 = arith.constant 0 : index
    %c0_87 = arith.constant 0 : index
    %c0_88 = arith.constant 0 : index
    %68 = vector.load %arg11[%c0_86, %c0_87, %c0_88] : memref<18x18x32xf32, #tpu.memory_space<vmem>>, vector<16x16x16xf32>
    %69 = vector.shape_cast %68 : vector<16x16x16xf32> to vector<256x16xf32>
    %c0_89 = arith.constant 0 : index
    %c0_90 = arith.constant 0 : index
    %c0_91 = arith.constant 0 : index
    %c0_92 = arith.constant 0 : index
    %70 = vector.load %arg4[%c0_89, %c0_90, %c0_91, %c0_92] : memref<3x3x16x8xf32, #tpu.memory_space<vmem>>, vector<1x1x16x8xf32>
    %71 = vector.shape_cast %70 : vector<1x1x16x8xf32> to vector<16x8xf32>
    %cst_93 = arith.constant dense<0.000000e+00> : vector<256x8xf32>
    %72 = tpu.matmul %69, %71, %cst_93 {dimension_numbers = #tpu.dot_dimension_numbers<[1], [0], [0], [1], [0, 0, 1, 1], [], []>} : vector<256x16xf32>, vector<16x8xf32>, vector<256x8xf32> -> vector<256x8xf32>
    %73 = arith.addf %67, %72 : vector<256x8xf32>
    %c0_94 = arith.constant 0 : index
    %c1_95 = arith.constant 1 : index
    %c0_96 = arith.constant 0 : index
    %74 = vector.load %arg11[%c0_94, %c1_95, %c0_96] : memref<18x18x32xf32, #tpu.memory_space<vmem>>, vector<16x16x16xf32>
    %75 = vector.shape_cast %74 : vector<16x16x16xf32> to vector<256x16xf32>
    %c0_97 = arith.constant 0 : index
    %c1_98 = arith.constant 1 : index
    %c0_99 = arith.constant 0 : index
    %c0_100 = arith.constant 0 : index
    %76 = vector.load %arg4[%c0_97, %c1_98, %c0_99, %c0_100] : memref<3x3x16x8xf32, #tpu.memory_space<vmem>>, vector<1x1x16x8xf32>
    %77 = vector.shape_cast %76 : vector<1x1x16x8xf32> to vector<16x8xf32>
    %cst_101 = arith.constant dense<0.000000e+00> : vector<256x8xf32>
    %78 = tpu.matmul %75, %77, %cst_101 {dimension_numbers = #tpu.dot_dimension_numbers<[1], [0], [0], [1], [0, 0, 1, 1], [], []>} : vector<256x16xf32>, vector<16x8xf32>, vector<256x8xf32> -> vector<256x8xf32>
    %79 = arith.addf %73, %78 : vector<256x8xf32>
    %c0_102 = arith.constant 0 : index
    %c2_103 = arith.constant 2 : index
    %c0_104 = arith.constant 0 : index
    %80 = vector.load %arg11[%c0_102, %c2_103, %c0_104] : memref<18x18x32xf32, #tpu.memory_space<vmem>>, vector<16x16x16xf32>
    %81 = vector.shape_cast %80 : vector<16x16x16xf32> to vector<256x16xf32>
    %c0_105 = arith.constant 0 : index
    %c2_106 = arith.constant 2 : index
    %c0_107 = arith.constant 0 : index
    %c0_108 = arith.constant 0 : index
    %82 = vector.load %arg4[%c0_105, %c2_106, %c0_107, %c0_108] : memref<3x3x16x8xf32, #tpu.memory_space<vmem>>, vector<1x1x16x8xf32>
    %83 = vector.shape_cast %82 : vector<1x1x16x8xf32> to vector<16x8xf32>
    %cst_109 = arith.constant dense<0.000000e+00> : vector<256x8xf32>
    %84 = tpu.matmul %81, %83, %cst_109 {dimension_numbers = #tpu.dot_dimension_numbers<[1], [0], [0], [1], [0, 0, 1, 1], [], []>} : vector<256x16xf32>, vector<16x8xf32>, vector<256x8xf32> -> vector<256x8xf32>
    %85 = arith.addf %79, %84 : vector<256x8xf32>
    %c1_110 = arith.constant 1 : index
    %c0_111 = arith.constant 0 : index
    %c0_112 = arith.constant 0 : index
    %86 = vector.load %arg11[%c1_110, %c0_111, %c0_112] : memref<18x18x32xf32, #tpu.memory_space<vmem>>, vector<16x16x16xf32>
    %87 = vector.shape_cast %86 : vector<16x16x16xf32> to vector<256x16xf32>
    %c1_113 = arith.constant 1 : index
    %c0_114 = arith.constant 0 : index
    %c0_115 = arith.constant 0 : index
    %c0_116 = arith.constant 0 : index
    %88 = vector.load %arg4[%c1_113, %c0_114, %c0_115, %c0_116] : memref<3x3x16x8xf32, #tpu.memory_space<vmem>>, vector<1x1x16x8xf32>
    %89 = vector.shape_cast %88 : vector<1x1x16x8xf32> to vector<16x8xf32>
    %cst_117 = arith.constant dense<0.000000e+00> : vector<256x8xf32>
    %90 = tpu.matmul %87, %89, %cst_117 {dimension_numbers = #tpu.dot_dimension_numbers<[1], [0], [0], [1], [0, 0, 1, 1], [], []>} : vector<256x16xf32>, vector<16x8xf32>, vector<256x8xf32> -> vector<256x8xf32>
    %91 = arith.addf %85, %90 : vector<256x8xf32>
    %c1_118 = arith.constant 1 : index
    %c1_119 = arith.constant 1 : index
    %c0_120 = arith.constant 0 : index
    %92 = vector.load %arg11[%c1_118, %c1_119, %c0_120] : memref<18x18x32xf32, #tpu.memory_space<vmem>>, vector<16x16x16xf32>
    %93 = vector.shape_cast %92 : vector<16x16x16xf32> to vector<256x16xf32>
    %c1_121 = arith.constant 1 : index
    %c1_122 = arith.constant 1 : index
    %c0_123 = arith.constant 0 : index
    %c0_124 = arith.constant 0 : index
    %94 = vector.load %arg4[%c1_121, %c1_122, %c0_123, %c0_124] : memref<3x3x16x8xf32, #tpu.memory_space<vmem>>, vector<1x1x16x8xf32>
    %95 = vector.shape_cast %94 : vector<1x1x16x8xf32> to vector<16x8xf32>
    %cst_125 = arith.constant dense<0.000000e+00> : vector<256x8xf32>
    %96 = tpu.matmul %93, %95, %cst_125 {dimension_numbers = #tpu.dot_dimension_numbers<[1], [0], [0], [1], [0, 0, 1, 1], [], []>} : vector<256x16xf32>, vector<16x8xf32>, vector<256x8xf32> -> vector<256x8xf32>
    %97 = arith.addf %91, %96 : vector<256x8xf32>
    %c1_126 = arith.constant 1 : index
    %c2_127 = arith.constant 2 : index
    %c0_128 = arith.constant 0 : index
    %98 = vector.load %arg11[%c1_126, %c2_127, %c0_128] : memref<18x18x32xf32, #tpu.memory_space<vmem>>, vector<16x16x16xf32>
    %99 = vector.shape_cast %98 : vector<16x16x16xf32> to vector<256x16xf32>
    %c1_129 = arith.constant 1 : index
    %c2_130 = arith.constant 2 : index
    %c0_131 = arith.constant 0 : index
    %c0_132 = arith.constant 0 : index
    %100 = vector.load %arg4[%c1_129, %c2_130, %c0_131, %c0_132] : memref<3x3x16x8xf32, #tpu.memory_space<vmem>>, vector<1x1x16x8xf32>
    %101 = vector.shape_cast %100 : vector<1x1x16x8xf32> to vector<16x8xf32>
    %cst_133 = arith.constant dense<0.000000e+00> : vector<256x8xf32>
    %102 = tpu.matmul %99, %101, %cst_133 {dimension_numbers = #tpu.dot_dimension_numbers<[1], [0], [0], [1], [0, 0, 1, 1], [], []>} : vector<256x16xf32>, vector<16x8xf32>, vector<256x8xf32> -> vector<256x8xf32>
    %103 = arith.addf %97, %102 : vector<256x8xf32>
    %c2_134 = arith.constant 2 : index
    %c0_135 = arith.constant 0 : index
    %c0_136 = arith.constant 0 : index
    %104 = vector.load %arg11[%c2_134, %c0_135, %c0_136] : memref<18x18x32xf32, #tpu.memory_space<vmem>>, vector<16x16x16xf32>
    %105 = vector.shape_cast %104 : vector<16x16x16xf32> to vector<256x16xf32>
    %c2_137 = arith.constant 2 : index
    %c0_138 = arith.constant 0 : index
    %c0_139 = arith.constant 0 : index
    %c0_140 = arith.constant 0 : index
    %106 = vector.load %arg4[%c2_137, %c0_138, %c0_139, %c0_140] : memref<3x3x16x8xf32, #tpu.memory_space<vmem>>, vector<1x1x16x8xf32>
    %107 = vector.shape_cast %106 : vector<1x1x16x8xf32> to vector<16x8xf32>
    %cst_141 = arith.constant dense<0.000000e+00> : vector<256x8xf32>
    %108 = tpu.matmul %105, %107, %cst_141 {dimension_numbers = #tpu.dot_dimension_numbers<[1], [0], [0], [1], [0, 0, 1, 1], [], []>} : vector<256x16xf32>, vector<16x8xf32>, vector<256x8xf32> -> vector<256x8xf32>
    %109 = arith.addf %103, %108 : vector<256x8xf32>
    %c2_142 = arith.constant 2 : index
    %c1_143 = arith.constant 1 : index
    %c0_144 = arith.constant 0 : index
    %110 = vector.load %arg11[%c2_142, %c1_143, %c0_144] : memref<18x18x32xf32, #tpu.memory_space<vmem>>, vector<16x16x16xf32>
    %111 = vector.shape_cast %110 : vector<16x16x16xf32> to vector<256x16xf32>
    %c2_145 = arith.constant 2 : index
    %c1_146 = arith.constant 1 : index
    %c0_147 = arith.constant 0 : index
    %c0_148 = arith.constant 0 : index
    %112 = vector.load %arg4[%c2_145, %c1_146, %c0_147, %c0_148] : memref<3x3x16x8xf32, #tpu.memory_space<vmem>>, vector<1x1x16x8xf32>
    %113 = vector.shape_cast %112 : vector<1x1x16x8xf32> to vector<16x8xf32>
    %cst_149 = arith.constant dense<0.000000e+00> : vector<256x8xf32>
    %114 = tpu.matmul %111, %113, %cst_149 {dimension_numbers = #tpu.dot_dimension_numbers<[1], [0], [0], [1], [0, 0, 1, 1], [], []>} : vector<256x16xf32>, vector<16x8xf32>, vector<256x8xf32> -> vector<256x8xf32>
    %115 = arith.addf %109, %114 : vector<256x8xf32>
    %c2_150 = arith.constant 2 : index
    %c2_151 = arith.constant 2 : index
    %c0_152 = arith.constant 0 : index
    %116 = vector.load %arg11[%c2_150, %c2_151, %c0_152] : memref<18x18x32xf32, #tpu.memory_space<vmem>>, vector<16x16x16xf32>
    %117 = vector.shape_cast %116 : vector<16x16x16xf32> to vector<256x16xf32>
    %c2_153 = arith.constant 2 : index
    %c2_154 = arith.constant 2 : index
    %c0_155 = arith.constant 0 : index
    %c0_156 = arith.constant 0 : index
    %118 = vector.load %arg4[%c2_153, %c2_154, %c0_155, %c0_156] : memref<3x3x16x8xf32, #tpu.memory_space<vmem>>, vector<1x1x16x8xf32>
    %119 = vector.shape_cast %118 : vector<1x1x16x8xf32> to vector<16x8xf32>
    %cst_157 = arith.constant dense<0.000000e+00> : vector<256x8xf32>
    %120 = tpu.matmul %117, %119, %cst_157 {dimension_numbers = #tpu.dot_dimension_numbers<[1], [0], [0], [1], [0, 0, 1, 1], [], []>} : vector<256x16xf32>, vector<16x8xf32>, vector<256x8xf32> -> vector<256x8xf32>
    %121 = arith.addf %115, %120 : vector<256x8xf32>
    %c0_158 = arith.constant 0 : index
    %c0_159 = arith.constant 0 : index
    %122 = vector.load %arg5[%c0_158, %c0_159] : memref<1x8xf32, #tpu.memory_space<vmem>>, vector<1x8xf32>
    %123 = vector.broadcast %122 : vector<1x8xf32> to vector<256x8xf32>
    %124 = arith.addf %121, %123 : vector<256x8xf32>
    %cst_160 = arith.constant 0.000000e+00 : f32
    %125 = vector.broadcast %cst_160 : f32 to vector<256x8xf32>
    %126 = arith.maximumf %124, %125 : vector<256x8xf32>
    %127 = vector.shape_cast %126 : vector<256x8xf32> to vector<16x16x8xf32>
    %c1_161 = arith.constant 1 : index
    %c1_162 = arith.constant 1 : index
    %c16 = arith.constant 16 : index
    %128 = vector.load %arg11[%c1_161, %c1_162, %c16] : memref<18x18x32xf32, #tpu.memory_space<vmem>>, vector<16x16x8xf32>
    tpu.vector_store %arg11[%c1_161, %c1_162, %c16], %127 {strides = array<i32>} : memref<18x18x32xf32, #tpu.memory_space<vmem>>, vector<16x16x8xf32>,
    %cst_163 = arith.constant 0.000000e+00 : f32
    %129 = vector.broadcast %cst_163 : f32 to vector<256x8xf32>
    %c0_164 = arith.constant 0 : index
    %c0_165 = arith.constant 0 : index
    %c0_166 = arith.constant 0 : index
    %130 = vector.load %arg11[%c0_164, %c0_165, %c0_166] : memref<18x18x32xf32, #tpu.memory_space<vmem>>, vector<16x16x24xf32>
    %131 = vector.shape_cast %130 : vector<16x16x24xf32> to vector<256x24xf32>
    %c0_167 = arith.constant 0 : index
    %c0_168 = arith.constant 0 : index
    %c0_169 = arith.constant 0 : index
    %c0_170 = arith.constant 0 : index
    %132 = vector.load %arg6[%c0_167, %c0_168, %c0_169, %c0_170] : memref<3x3x24x8xf32, #tpu.memory_space<vmem>>, vector<1x1x24x8xf32>
    %133 = vector.shape_cast %132 : vector<1x1x24x8xf32> to vector<24x8xf32>
    %cst_171 = arith.constant dense<0.000000e+00> : vector<256x8xf32>
    %134 = tpu.matmul %131, %133, %cst_171 {dimension_numbers = #tpu.dot_dimension_numbers<[1], [0], [0], [1], [0, 0, 1, 1], [], []>} : vector<256x24xf32>, vector<24x8xf32>, vector<256x8xf32> -> vector<256x8xf32>
    %135 = arith.addf %129, %134 : vector<256x8xf32>
    %c0_172 = arith.constant 0 : index
    %c1_173 = arith.constant 1 : index
    %c0_174 = arith.constant 0 : index
    %136 = vector.load %arg11[%c0_172, %c1_173, %c0_174] : memref<18x18x32xf32, #tpu.memory_space<vmem>>, vector<16x16x24xf32>
    %137 = vector.shape_cast %136 : vector<16x16x24xf32> to vector<256x24xf32>
    %c0_175 = arith.constant 0 : index
    %c1_176 = arith.constant 1 : index
    %c0_177 = arith.constant 0 : index
    %c0_178 = arith.constant 0 : index
    %138 = vector.load %arg6[%c0_175, %c1_176, %c0_177, %c0_178] : memref<3x3x24x8xf32, #tpu.memory_space<vmem>>, vector<1x1x24x8xf32>
    %139 = vector.shape_cast %138 : vector<1x1x24x8xf32> to vector<24x8xf32>
    %cst_179 = arith.constant dense<0.000000e+00> : vector<256x8xf32>
    %140 = tpu.matmul %137, %139, %cst_179 {dimension_numbers = #tpu.dot_dimension_numbers<[1], [0], [0], [1], [0, 0, 1, 1], [], []>} : vector<256x24xf32>, vector<24x8xf32>, vector<256x8xf32> -> vector<256x8xf32>
    %141 = arith.addf %135, %140 : vector<256x8xf32>
    %c0_180 = arith.constant 0 : index
    %c2_181 = arith.constant 2 : index
    %c0_182 = arith.constant 0 : index
    %142 = vector.load %arg11[%c0_180, %c2_181, %c0_182] : memref<18x18x32xf32, #tpu.memory_space<vmem>>, vector<16x16x24xf32>
    %143 = vector.shape_cast %142 : vector<16x16x24xf32> to vector<256x24xf32>
    %c0_183 = arith.constant 0 : index
    %c2_184 = arith.constant 2 : index
    %c0_185 = arith.constant 0 : index
    %c0_186 = arith.constant 0 : index
    %144 = vector.load %arg6[%c0_183, %c2_184, %c0_185, %c0_186] : memref<3x3x24x8xf32, #tpu.memory_space<vmem>>, vector<1x1x24x8xf32>
    %145 = vector.shape_cast %144 : vector<1x1x24x8xf32> to vector<24x8xf32>
    %cst_187 = arith.constant dense<0.000000e+00> : vector<256x8xf32>
    %146 = tpu.matmul %143, %145, %cst_187 {dimension_numbers = #tpu.dot_dimension_numbers<[1], [0], [0], [1], [0, 0, 1, 1], [], []>} : vector<256x24xf32>, vector<24x8xf32>, vector<256x8xf32> -> vector<256x8xf32>
    %147 = arith.addf %141, %146 : vector<256x8xf32>
    %c1_188 = arith.constant 1 : index
    %c0_189 = arith.constant 0 : index
    %c0_190 = arith.constant 0 : index
    %148 = vector.load %arg11[%c1_188, %c0_189, %c0_190] : memref<18x18x32xf32, #tpu.memory_space<vmem>>, vector<16x16x24xf32>
    %149 = vector.shape_cast %148 : vector<16x16x24xf32> to vector<256x24xf32>
    %c1_191 = arith.constant 1 : index
    %c0_192 = arith.constant 0 : index
    %c0_193 = arith.constant 0 : index
    %c0_194 = arith.constant 0 : index
    %150 = vector.load %arg6[%c1_191, %c0_192, %c0_193, %c0_194] : memref<3x3x24x8xf32, #tpu.memory_space<vmem>>, vector<1x1x24x8xf32>
    %151 = vector.shape_cast %150 : vector<1x1x24x8xf32> to vector<24x8xf32>
    %cst_195 = arith.constant dense<0.000000e+00> : vector<256x8xf32>
    %152 = tpu.matmul %149, %151, %cst_195 {dimension_numbers = #tpu.dot_dimension_numbers<[1], [0], [0], [1], [0, 0, 1, 1], [], []>} : vector<256x24xf32>, vector<24x8xf32>, vector<256x8xf32> -> vector<256x8xf32>
    %153 = arith.addf %147, %152 : vector<256x8xf32>
    %c1_196 = arith.constant 1 : index
    %c1_197 = arith.constant 1 : index
    %c0_198 = arith.constant 0 : index
    %154 = vector.load %arg11[%c1_196, %c1_197, %c0_198] : memref<18x18x32xf32, #tpu.memory_space<vmem>>, vector<16x16x24xf32>
    %155 = vector.shape_cast %154 : vector<16x16x24xf32> to vector<256x24xf32>
    %c1_199 = arith.constant 1 : index
    %c1_200 = arith.constant 1 : index
    %c0_201 = arith.constant 0 : index
    %c0_202 = arith.constant 0 : index
    %156 = vector.load %arg6[%c1_199, %c1_200, %c0_201, %c0_202] : memref<3x3x24x8xf32, #tpu.memory_space<vmem>>, vector<1x1x24x8xf32>
    %157 = vector.shape_cast %156 : vector<1x1x24x8xf32> to vector<24x8xf32>
    %cst_203 = arith.constant dense<0.000000e+00> : vector<256x8xf32>
    %158 = tpu.matmul %155, %157, %cst_203 {dimension_numbers = #tpu.dot_dimension_numbers<[1], [0], [0], [1], [0, 0, 1, 1], [], []>} : vector<256x24xf32>, vector<24x8xf32>, vector<256x8xf32> -> vector<256x8xf32>
    %159 = arith.addf %153, %158 : vector<256x8xf32>
    %c1_204 = arith.constant 1 : index
    %c2_205 = arith.constant 2 : index
    %c0_206 = arith.constant 0 : index
    %160 = vector.load %arg11[%c1_204, %c2_205, %c0_206] : memref<18x18x32xf32, #tpu.memory_space<vmem>>, vector<16x16x24xf32>
    %161 = vector.shape_cast %160 : vector<16x16x24xf32> to vector<256x24xf32>
    %c1_207 = arith.constant 1 : index
    %c2_208 = arith.constant 2 : index
    %c0_209 = arith.constant 0 : index
    %c0_210 = arith.constant 0 : index
    %162 = vector.load %arg6[%c1_207, %c2_208, %c0_209, %c0_210] : memref<3x3x24x8xf32, #tpu.memory_space<vmem>>, vector<1x1x24x8xf32>
    %163 = vector.shape_cast %162 : vector<1x1x24x8xf32> to vector<24x8xf32>
    %cst_211 = arith.constant dense<0.000000e+00> : vector<256x8xf32>
    %164 = tpu.matmul %161, %163, %cst_211 {dimension_numbers = #tpu.dot_dimension_numbers<[1], [0], [0], [1], [0, 0, 1, 1], [], []>} : vector<256x24xf32>, vector<24x8xf32>, vector<256x8xf32> -> vector<256x8xf32>
    %165 = arith.addf %159, %164 : vector<256x8xf32>
    %c2_212 = arith.constant 2 : index
    %c0_213 = arith.constant 0 : index
    %c0_214 = arith.constant 0 : index
    %166 = vector.load %arg11[%c2_212, %c0_213, %c0_214] : memref<18x18x32xf32, #tpu.memory_space<vmem>>, vector<16x16x24xf32>
    %167 = vector.shape_cast %166 : vector<16x16x24xf32> to vector<256x24xf32>
    %c2_215 = arith.constant 2 : index
    %c0_216 = arith.constant 0 : index
    %c0_217 = arith.constant 0 : index
    %c0_218 = arith.constant 0 : index
    %168 = vector.load %arg6[%c2_215, %c0_216, %c0_217, %c0_218] : memref<3x3x24x8xf32, #tpu.memory_space<vmem>>, vector<1x1x24x8xf32>
    %169 = vector.shape_cast %168 : vector<1x1x24x8xf32> to vector<24x8xf32>
    %cst_219 = arith.constant dense<0.000000e+00> : vector<256x8xf32>
    %170 = tpu.matmul %167, %169, %cst_219 {dimension_numbers = #tpu.dot_dimension_numbers<[1], [0], [0], [1], [0, 0, 1, 1], [], []>} : vector<256x24xf32>, vector<24x8xf32>, vector<256x8xf32> -> vector<256x8xf32>
    %171 = arith.addf %165, %170 : vector<256x8xf32>
    %c2_220 = arith.constant 2 : index
    %c1_221 = arith.constant 1 : index
    %c0_222 = arith.constant 0 : index
    %172 = vector.load %arg11[%c2_220, %c1_221, %c0_222] : memref<18x18x32xf32, #tpu.memory_space<vmem>>, vector<16x16x24xf32>
    %173 = vector.shape_cast %172 : vector<16x16x24xf32> to vector<256x24xf32>
    %c2_223 = arith.constant 2 : index
    %c1_224 = arith.constant 1 : index
    %c0_225 = arith.constant 0 : index
    %c0_226 = arith.constant 0 : index
    %174 = vector.load %arg6[%c2_223, %c1_224, %c0_225, %c0_226] : memref<3x3x24x8xf32, #tpu.memory_space<vmem>>, vector<1x1x24x8xf32>
    %175 = vector.shape_cast %174 : vector<1x1x24x8xf32> to vector<24x8xf32>
    %cst_227 = arith.constant dense<0.000000e+00> : vector<256x8xf32>
    %176 = tpu.matmul %173, %175, %cst_227 {dimension_numbers = #tpu.dot_dimension_numbers<[1], [0], [0], [1], [0, 0, 1, 1], [], []>} : vector<256x24xf32>, vector<24x8xf32>, vector<256x8xf32> -> vector<256x8xf32>
    %177 = arith.addf %171, %176 : vector<256x8xf32>
    %c2_228 = arith.constant 2 : index
    %c2_229 = arith.constant 2 : index
    %c0_230 = arith.constant 0 : index
    %178 = vector.load %arg11[%c2_228, %c2_229, %c0_230] : memref<18x18x32xf32, #tpu.memory_space<vmem>>, vector<16x16x24xf32>
    %179 = vector.shape_cast %178 : vector<16x16x24xf32> to vector<256x24xf32>
    %c2_231 = arith.constant 2 : index
    %c2_232 = arith.constant 2 : index
    %c0_233 = arith.constant 0 : index
    %c0_234 = arith.constant 0 : index
    %180 = vector.load %arg6[%c2_231, %c2_232, %c0_233, %c0_234] : memref<3x3x24x8xf32, #tpu.memory_space<vmem>>, vector<1x1x24x8xf32>
    %181 = vector.shape_cast %180 : vector<1x1x24x8xf32> to vector<24x8xf32>
    %cst_235 = arith.constant dense<0.000000e+00> : vector<256x8xf32>
    %182 = tpu.matmul %179, %181, %cst_235 {dimension_numbers = #tpu.dot_dimension_numbers<[1], [0], [0], [1], [0, 0, 1, 1], [], []>} : vector<256x24xf32>, vector<24x8xf32>, vector<256x8xf32> -> vector<256x8xf32>
    %183 = arith.addf %177, %182 : vector<256x8xf32>
    %c0_236 = arith.constant 0 : index
    %c0_237 = arith.constant 0 : index
    %184 = vector.load %arg7[%c0_236, %c0_237] : memref<1x8xf32, #tpu.memory_space<vmem>>, vector<1x8xf32>
    %185 = vector.broadcast %184 : vector<1x8xf32> to vector<256x8xf32>
    %186 = arith.addf %183, %185 : vector<256x8xf32>
    %cst_238 = arith.constant 0.000000e+00 : f32
    %187 = vector.broadcast %cst_238 : f32 to vector<256x8xf32>
    %188 = arith.maximumf %186, %187 : vector<256x8xf32>
    %189 = vector.shape_cast %188 : vector<256x8xf32> to vector<16x16x8xf32>
    %c1_239 = arith.constant 1 : index
    %c1_240 = arith.constant 1 : index
    %c24 = arith.constant 24 : index
    %190 = vector.load %arg11[%c1_239, %c1_240, %c24] : memref<18x18x32xf32, #tpu.memory_space<vmem>>, vector<16x16x8xf32>
    tpu.vector_store %arg11[%c1_239, %c1_240, %c24], %189 {strides = array<i32>} : memref<18x18x32xf32, #tpu.memory_space<vmem>>, vector<16x16x8xf32>,
    %c1_241 = arith.constant 1 : index
    %c1_242 = arith.constant 1 : index
    %c0_243 = arith.constant 0 : index
    %191 = vector.load %arg11[%c1_241, %c1_242, %c0_243] : memref<18x18x32xf32, #tpu.memory_space<vmem>>, vector<16x16x32xf32>
    %192 = vector.shape_cast %191 : vector<16x16x32xf32> to vector<256x32xf32>
    %c0_244 = arith.constant 0 : index
    %c0_245 = arith.constant 0 : index
    %193 = vector.load %arg8[%c0_244, %c0_245] : memref<32x8xf32, #tpu.memory_space<vmem>>, vector<32x8xf32>
    %cst_246 = arith.constant dense<0.000000e+00> : vector<256x8xf32>
    %194 = tpu.matmul %192, %193, %cst_246 {dimension_numbers = #tpu.dot_dimension_numbers<[1], [0], [0], [1], [0, 0, 1, 1], [], []>} : vector<256x32xf32>, vector<32x8xf32>, vector<256x8xf32> -> vector<256x8xf32>
    %c0_247 = arith.constant 0 : index
    %c0_248 = arith.constant 0 : index
    %195 = vector.load %arg9[%c0_247, %c0_248] : memref<1x8xf32, #tpu.memory_space<vmem>>, vector<1x8xf32>
    %196 = vector.broadcast %195 : vector<1x8xf32> to vector<256x8xf32>
    %197 = arith.addf %194, %196 : vector<256x8xf32>
    %198 = vector.shape_cast %3 : vector<16x16x8xf32> to vector<256x8xf32>
    %199 = arith.addf %198, %197 : vector<256x8xf32>
    %200 = vector.shape_cast %199 : vector<256x8xf32> to vector<16x16x8xf32>
    %c0_249 = arith.constant 0 : index
    %c0_250 = arith.constant 0 : index
    %c0_251 = arith.constant 0 : index
    %c0_252 = arith.constant 0 : index
    %201 = vector.load %arg10[%c0_249, %c0_250, %c0_251, %c0_252] : memref<1x16x16x8xf32, #tpu.memory_space<vmem>>, vector<1x16x16x8xf32>
    %202 = vector.shape_cast %201 : vector<1x16x16x8xf32> to vector<16x16x8xf32>
    %203 = vector.shape_cast %200 : vector<16x16x8xf32> to vector<1x16x16x8xf32>
    tpu.vector_store %arg10[%c0_249, %c0_250, %c0_251, %c0_252], %203 {strides = array<i32>} : memref<1x16x16x8xf32, #tpu.memory_space<vmem>>, vector<1x16x16x8xf32>,
    return
  }
  func.func @transform_0(%arg0: i32) -> (i32, i32, i32, i32) {
    %c0_i32 = arith.constant 0 : i32
    %c0_i32_0 = arith.constant 0 : i32
    %c0_i32_1 = arith.constant 0 : i32
    %c0_i32_2 = arith.constant 0 : i32
    return %arg0, %c0_i32, %c0_i32_0, %c0_i32_1 : i32, i32, i32, i32
  }
  func.func @transform_1(%arg0: i32) -> (i32, i32, i32, i32) {
    %c0_i32 = arith.constant 0 : i32
    %c0_i32_0 = arith.constant 0 : i32
    %c0_i32_1 = arith.constant 0 : i32
    %c0_i32_2 = arith.constant 0 : i32
    %c0_i32_3 = arith.constant 0 : i32
    return %c0_i32, %c0_i32_0, %c0_i32_1, %c0_i32_2 : i32, i32, i32, i32
  }
  func.func @transform_2(%arg0: i32) -> (i32, i32) {
    %c0_i32 = arith.constant 0 : i32
    %c0_i32_0 = arith.constant 0 : i32
    %c0_i32_1 = arith.constant 0 : i32
    return %c0_i32, %c0_i32_0 : i32, i32
  }
  func.func @transform_3(%arg0: i32) -> (i32, i32, i32, i32) {
    %c0_i32 = arith.constant 0 : i32
    %c0_i32_0 = arith.constant 0 : i32
    %c0_i32_1 = arith.constant 0 : i32
    %c0_i32_2 = arith.constant 0 : i32
    %c0_i32_3 = arith.constant 0 : i32
    return %c0_i32, %c0_i32_0, %c0_i32_1, %c0_i32_2 : i32, i32, i32, i32
  }
  func.func @transform_4(%arg0: i32) -> (i32, i32) {
    %c0_i32 = arith.constant 0 : i32
    %c0_i32_0 = arith.constant 0 : i32
    %c0_i32_1 = arith.constant 0 : i32
    return %c0_i32, %c0_i32_0 : i32, i32
  }
  func.func @transform_5(%arg0: i32) -> (i32, i32, i32, i32) {
    %c0_i32 = arith.constant 0 : i32
    %c0_i32_0 = arith.constant 0 : i32
    %c0_i32_1 = arith.constant 0 : i32
    %c0_i32_2 = arith.constant 0 : i32
    %c0_i32_3 = arith.constant 0 : i32
    return %c0_i32, %c0_i32_0, %c0_i32_1, %c0_i32_2 : i32, i32, i32, i32
  }
  func.func @transform_6(%arg0: i32) -> (i32, i32) {
    %c0_i32 = arith.constant 0 : i32
    %c0_i32_0 = arith.constant 0 : i32
    %c0_i32_1 = arith.constant 0 : i32
    return %c0_i32, %c0_i32_0 : i32, i32
  }
  func.func @transform_7(%arg0: i32) -> (i32, i32) {
    %c0_i32 = arith.constant 0 : i32
    %c0_i32_0 = arith.constant 0 : i32
    %c0_i32_1 = arith.constant 0 : i32
    return %c0_i32, %c0_i32_0 : i32, i32
  }
  func.func @transform_8(%arg0: i32) -> (i32, i32) {
    %c0_i32 = arith.constant 0 : i32
    %c0_i32_0 = arith.constant 0 : i32
    %c0_i32_1 = arith.constant 0 : i32
    return %c0_i32, %c0_i32_0 : i32, i32
  }
  func.func @transform_9(%arg0: i32) -> (i32, i32, i32, i32) {
    %c0_i32 = arith.constant 0 : i32
    %c0_i32_0 = arith.constant 0 : i32
    %c0_i32_1 = arith.constant 0 : i32
    %c0_i32_2 = arith.constant 0 : i32
    return %arg0, %c0_i32, %c0_i32_0, %c0_i32_1 : i32, i32, i32, i32
  }
}

</mosaic_0001>

<bundles_post_ra>
// kernel: tpu_custom_call.1
= control target key start
LH: loop header
LB: loop body
LE: loop exit
PB: predicated region body
PF: predicated region fallthrough
CT: control target
= control target key end

     0   :  { %s16215_s30 = smov 0   ;;  %s19463_s0 = inlined_call_operand.vmem [shape: f32[2,16,16,8], index: 0, kind: input, shape index: {}]   ;;  %s19464_s1 = inlined_call_operand.vmem [shape: f32[3,3,8,8], index: 1, kind: input, shape index: {}]   ;;  %s19465_s2 = inlined_call_operand.vmem [shape: f32[1,8], index: 2, kind: input, shape index: {}]   ;;  %s19466_s3 = inlined_call_operand.vmem [shape: f32[3,3,16,8], index: 3, kind: input, shape index: {}]   ;;  %s19467_s4 = inlined_call_operand.vmem [shape: f32[1,8], index: 4, kind: input, shape index: {}]   ;;  %s19468_s5 = inlined_call_operand.vmem [shape: f32[3,3,24,8], index: 5, kind: input, shape index: {}]   ;;  %s19469_s6 = inlined_call_operand.vmem [shape: f32[1,8], index: 6, kind: input, shape index: {}]   ;;  %s19470_s7 = inlined_call_operand.vmem [shape: f32[32,8], index: 7, kind: input, shape index: {}]   ;;  %s19471_s8 = inlined_call_operand.vmem [shape: f32[1,8], index: 8, kind: input, shape index: {}]   ;;  %s19472_s9 = inlined_call_operand.vmem [shape: f32[2,16,16,8], index: 9, kind: output, shape index: {}]  }
   0x1 LB: > { %s11918_s10 = sadd.s32 4294967295, %s16159_s30   ;;  %p11922_p0 = scmp.ge.s32.totalorder %s16159_s30, 1  ;;  %s16159_s30 = sphi %s16215_s30, %s19_s30  }
   0x2   : > { %p287_p1 = scmp.lt.s32.totalorder %s16159_s30, 3 }
   0x4   : > { %p288_p2 = pnand %p11922_p0, %p287_p1 }
   0x6   : > { %291 = sbr.rel (%p288_p2) target bundleno = 2629 (0xa45), region = 56 }
   0xd   : > { %v16226_v0 = vld [vmem:[%s19464_s1 + $0x8] sm:$0xff]  ;;  %vm333_vm0 = vcmask 261120   ;;  %vm336_vm1 = vcmask 254976   ;;  %v12058_v1 = vld [vmem:[%s19464_s1 + $0x20] sm:$0xff]  ;;  %v16161_v2 = vmov 0.0   ;;  %p323_p3 = scmp.lt.s32.totalorder %s11918_s10, 1 }
   0xe   : > { %13833 = vmatprep.subr.mxu1 %v16226_v0  ;;  %334 = vst.msk [vmem:[#allocation2] sm:$0xff] %vm333_vm0, %v16161_v2  ;;  %335 = vst.msk [vmem:[#allocation2 + $0x8] sm:$0xff] %vm333_vm0, %v16161_v2  ;;  %14033 = vmatprep.subr.mxu0 %v12058_v1  ;;  %v16291_v3 = vld [vmem:[%s19464_s1 + $0x28] sm:$0xff]  ;;  %v487_v4 = vld [vmem:[%s19464_s1] sm:$0xff]  ;;  %vm422_vm2 = vcmask 64512   ;;  %vm4175_vm3 = vcmask 130048  }
   0xf   : > { %338 = vst.msk [vmem:[#allocation2 + $0x18] sm:$0xff] %vm333_vm0, %v16161_v2  ;;  %339 = vst.msk [vmem:[#allocation2 + $0x20] sm:$0xff] %vm333_vm0, %v16161_v2  ;;  %13834 = vmatpush3.msra.mxu1 %v16226_v0  ;;  %14034 = vmatpush3.msra.mxu0 %v12058_v1  ;;  %s19962_s10 = smov (!%p323_p3, %s11918_s10), 1  ;;  %v16435_v34 = vld [vmem:[%s19464_s1 + $0x30] sm:$0xff]  ;;  %s16162_s25 = smov 8   ;;  %vm4073_vm4 = vcmask 130112  }
  0x10   : > { %341 = vst.msk [vmem:[#allocation2 + $0x30] sm:$0xff] %vm333_vm0, %v16161_v2  ;;  %342 = vst.msk [vmem:[#allocation2 + $0x38] sm:$0xff] %vm333_vm0, %v16161_v2  ;;  %14083 = vmatprep.subr.mxu0 %v16291_v3  ;;  %13883 = vmatprep.subr.mxu1 %v487_v4  ;;  %s12877_s19 = sshll.u32 %s19962_s10, 8  ;;  %v11992_v59 = vld [vmem:[%s19464_s1 + $0x10] sm:$0xff]  ;;  %vm7837_vm5 = vcmask 195584   ;;  %s16163_s11 = smov 16  }
  0x11   : > { %344 = vst.msk [vmem:[#allocation2 + $0x48] sm:$0xff] %vm333_vm0, %v16161_v2  ;;  %345 = vst.msk [vmem:[#allocation2 + $0x50] sm:$0xff] %vm333_vm0, %v16161_v2  ;;  %s16308_s22 = scalar_lea.vmem %s19463_s0, %s12877_s19  ;;  %vm7733_vm6 = vcmask 195712   ;;  %s16164_s12 = smov 24   ;;  %vm11402_vm7 = vcmask 261312  }
  0x12   : > { %347 = vst.msk [vmem:[#allocation2 + $0x60] sm:$0xff] %vm333_vm0, %v16161_v2  ;;  %348 = vst.msk [vmem:[#allocation2 + $0x68] sm:$0xff] %vm333_vm0, %v16161_v2  ;;  %v16311_v5 = vld [vmem:[%s16308_s22] sm:$0xff]  ;;  %v16314_v6 = vld [vmem:[%s16308_s22 + $0x8] sm:$0xff]  ;;  %s19331_s17 = scalar_lea.vmem %s19472_s9, %s12877_s19 }
  0x13   : > { %350 = vst.msk [vmem:[#allocation2 + $0x78] sm:$0xff] %vm333_vm0, %v16161_v2  ;;  %351 = vst.msk [vmem:[#allocation2 + $0x80] sm:$0xff] %vm333_vm0, %v16161_v2  ;;  %v16317_v7 = vld [vmem:[%s16308_s22 + $0x10] sm:$0xff]  ;;  %v16326_v10 = vld [vmem:[%s16308_s22 + $0x18] sm:$0xff] }
  0x14   : > { %353 = vst.msk [vmem:[#allocation2 + $0x90] sm:$0xff] %vm333_vm0, %v16161_v2  ;;  %354 = vst.msk [vmem:[#allocation2 + $0x98] sm:$0xff] %vm333_vm0, %v16161_v2  ;;  %v16332_v11 = vld [vmem:[%s16308_s22 + $0x20] sm:$0xff]  ;;  %v16335_v12 = vld [vmem:[%s16308_s22 + $0x28] sm:$0xff] }
  0x15   : > { %356 = vst.msk [vmem:[#allocation2 + $0xa8] sm:$0xff] %vm333_vm0, %v16161_v2  ;;  %357 = vst.msk [vmem:[#allocation2 + $0xb0] sm:$0xff] %vm333_vm0, %v16161_v2  ;;  %v488_v8 = vld [vmem:[#allocation2 + $0x1] sm:$0xff]  ;;  %v16338_v13 = vld [vmem:[%s16308_s22 + $0x30] sm:$0xff] }
  0x16   : > { %359 = vst.msk [vmem:[#allocation2 + $0xc0] sm:$0xff] %vm333_vm0, %v16161_v2  ;;  %360 = vst.msk [vmem:[#allocation2 + $0xc8] sm:$0xff] %vm333_vm0, %v16161_v2  ;;  %13835 = vmatprep.mubr.msk.f32.mxu1 %vm422_vm2, %v488_v8  ;;  %v16348_v14 = vld [vmem:[%s16308_s22 + $0x38] sm:$0xff]  ;;  %v16351_v15 = vld [vmem:[%s16308_s22 + $0x40] sm:$0xff] }
  0x17   : > { %362 = vst.msk [vmem:[#allocation2 + $0xd8] sm:$0xff] %vm333_vm0, %v16161_v2  ;;  %363 = vst.msk [vmem:[#allocation2 + $0xe0] sm:$0xff] %vm333_vm0, %v16161_v2  ;;  %v16354_v16 = vld [vmem:[%s16308_s22 + $0x48] sm:$0xff]  ;;  %v16363_v17 = vld [vmem:[%s16308_s22 + $0x50] sm:$0xff] }
  0x18   : > { %365 = vst.msk [vmem:[#allocation2 + $0xf0] sm:$0xff] %vm333_vm0, %v16161_v2  ;;  %366 = vst.msk [vmem:[#allocation2 + $0xf8] sm:$0xff] %vm333_vm0, %v16161_v2  ;;  %v16366_v18 = vld [vmem:[%s16308_s22 + $0x58] sm:$0xff]  ;;  %v16369_v19 = vld [vmem:[%s16308_s22 + $0x60] sm:$0xff] }
  0x19   : > { %368 = vst.msk [vmem:[#allocation2 + $0x108] sm:$0xff] %vm333_vm0, %v16161_v2  ;;  %369 = vst.msk [vmem:[#allocation2 + $0x110] sm:$0xff] %vm333_vm0, %v16161_v2  ;;  %v16378_v20 = vld [vmem:[%s16308_s22 + $0x68] sm:$0xff]  ;;  %v16381_v21 = vld [vmem:[%s16308_s22 + $0x70] sm:$0xff] }
  0x1a   : > { %371 = vst.msk [vmem:[#allocation2 + $0x120] sm:$0xff] %vm333_vm0, %v16161_v2  ;;  %372 = vst.msk [vmem:[#allocation2 + $0x128] sm:$0xff] %vm333_vm0, %v16161_v2  ;;  %v16384_v22 = vld [vmem:[%s16308_s22 + $0x78] sm:$0xff]  ;;  %v16393_v23 = vld [vmem:[%s16308_s22 + $0x80] sm:$0xff] }
  0x1b   : > { %374 = vst.msk [vmem:[#allocation2 + $0x138] sm:$0xff] %vm333_vm0, %v16161_v2  ;;  %375 = vst.msk [vmem:[#allocation2 + $0x140] sm:$0xff] %vm333_vm0, %v16161_v2  ;;  %v16396_v24 = vld [vmem:[%s16308_s22 + $0x88] sm:$0xff]  ;;  %v16399_v25 = vld [vmem:[%s16308_s22 + $0x90] sm:$0xff] }
  0x1c   : > { %377 = vst.msk [vmem:[#allocation2 + $0x150] sm:$0xff] %vm333_vm0, %v16161_v2  ;;  %378 = vst.msk [vmem:[#allocation2 + $0x158] sm:$0xff] %vm333_vm0, %v16161_v2  ;;  %v16408_v26 = vld [vmem:[%s16308_s22 + $0x98] sm:$0xff]  ;;  %v16411_v27 = vld [vmem:[%s16308_s22 + $0xa0] sm:$0xff] }
  0x1d   : > { %380 = vst.msk [vmem:[#allocation2 + $0x168] sm:$0xff] %vm333_vm0, %v16161_v2  ;;  %381 = vst.msk [vmem:[#allocation2 + $0x170] sm:$0xff] %vm333_vm0, %v16161_v2  ;;  %v16414_v28 = vld [vmem:[%s16308_s22 + $0xa8] sm:$0xff]  ;;  %v16427_v32 = vld [vmem:[%s16308_s22 + $0xb0] sm:$0xff] }
  0x1e   : > { %383 = vst.msk [vmem:[#allocation2 + $0x180] sm:$0xff] %vm333_vm0, %v16161_v2  ;;  %384 = vst.msk [vmem:[#allocation2 + $0x188] sm:$0xff] %vm333_vm0, %v16161_v2  ;;  %v16430_v33 = vld [vmem:[%s16308_s22 + $0xb8] sm:$0xff]  ;;  %v16466_v39 = vld [vmem:[%s16308_s22 + $0xc0] sm:$0xff] }
  0x1f   : > { %386 = vst.msk [vmem:[#allocation2 + $0x198] sm:$0xff] %vm333_vm0, %v16161_v2  ;;  %387 = vst.msk [vmem:[#allocation2 + $0x1a0] sm:$0xff] %vm333_vm0, %v16161_v2  ;;  %v16469_v40 = vld [vmem:[%s16308_s22 + $0xc8] sm:$0xff]  ;;  %v16472_v41 = vld [vmem:[%s16308_s22 + $0xd0] sm:$0xff] }
  0x20   : > { %337 = vst.msk [vmem:[#allocation2 + $0x10] sm:$0x3] %vm336_vm1, %v16161_v2  ;;  %340 = vst.msk [vmem:[#allocation2 + $0x28] sm:$0x3] %vm336_vm1, %v16161_v2  ;;  %v16481_v42 = vld [vmem:[%s16308_s22 + $0xd8] sm:$0xff]  ;;  %v16490_v43 = vld [vmem:[%s16308_s22 + $0xe0] sm:$0xff] }
  0x21   : > { %343 = vst.msk [vmem:[#allocation2 + $0x40] sm:$0x3] %vm336_vm1, %v16161_v2  ;;  %346 = vst.msk [vmem:[#allocation2 + $0x58] sm:$0x3] %vm336_vm1, %v16161_v2  ;;  %v16493_v44 = vld [vmem:[%s16308_s22 + $0xe8] sm:$0xff]  ;;  %v16506_v46 = vld [vmem:[%s16308_s22 + $0xf0] sm:$0xff] }
  0x22   : > { %349 = vst.msk [vmem:[#allocation2 + $0x70] sm:$0x3] %vm336_vm1, %v16161_v2  ;;  %352 = vst.msk [vmem:[#allocation2 + $0x88] sm:$0x3] %vm336_vm1, %v16161_v2  ;;  %v16509_v47 = vld [vmem:[%s16308_s22 + $0xf8] sm:$0xff] }
  0x23   : > { %355 = vst.msk [vmem:[#allocation2 + $0xa0] sm:$0x3] %vm336_vm1, %v16161_v2  ;;  %358 = vst.msk [vmem:[#allocation2 + $0xb8] sm:$0x3] %vm336_vm1, %v16161_v2 }
  0x24   : > { %361 = vst.msk [vmem:[#allocation2 + $0xd0] sm:$0x3] %vm336_vm1, %v16161_v2  ;;  %364 = vst.msk [vmem:[#allocation2 + $0xe8] sm:$0x3] %vm336_vm1, %v16161_v2 }
  0x25   : > { %367 = vst.msk [vmem:[#allocation2 + $0x100] sm:$0x3] %vm336_vm1, %v16161_v2  ;;  %370 = vst.msk [vmem:[#allocation2 + $0x118] sm:$0x3] %vm336_vm1, %v16161_v2 }
  0x26   : > { %373 = vst.msk [vmem:[#allocation2 + $0x130] sm:$0x3] %vm336_vm1, %v16161_v2  ;;  %376 = vst.msk [vmem:[#allocation2 + $0x148] sm:$0x3] %vm336_vm1, %v16161_v2 }
  0x27   : > { %379 = vst.msk [vmem:[#allocation2 + $0x160] sm:$0x3] %vm336_vm1, %v16161_v2  ;;  %382 = vst.msk [vmem:[#allocation2 + $0x178] sm:$0x3] %vm336_vm1, %v16161_v2  ;;  %v489_v9 = vld [vmem:[#allocation2 + $0x9] sm:$0xff] }
  0x28   : > { %385 = vst.msk [vmem:[#allocation2 + $0x190] sm:$0x3] %vm336_vm1, %v16161_v2  ;;  %388 = vst.msk [vmem:[#allocation2 + $0x1a8] sm:$0x3] %vm336_vm1, %v16161_v2  ;;  %13836 = vmatmul.mubr.msk.f32.vlgmr.msra.gmra.mrb[0].mxu1 %vm422_vm2, %v489_v9 }
  0x29   : > { %19665 = vst [vmem:[#allocation3_spill] sm:$0xff] %v16311_v5  ;;  %19666 = vst [vmem:[#allocation4_spill] sm:$0xff] %v16314_v6  ;;  %13884 = vmatpush3.msra.mxu1 %v487_v4 }
  0x2a   : > { %19667 = vst [vmem:[#allocation5_spill] sm:$0xff] %v16317_v7  ;;  %423 = vst.msk [vmem:[#allocation2 + $0x19] sm:$0xff] %vm422_vm2, %v16311_v5  ;;  %13933 = vmatprep.subr.mxu1 %v11992_v59 }
  0x2b   : > { %424 = vst.msk [vmem:[#allocation2 + $0x21] sm:$0xff] %vm422_vm2, %v16314_v6  ;;  %425 = vst.msk [vmem:[#allocation2 + $0x31] sm:$0xff] %vm422_vm2, %v16317_v7 }
  0x2c   : > { %19668 = vst [vmem:[#allocation6_spill] sm:$0xff] %v16326_v10  ;;  %426 = vst.msk [vmem:[#allocation2 + $0x39] sm:$0xff] %vm422_vm2, %v16326_v10 }
  0x2d   : > { %19669 = vst [vmem:[#allocation7_spill] sm:$0xff] %v16332_v11  ;;  %19670 = vst [vmem:[#allocation8_spill] sm:$0xff] %v16335_v12 }
  0x2e   : > { %19671 = vst [vmem:[#allocation9_spill] sm:$0xff] %v16338_v13  ;;  %427 = vst.msk [vmem:[#allocation2 + $0x49] sm:$0xff] %vm422_vm2, %v16332_v11 }
  0x2f   : > { %428 = vst.msk [vmem:[#allocation2 + $0x51] sm:$0xff] %vm422_vm2, %v16335_v12  ;;  %429 = vst.msk [vmem:[#allocation2 + $0x61] sm:$0xff] %vm422_vm2, %v16338_v13 }
  0x30   : > { %19672 = vst [vmem:[#allocation10_spill] sm:$0xff] %v16348_v14  ;;  %19673 = vst [vmem:[#allocation11_spill] sm:$0xff] %v16351_v15 }
  0x31   : > { %19674 = vst [vmem:[#allocation12_spill] sm:$0xff] %v16354_v16  ;;  %430 = vst.msk [vmem:[#allocation2 + $0x69] sm:$0xff] %vm422_vm2, %v16348_v14  ;;  %v490_v29 = vld [vmem:[#allocation2 + $0x19] sm:$0xff] }
  0x32   : > { %431 = vst.msk [vmem:[#allocation2 + $0x79] sm:$0xff] %vm422_vm2, %v16351_v15  ;;  %432 = vst.msk [vmem:[#allocation2 + $0x81] sm:$0xff] %vm422_vm2, %v16354_v16  ;;  %v491_v30 = vld [vmem:[#allocation2 + $0x21] sm:$0xff]  ;;  %v16416_v31 = vld [vmem:[#allocation2 + $0x31] sm:$0xff]  ;;  %13838 = vmatprep.mubr.msk.f32.mxu1 %vm422_vm2, %v490_v29  ;;  %14035 = vmatprep.mubr.msk.f32.mxu0 %vm422_vm2, %v490_v29 }
  0x33   : > { %19675 = vst [vmem:[#allocation13_spill] sm:$0xff] %v16363_v17  ;;  %19676 = vst [vmem:[#allocation14_spill] sm:$0xff] %v16366_v18  ;;  %13839 = vmatmul.mubr.msk.f32.gmra.mrb[2].mxu1 %vm422_vm2, %v491_v30  ;;  %14036 = vmatmul.mubr.msk.f32.vlgmr.msra.gmra.mrb[0].mxu0 %vm422_vm2, %v491_v30  ;;  %v16446_v35 = vld [vmem:[#allocation2 + $0x39] sm:$0xff] }
  0x34   : > { %19677 = vst [vmem:[#allocation15_spill] sm:$0xff] %v16369_v19  ;;  %433 = vst.msk [vmem:[#allocation2 + $0x91] sm:$0xff] %vm422_vm2, %v16363_v17  ;;  %14084 = vmatpush3.msra.mxu0 %v16291_v3  ;;  %13841 = vmatprep.mubr.msk.f32.mxu1 %vm422_vm2, %v16416_v31  ;;  %v455_v29 = vld [vmem:[#allocation2] sm:$0xff] }
  0x35   : > { %434 = vst.msk [vmem:[#allocation2 + $0x99] sm:$0xff] %vm422_vm2, %v16366_v18  ;;  %435 = vst.msk [vmem:[#allocation2 + $0xa9] sm:$0xff] %vm422_vm2, %v16369_v19  ;;  %14038 = vmatprep.mubr.msk.f32.mxu0 %vm422_vm2, %v16416_v31  ;;  %v16450_v36 = vld [vmem:[#allocation2 + $0x49] sm:$0xff]  ;;  %14133 = vmatprep.subr.mxu0 %v16435_v34 }
  0x36   : > { %19678 = vst [vmem:[#allocation16_spill] sm:$0xff] %v16378_v20  ;;  %19679 = vst [vmem:[#allocation17_spill] sm:$0xff] %v16381_v21  ;;  %v16461_v37 = vld [vmem:[#allocation2 + $0x51] sm:$0xff]  ;;  %v16463_v38 = vld [vmem:[#allocation2 + $0x61] sm:$0xff] }
  0x37   : > { %19680 = vst [vmem:[#allocation18_spill] sm:$0xff] %v16384_v22  ;;  %436 = vst.msk [vmem:[#allocation2 + $0xb1] sm:$0xff] %vm422_vm2, %v16378_v20  ;;  %13842 = vmatmul.mubr.msk.f32.gmra.mrb[4].mxu1 %vm422_vm2, %v16446_v35  ;;  %14039 = vmatmul.mubr.msk.f32.gmra.mrb[2].mxu0 %vm422_vm2, %v16446_v35 }
  0x38   : > { %437 = vst.msk [vmem:[#allocation2 + $0xc1] sm:$0xff] %vm422_vm2, %v16381_v21  ;;  %438 = vst.msk [vmem:[#allocation2 + $0xc9] sm:$0xff] %vm422_vm2, %v16384_v22  ;;  %13844 = vmatprep.mubr.msk.f32.mxu1 %vm422_vm2, %v16450_v36  ;;  %14041 = vmatprep.mubr.msk.f32.mxu0 %vm422_vm2, %v16450_v36  ;;  %v16499_v45 = vld [vmem:[#allocation2 + $0x69] sm:$0xff] }
  0x39   : > { %19681 = vst [vmem:[#allocation19_spill] sm:$0xff] %v16393_v23  ;;  %19682 = vst [vmem:[#allocation20_spill] sm:$0xff] %v16396_v24  ;;  %v16511_v48 = vld [vmem:[#allocation2 + $0x79] sm:$0xff]  ;;  %v16525_v49 = vld [vmem:[#allocation2 + $0x81] sm:$0xff] }
  0x3a   : > { %19683 = vst [vmem:[#allocation21_spill] sm:$0xff] %v16399_v25  ;;  %439 = vst.msk [vmem:[#allocation2 + $0xd9] sm:$0xff] %vm422_vm2, %v16393_v23  ;;  %v16733_v23 = vld [vmem:[#allocation2 + $0x68] sm:$0xff]  ;;  %v16737_v21 = vld [vmem:[#allocation2 + $0x78] sm:$0xff] }
  0x3b   : > { %440 = vst.msk [vmem:[#allocation2 + $0xe1] sm:$0xff] %vm422_vm2, %v16396_v24  ;;  %441 = vst.msk [vmem:[#allocation2 + $0xf1] sm:$0xff] %vm422_vm2, %v16399_v25  ;;  %13845 = vmatmul.mubr.msk.f32.gmra.mrb[6].mxu1 %vm422_vm2, %v16461_v37  ;;  %14042 = vmatmul.mubr.msk.f32.gmra.mrb[4].mxu0 %vm422_vm2, %v16461_v37  ;;  %v16527_v50 = vld [vmem:[#allocation2 + $0x91] sm:$0xff]  ;;  %v16721_v25 = vld [vmem:[#allocation2 + $0x60] sm:$0xff] }
  0x3c   : > { %19684 = vst [vmem:[#allocation22_spill] sm:$0xff] %v16408_v26  ;;  %19685 = vst [vmem:[#allocation23_spill] sm:$0xff] %v16411_v27  ;;  %13847 = vmatprep.mubr.msk.f32.mxu1 %vm422_vm2, %v16463_v38  ;;  %14044 = vmatprep.mubr.msk.f32.mxu0 %vm422_vm2, %v16463_v38  ;;  %v16537_v51 = vld [vmem:[#allocation2 + $0x99] sm:$0xff]  ;;  %v16539_v52 = vld [vmem:[#allocation2 + $0xa9] sm:$0xff] }
  0x3d   : > { %19686 = vst [vmem:[#allocation24_spill] sm:$0xff] %v16414_v28  ;;  %19687 = vst [vmem:[#allocation25_spill] sm:$0xff] %v16416_v31  ;;  %v16735_v24 = vld [vmem:[#allocation2 + $0x6a] sm:$0xff]  ;;  %v16739_v22 = vld [vmem:[#allocation2 + $0x7a] sm:$0xff] }
  0x3e   : > { %442 = vst.msk [vmem:[#allocation2 + $0xf9] sm:$0xff] %vm422_vm2, %v16408_v26  ;;  %443 = vst.msk [vmem:[#allocation2 + $0x109] sm:$0xff] %vm422_vm2, %v16411_v27  ;;  %v16549_v53 = vld [vmem:[#allocation2 + $0xb1] sm:$0xff]  ;;  %v16723_v26 = vld [vmem:[#allocation2 + $0x62] sm:$0xff] }
  0x3f   : > { %444 = vst.msk [vmem:[#allocation2 + $0x111] sm:$0xff] %vm422_vm2, %v16414_v28  ;;  %19688 = vst [vmem:[#allocation26_spill] sm:$0xff] %v16427_v32  ;;  %13848 = vmatmul.mubr.msk.f32.gmra.mrb[8].mxu1 %vm422_vm2, %v16499_v45  ;;  %14045 = vmatmul.mubr.msk.f32.gmra.mrb[6].mxu0 %vm422_vm2, %v16499_v45  ;;  %v16551_v54 = vld [vmem:[#allocation2 + $0xc1] sm:$0xff]  ;;  %v16561_v55 = vld [vmem:[#allocation2 + $0xc9] sm:$0xff] }
  0x40   : > { %19689 = vst [vmem:[#allocation27_spill] sm:$0xff] %v16430_v33  ;;  %445 = vst.msk [vmem:[#allocation2 + $0x121] sm:$0xff] %vm422_vm2, %v16427_v32  ;;  %13850 = vmatprep.mubr.msk.f32.mxu1 %vm422_vm2, %v16511_v48  ;;  %14047 = vmatprep.mubr.msk.f32.mxu0 %vm422_vm2, %v16511_v48  ;;  %v16700_v32 = vld [vmem:[#allocation2 + $0x3a] sm:$0xff]  ;;  %v16706_v27 = vld [vmem:[#allocation2 + $0x4a] sm:$0xff] }
  0x41   : > { %446 = vst.msk [vmem:[#allocation2 + $0x129] sm:$0xff] %vm422_vm2, %v16430_v33  ;;  %19690 = vst [vmem:[#allocation28_spill] sm:$0xff] %v16446_v35  ;;  %v16563_v56 = vld [vmem:[#allocation2 + $0xd9] sm:$0xff]  ;;  %v16704_v33 = vld [vmem:[#allocation2 + $0x48] sm:$0xff] }
  0x42   : > { %19691 = vst [vmem:[#allocation29_spill] sm:$0xff] %v16450_v36  ;;  %19692 = vst [vmem:[#allocation30_spill] sm:$0xff] %v16461_v37  ;;  %v16573_v57 = vld [vmem:[#allocation2 + $0xe1] sm:$0xff]  ;;  %v16575_v58 = vld [vmem:[#allocation2 + $0xf1] sm:$0xff] }
  0x43   : > { %19693 = vst [vmem:[#allocation31_spill] sm:$0xff] %v16463_v38  ;;  %19694 = vst [vmem:[#allocation32_spill] sm:$0xff] %v16466_v39  ;;  %13851 = vmatmul.mubr.msk.f32.gmra.mrb[10].mxu1 %vm422_vm2, %v16525_v49  ;;  %14048 = vmatmul.mubr.msk.f32.gmra.mrb[8].mxu0 %vm422_vm2, %v16525_v49  ;;  %v16719_v28 = vld [vmem:[#allocation2 + $0x52] sm:$0xff]  ;;  %v16749_v19 = vld [vmem:[#allocation2 + $0x80] sm:$0xff] }
  0x44   : > { %19695 = vst [vmem:[#allocation33_spill] sm:$0xff] %v16469_v40  ;;  %19696 = vst [vmem:[#allocation34_spill] sm:$0xff] %v16472_v41  ;;  %13853 = vmatprep.mubr.msk.f32.mxu1 %vm422_vm2, %v16527_v50  ;;  %14050 = vmatprep.mubr.msk.f32.mxu0 %vm422_vm2, %v16527_v50  ;;  %v16751_v20 = vld [vmem:[#allocation2 + $0x82] sm:$0xff]  ;;  %v16753_v17 = vld [vmem:[#allocation2 + $0x90] sm:$0xff] }
  0x45   : > { %447 = vst.msk [vmem:[#allocation2 + $0x139] sm:$0xff] %vm422_vm2, %v16466_v39  ;;  %448 = vst.msk [vmem:[#allocation2 + $0x141] sm:$0xff] %vm422_vm2, %v16469_v40  ;;  %v16588_v60 = vld [vmem:[#allocation2 + $0xf9] sm:$0xff]  ;;  %v16590_v61 = vld [vmem:[#allocation2 + $0x109] sm:$0xff] }
  0x46   : > { %449 = vst.msk [vmem:[#allocation2 + $0x151] sm:$0xff] %vm422_vm2, %v16472_v41  ;;  %19697 = vst [vmem:[#allocation35_spill] sm:$0xff] %v16481_v42  ;;  %v16600_v62 = vld [vmem:[#allocation2 + $0x111] sm:$0xff]  ;;  %v16767_v16 = vld [vmem:[#allocation2 + $0x9a] sm:$0xff] }
  0x47   : > { %450 = vst.msk [vmem:[#allocation2 + $0x159] sm:$0xff] %vm422_vm2, %v16481_v42  ;;  %19698 = vst [vmem:[#allocation36_spill] sm:$0xff] %v16490_v43  ;;  %13854 = vmatmul.mubr.msk.f32.gmra.mrb[12].mxu1 %vm422_vm2, %v16537_v51  ;;  %14051 = vmatmul.mubr.msk.f32.gmra.mrb[10].mxu0 %vm422_vm2, %v16537_v51  ;;  %v16602_v63 = vld [vmem:[#allocation2 + $0x121] sm:$0xff]  ;;  %v16671_v41 = vld [vmem:[%s19464_s1 + $0x18] sm:$0xff] }
  0x48   : > { %19699 = vst [vmem:[#allocation37_spill] sm:$0xff] %v16493_v44  ;;  %19700 = vst [vmem:[#allocation38_spill] sm:$0xff] %v16499_v45  ;;  %13856 = vmatprep.mubr.msk.f32.mxu1 %vm422_vm2, %v16539_v52  ;;  %14053 = vmatprep.mubr.msk.f32.mxu0 %vm422_vm2, %v16539_v52  ;;  %v16612_v0 = vld [vmem:[#allocation2 + $0x129] sm:$0xff]  ;;  %v16688_v40 = vld [vmem:[%s19464_s1 + $0x38] sm:$0xff] }
  0x49   : > { %451 = vst.msk [vmem:[#allocation2 + $0x169] sm:$0xff] %vm422_vm2, %v16490_v43  ;;  %452 = vst.msk [vmem:[#allocation2 + $0x171] sm:$0xff] %vm422_vm2, %v16493_v44  ;;  %v16661_v43 = vld [vmem:[#allocation2 + $0x18] sm:$0xff]  ;;  %v16679_v42 = vld [vmem:[#allocation2 + $0x22] sm:$0xff] }
  0x4a   : > { %19701 = vst [vmem:[#allocation39_spill] sm:$0xff] %v16506_v46  ;;  %19702 = vst [vmem:[#allocation40_spill] sm:$0xff] %v16509_v47  ;;  %v16663_v44 = vld [vmem:[#allocation2 + $0x1a] sm:$0xff]  ;;  %v16681_v39 = vld [vmem:[#allocation2 + $0x30] sm:$0xff] }
  0x4b   : > { %19703 = vst [vmem:[#allocation41_spill] sm:$0xff] %v16511_v48  ;;  %453 = vst.msk [vmem:[#allocation2 + $0x181] sm:$0xff] %vm422_vm2, %v16506_v46  ;;  %13857 = vmatmul.mubr.msk.f32.gmra.mrb[14].mxu1 %vm422_vm2, %v16549_v53  ;;  %14054 = vmatmul.mubr.msk.f32.gmra.mrb[12].mxu0 %vm422_vm2, %v16549_v53  ;;  %v456_v46 = vld [vmem:[#allocation2 + $0x8] sm:$0xff]  ;;  %v16755_v18 = vld [vmem:[#allocation2 + $0x92] sm:$0xff] }
  0x4c   : > { %454 = vst.msk [vmem:[#allocation2 + $0x189] sm:$0xff] %vm422_vm2, %v16509_v47  ;;  %19704 = vst [vmem:[#allocation42_spill] sm:$0xff] %v16525_v49  ;;  %13859 = vmatprep.mubr.msk.f32.mxu1 %vm422_vm2, %v16551_v54  ;;  %14056 = vmatprep.mubr.msk.f32.mxu0 %vm422_vm2, %v16551_v54  ;;  %v16614_v1 = vld [vmem:[#allocation2 + $0x139] sm:$0xff]  ;;  %v16624_v2 = vld [vmem:[#allocation2 + $0x141] sm:$0xff] }
  0x4d   : > { %19705 = vst [vmem:[#allocation43_spill] sm:$0xff] %v16527_v50  ;;  %19706 = vst [vmem:[#allocation44_spill] sm:$0xff] %v16537_v51  ;;  %v16626_v3 = vld [vmem:[#allocation2 + $0x151] sm:$0xff]  ;;  %v16769_v13 = vld [vmem:[#allocation2 + $0xa8] sm:$0xff] }
  0x4e   : > { %19707 = vst [vmem:[#allocation45_spill] sm:$0xff] %v16539_v52  ;;  %19708 = vst [vmem:[#allocation46_spill] sm:$0xff] %v16549_v53  ;;  %v16636_v4 = vld [vmem:[#allocation2 + $0x159] sm:$0xff]  ;;  %v16771_v14 = vld [vmem:[#allocation2 + $0xaa] sm:$0xff] }
  0x4f   : > { %19709 = vst [vmem:[#allocation47_spill] sm:$0xff] %v16551_v54  ;;  %19710 = vst [vmem:[#allocation48_spill] sm:$0xff] %v16561_v55  ;;  %13860 = vmatmul.mubr.msk.f32.gmra.mrb[16].mxu1 %vm422_vm2, %v16561_v55  ;;  %14057 = vmatmul.mubr.msk.f32.gmra.mrb[14].mxu0 %vm422_vm2, %v16561_v55  ;;  %v16765_v15 = vld [vmem:[#allocation2 + $0x98] sm:$0xff]  ;;  %v16781_v11 = vld [vmem:[#allocation2 + $0xb0] sm:$0xff] }
  0x50   : > { %19711 = vst [vmem:[#allocation49_spill] sm:$0xff] %v16563_v56  ;;  %13862 = vmatprep.mubr.msk.f32.mxu1 %vm422_vm2, %v16563_v56  ;;  %14059 = vmatprep.mubr.msk.f32.mxu0 %vm422_vm2, %v16563_v56  ;;  %19712 = vst [vmem:[#allocation50_spill] sm:$0xff] %v16573_v57  ;;  %v16638_v8 = vld [vmem:[#allocation2 + $0x169] sm:$0xff]  ;;  %v16648_v9 = vld [vmem:[#allocation2 + $0x171] sm:$0xff] }
  0x51   : > { %19713 = vst [vmem:[#allocation51_spill] sm:$0xff] %v16575_v58  ;;  %19714 = vst [vmem:[#allocation52_spill] sm:$0xff] %v16588_v60  ;;  %v16783_v12 = vld [vmem:[#allocation2 + $0xb2] sm:$0xff]  ;;  %v16785_v7 = vld [vmem:[#allocation2 + $0xc0] sm:$0xff] }
  0x52   : > { %19715 = vst [vmem:[#allocation53_spill] sm:$0xff] %v16590_v61  ;;  %19716 = vst [vmem:[#allocation54_spill] sm:$0xff] %v16600_v62  ;;  %v16650_v30 = vld [vmem:[#allocation2 + $0x181] sm:$0xff]  ;;  %v16799_v6 = vld [vmem:[#allocation2 + $0xca] sm:$0xff] }
  0x53   : > { %13863 = vmatmul.mubr.msk.f32.gmra.mrb[18].mxu1 %vm422_vm2, %v16573_v57  ;;  %14060 = vmatmul.mubr.msk.f32.gmra.mrb[16].mxu0 %vm422_vm2, %v16573_v57  ;;  %19717 = vst [vmem:[#allocation55_spill] sm:$0xff] %v16602_v63  ;;  %19718 = vst [vmem:[#allocation56_spill] sm:$0xff] %v16612_v0  ;;  %v16659_v47 = vld [vmem:[#allocation2 + $0x189] sm:$0xff]  ;;  %v16865_v55 = vld [vmem:[#allocation2 + $0x138] sm:$0xff] }
  0x54   : > { %13865 = vmatprep.mubr.msk.f32.mxu1 %vm422_vm2, %v16575_v58  ;;  %14062 = vmatprep.mubr.msk.f32.mxu0 %vm422_vm2, %v16575_v58  ;;  %19719 = vst [vmem:[#allocation57_spill] sm:$0xff] %v16614_v1  ;;  %19720 = vst [vmem:[#allocation58_spill] sm:$0xff] %v16624_v2  ;;  %v16787_v10 = vld [vmem:[#allocation2 + $0xc2] sm:$0xff]  ;;  %v16863_v56 = vld [vmem:[#allocation2 + $0x12a] sm:$0xff] }
  0x55   : > { %19721 = vst [vmem:[#allocation59_spill] sm:$0xff] %v16626_v3  ;;  %19722 = vst [vmem:[#allocation60_spill] sm:$0xff] %v16636_v4  ;;  %v16797_v5 = vld [vmem:[#allocation2 + $0xc8] sm:$0xff]  ;;  %v16867_v54 = vld [vmem:[#allocation2 + $0x13a] sm:$0xff] }
  0x56   : > { %19723 = vst [vmem:[#allocation61_spill] sm:$0xff] %v16638_v8  ;;  %19724 = vst [vmem:[#allocation62_spill] sm:$0xff] %v16648_v9  ;;  %v16851_v58 = vld [vmem:[#allocation2 + $0x122] sm:$0xff]  ;;  %v16881_v51 = vld [vmem:[#allocation2 + $0x150] sm:$0xff] }
  0x57   : > { %13866 = vmatmul.mubr.msk.f32.gmra.mrb[20].mxu1 %vm422_vm2, %v16588_v60  ;;  %14063 = vmatmul.mubr.msk.f32.gmra.mrb[18].mxu0 %vm422_vm2, %v16588_v60  ;;  %19725 = vst [vmem:[#allocation63_spill] sm:$0xff] %v16650_v30  ;;  %19726 = vst [vmem:[#allocation64_spill] sm:$0xff] %v16659_v47  ;;  %v16849_v60 = vld [vmem:[#allocation2 + $0x120] sm:$0xff]  ;;  %v16861_v57 = vld [vmem:[#allocation2 + $0x128] sm:$0xff] }
  0x58   : > { %13868 = vmatprep.mubr.msk.f32.mxu1 %vm422_vm2, %v16590_v61  ;;  %14065 = vmatprep.mubr.msk.f32.mxu0 %vm422_vm2, %v16590_v61  ;;  %19727 = vst [vmem:[#allocation65_spill] sm:$0xff] %v16661_v43  ;;  %v16847_v61 = vld [vmem:[#allocation2 + $0x112] sm:$0xff]  ;;  %v16877_v53 = vld [vmem:[#allocation2 + $0x140] sm:$0xff]  ;;  %v16897_v45 = vld [vmem:[#allocation2 + $0x168] sm:$0xff] }
  0x59   : > { %v16879_v52 = vld [vmem:[#allocation2 + $0x142] sm:$0xff]  ;;  %v16883_v50 = vld [vmem:[#allocation2 + $0x152] sm:$0xff]  ;;  %v16895_v48 = vld [vmem:[#allocation2 + $0x15a] sm:$0xff] }
  0x5a   : > { %v16893_v49 = vld [vmem:[#allocation2 + $0x158] sm:$0xff]  ;;  %v16899_v38 = vld [vmem:[#allocation2 + $0x16a] sm:$0xff]  ;;  %v1164_v35 = vld [vmem:[#allocation2 + $0x2] sm:$0xff] }
  0x5b   : > { %13869 = vmatmul.mubr.msk.f32.gmra.mrb[22].mxu1 %vm422_vm2, %v16600_v62  ;;  %14066 = vmatmul.mubr.msk.f32.gmra.mrb[20].mxu0 %vm422_vm2, %v16600_v62  ;;  %v16845_v62 = vld [vmem:[#allocation2 + $0x110] sm:$0xff]  ;;  %v16913_v31 = vld [vmem:[#allocation2 + $0x182] sm:$0xff] }
  0x5c   : > { %13871 = vmatprep.mubr.msk.f32.mxu1 %vm422_vm2, %v16602_v63  ;;  %14068 = vmatprep.mubr.msk.f32.mxu0 %vm422_vm2, %v16602_v63  ;;  %v16835_v63 = vld [vmem:[#allocation2 + $0x10a] sm:$0xff]  ;;  %v16911_v36 = vld [vmem:[#allocation2 + $0x172] sm:$0xff]  ;;  %19730 = vst [vmem:[#allocation68_spill] sm:$0xff] %v16913_v31 }
  0x5d   : > { %v16909_v37 = vld [vmem:[#allocation2 + $0x170] sm:$0xff]  ;;  %19729 = vst [vmem:[#allocation67_spill] sm:$0xff] %v16911_v36 }
  0x5f   : > { %13872 = vmatmul.mubr.msk.f32.gmra.mrb[24].mxu1 %vm422_vm2, %v16612_v0  ;;  %14069 = vmatmul.mubr.msk.f32.gmra.mrb[22].mxu0 %vm422_vm2, %v16612_v0  ;;  %v16833_v0 = vld [vmem:[#allocation2 + $0x108] sm:$0xff] }
  0x60   : > { %13874 = vmatprep.mubr.msk.f32.mxu1 %vm422_vm2, %v16614_v1  ;;  %14071 = vmatprep.mubr.msk.f32.mxu0 %vm422_vm2, %v16614_v1  ;;  %v16831_v1 = vld [vmem:[#allocation2 + $0xfa] sm:$0xff] }
  0x63   : > { %13875 = vmatmul.mubr.msk.f32.gmra.mrb[26].mxu1 %vm422_vm2, %v16624_v2  ;;  %14072 = vmatmul.mubr.msk.f32.gmra.mrb[24].mxu0 %vm422_vm2, %v16624_v2  ;;  %v16829_v2 = vld [vmem:[#allocation2 + $0xf8] sm:$0xff] }
  0x64   : > { %13877 = vmatprep.mubr.msk.f32.mxu1 %vm422_vm2, %v16626_v3  ;;  %14074 = vmatprep.mubr.msk.f32.mxu0 %vm422_vm2, %v16626_v3  ;;  %v16819_v3 = vld [vmem:[#allocation2 + $0xf2] sm:$0xff] }
  0x67   : > { %13878 = vmatmul.mubr.msk.f32.gmra.mrb[28].mxu1 %vm422_vm2, %v16636_v4  ;;  %14075 = vmatmul.mubr.msk.f32.gmra.mrb[26].mxu0 %vm422_vm2, %v16636_v4  ;;  %v16817_v4 = vld [vmem:[#allocation2 + $0xf0] sm:$0xff] }
  0x68   : > { %13880 = vmatprep.mubr.msk.f32.mxu1 %vm422_vm2, %v16638_v8  ;;  %14077 = vmatprep.mubr.msk.f32.mxu0 %vm422_vm2, %v16638_v8  ;;  %v16815_v8 = vld [vmem:[#allocation2 + $0xe2] sm:$0xff] }
  0x6b   : > { %13881 = vmatmul.mubr.msk.f32.gmra.mrb[30].mxu1 %vm422_vm2, %v16648_v9  ;;  %14078 = vmatmul.mubr.msk.f32.gmra.mrb[28].mxu0 %vm422_vm2, %v16648_v9  ;;  %v16813_v9 = vld [vmem:[#allocation2 + $0xe0] sm:$0xff] }
  0x6c   : > { %13885 = vmatprep.mubr.msk.f32.mxu1 %vm422_vm2, %v455_v29  ;;  %14080 = vmatprep.mubr.msk.f32.mxu0 %vm422_vm2, %v16650_v30  ;;  %v16677_v29 = vld [vmem:[#allocation2 + $0x20] sm:$0xff] }
  0x6d   : > { %19728 = vst [vmem:[#allocation66_spill] sm:$0xff] %v16677_v29  ;;  %v16803_v30 = vld [vmem:[#allocation2 + $0xda] sm:$0xff] }
  0x6f   : > { %13886 = vmatmul.mubr.msk.f32.vlgmr.msra.gmra.mrb[0].mxu1 %vm422_vm2, %v456_v46  ;;  %14081 = vmatmul.mubr.msk.f32.gmra.mrb[30].mxu0 %vm422_vm2, %v16659_v47  ;;  %v16683_v46 = vld [vmem:[#allocation2 + $0x32] sm:$0xff] }
  0x70   : > { %13888 = vmatprep.mubr.msk.f32.mxu1 %vm422_vm2, %v16661_v43  ;;  %14085 = vmatprep.mubr.msk.f32.mxu0 %vm422_vm2, %v16663_v44  ;;  %v16801_v47 = vld [vmem:[#allocation2 + $0xd8] sm:$0xff]  ;;  %v16922_v43 = vld [vmem:[#allocation2 + $0x18a] sm:$0xff] }
  0x71   : > { %13934 = vmatpush3.msra.mxu1 %v11992_v59  ;;  %v16698_v59 = vld [vmem:[#allocation2 + $0x38] sm:$0xff]  ;;  %19731 = vst [vmem:[#allocation69_spill] sm:$0xff] %v16922_v43 }
  0x72   : > { %13983 = vmatprep.subr.mxu1 %v16671_v41 }
  0x73   : > { %13889 = vmatmul.mubr.msk.f32.gmra.mrb[2].mxu1 %vm422_vm2, %v16677_v29  ;;  %14086 = vmatmul.mubr.msk.f32.vlgmr.msra.gmra.mrb[0].mxu0 %vm422_vm2, %v16679_v42  ;;  %v1165_v29 = vld [vmem:[#allocation2 + $0xa] sm:$0xff] }
  0x74   : > { %14134 = vmatpush3.msra.mxu0 %v16435_v34  ;;  %13891 = vmatprep.mubr.msk.f32.mxu1 %vm422_vm2, %v16681_v39  ;;  %v16717_v34 = vld [vmem:[#allocation2 + $0x50] sm:$0xff] }
  0x75   : > { %14088 = vmatprep.mubr.msk.f32.mxu0 %vm422_vm2, %v16683_v46  ;;  %14183 = vmatprep.subr.mxu0 %v16688_v40 }
  0x77   : > { %13892 = vmatmul.mubr.msk.f32.gmra.mrb[4].mxu1 %vm422_vm2, %v16698_v59  ;;  %14089 = vmatmul.mubr.msk.f32.gmra.mrb[2].mxu0 %vm422_vm2, %v16700_v32 }
  0x78   : > { %13894 = vmatprep.mubr.msk.f32.mxu1 %vm422_vm2, %v16704_v33  ;;  %14091 = vmatprep.mubr.msk.f32.mxu0 %vm422_vm2, %v16706_v27 }
  0x7b   : > { %13895 = vmatmul.mubr.msk.f32.gmra.mrb[6].mxu1 %vm422_vm2, %v16717_v34  ;;  %14092 = vmatmul.mubr.msk.f32.gmra.mrb[4].mxu0 %vm422_vm2, %v16719_v28 }
  0x7c   : > { %13897 = vmatprep.mubr.msk.f32.mxu1 %vm422_vm2, %v16721_v25  ;;  %14094 = vmatprep.mubr.msk.f32.mxu0 %vm422_vm2, %v16723_v26 }
  0x7f   : > { %13898 = vmatmul.mubr.msk.f32.gmra.mrb[8].mxu1 %vm422_vm2, %v16733_v23  ;;  %14095 = vmatmul.mubr.msk.f32.gmra.mrb[6].mxu0 %vm422_vm2, %v16735_v24 }
  0x80   : > { %13900 = vmatprep.mubr.msk.f32.mxu1 %vm422_vm2, %v16737_v21  ;;  %14097 = vmatprep.mubr.msk.f32.mxu0 %vm422_vm2, %v16739_v22 }
  0x83   : > { %13901 = vmatmul.mubr.msk.f32.gmra.mrb[10].mxu1 %vm422_vm2, %v16749_v19  ;;  %14098 = vmatmul.mubr.msk.f32.gmra.mrb[8].mxu0 %vm422_vm2, %v16751_v20 }
  0x84   : > { %13903 = vmatprep.mubr.msk.f32.mxu1 %vm422_vm2, %v16753_v17  ;;  %14100 = vmatprep.mubr.msk.f32.mxu0 %vm422_vm2, %v16755_v18 }
  0x87   : > { %13904 = vmatmul.mubr.msk.f32.gmra.mrb[12].mxu1 %vm422_vm2, %v16765_v15  ;;  %14101 = vmatmul.mubr.msk.f32.gmra.mrb[10].mxu0 %vm422_vm2, %v16767_v16 }
  0x88   : > { %13906 = vmatprep.mubr.msk.f32.mxu1 %vm422_vm2, %v16769_v13  ;;  %14103 = vmatprep.mubr.msk.f32.mxu0 %vm422_vm2, %v16771_v14 }
  0x8b   : > { %13907 = vmatmul.mubr.msk.f32.gmra.mrb[14].mxu1 %vm422_vm2, %v16781_v11  ;;  %14104 = vmatmul.mubr.msk.f32.gmra.mrb[12].mxu0 %vm422_vm2, %v16783_v12 }
  0x8c   : > { %13909 = vmatprep.mubr.msk.f32.mxu1 %vm422_vm2, %v16785_v7  ;;  %14106 = vmatprep.mubr.msk.f32.mxu0 %vm422_vm2, %v16787_v10 }
  0x8f   : > { %13910 = vmatmul.mubr.msk.f32.gmra.mrb[16].mxu1 %vm422_vm2, %v16797_v5  ;;  %14107 = vmatmul.mubr.msk.f32.gmra.mrb[14].mxu0 %vm422_vm2, %v16799_v6 }
  0x90   : > { %13912 = vmatprep.mubr.msk.f32.mxu1 %vm422_vm2, %v16801_v47  ;;  %14109 = vmatprep.mubr.msk.f32.mxu0 %vm422_vm2, %v16803_v30 }
  0x93   : > { %13913 = vmatmul.mubr.msk.f32.gmra.mrb[18].mxu1 %vm422_vm2, %v16813_v9  ;;  %14110 = vmatmul.mubr.msk.f32.gmra.mrb[16].mxu0 %vm422_vm2, %v16815_v8 }
  0x94   : > { %13915 = vmatprep.mubr.msk.f32.mxu1 %vm422_vm2, %v16817_v4  ;;  %14112 = vmatprep.mubr.msk.f32.mxu0 %vm422_vm2, %v16819_v3 }
  0x97   : > { %13916 = vmatmul.mubr.msk.f32.gmra.mrb[20].mxu1 %vm422_vm2, %v16829_v2  ;;  %14113 = vmatmul.mubr.msk.f32.gmra.mrb[18].mxu0 %vm422_vm2, %v16831_v1 }
  0x98   : > { %13918 = vmatprep.mubr.msk.f32.mxu1 %vm422_vm2, %v16833_v0  ;;  %14115 = vmatprep.mubr.msk.f32.mxu0 %vm422_vm2, %v16835_v63 }
  0x9b   : > { %13919 = vmatmul.mubr.msk.f32.gmra.mrb[22].mxu1 %vm422_vm2, %v16845_v62  ;;  %14116 = vmatmul.mubr.msk.f32.gmra.mrb[20].mxu0 %vm422_vm2, %v16847_v61 }
  0x9c   : > { %13921 = vmatprep.mubr.msk.f32.mxu1 %vm422_vm2, %v16849_v60  ;;  %14118 = vmatprep.mubr.msk.f32.mxu0 %vm422_vm2, %v16851_v58 }
  0x9f   : > { %13922 = vmatmul.mubr.msk.f32.gmra.mrb[24].mxu1 %vm422_vm2, %v16861_v57  ;;  %14119 = vmatmul.mubr.msk.f32.gmra.mrb[22].mxu0 %vm422_vm2, %v16863_v56 }
  0xa0   : > { %13924 = vmatprep.mubr.msk.f32.mxu1 %vm422_vm2, %v16865_v55  ;;  %14121 = vmatprep.mubr.msk.f32.mxu0 %vm422_vm2, %v16867_v54 }
  0xa3   : > { %13925 = vmatmul.mubr.msk.f32.gmra.mrb[26].mxu1 %vm422_vm2, %v16877_v53  ;;  %14122 = vmatmul.mubr.msk.f32.gmra.mrb[24].mxu0 %vm422_vm2, %v16879_v52 }
  0xa4   : > { %13927 = vmatprep.mubr.msk.f32.mxu1 %vm422_vm2, %v16881_v51  ;;  %14124 = vmatprep.mubr.msk.f32.mxu0 %vm422_vm2, %v16883_v50 }
  0xa7   : > { %13928 = vmatmul.mubr.msk.f32.gmra.mrb[28].mxu1 %vm422_vm2, %v16893_v49  ;;  %14125 = vmatmul.mubr.msk.f32.gmra.mrb[26].mxu0 %vm422_vm2, %v16895_v48 }
  0xa8   : > { %13930 = vmatprep.mubr.msk.f32.mxu1 %vm422_vm2, %v16897_v45  ;;  %14127 = vmatprep.mubr.msk.f32.mxu0 %vm422_vm2, %v16899_v38 }
  0xab   : > { %13931 = vmatmul.mubr.msk.f32.gmra.mrb[30].mxu1 %vm422_vm2, %v16909_v37  ;;  %14128 = vmatmul.mubr.msk.f32.gmra.mrb[28].mxu0 %vm422_vm2, %v16911_v36 }
  0xac   : > { %13935 = vmatprep.mubr.msk.f32.mxu1 %vm422_vm2, %v1164_v35  ;;  %14130 = vmatprep.mubr.msk.f32.mxu0 %vm422_vm2, %v16913_v31  ;;  %v16935_v35 = vld [vmem:[%s19464_s1 + $0x40] sm:$0xff] }
  0xad   : > { %v19734_v31 = vld [vmem:[#allocation25_spill] sm:$0xff] }
  0xaf   : > { %13936 = vmatmul.mubr.msk.f32.vlgmr.msra.gmra.mrb[0].mxu1 %vm422_vm2, %v1165_v29  ;;  %14131 = vmatmul.mubr.msk.f32.gmra.mrb[30].mxu0 %vm422_vm2, %v16922_v43  ;;  %v2744_v29 = vld [vmem:[#allocation2 + $0x1a0] sm:$0xff]  ;;  %v19733_v43 = vld [vmem:[#allocation66_spill] sm:$0xff] }
  0xb0   : > { %13938 = vmatprep.mubr.msk.f32.mxu1 %vm422_vm2, %v16663_v44  ;;  %14135 = vmatprep.mubr.msk.f32.mxu0 %vm422_vm2, %v16681_v39  ;;  %v19732_v44 = vld [vmem:[#allocation65_spill] sm:$0xff] }
  0xb1   : > { %13984 = vmatpush3.msra.mxu1 %v16671_v41  ;;  %v17053_v41 = vld [vmem:[#allocation2 + $0x188] sm:$0xff] }
  0xb3   : > { %13939 = vmatmul.mubr.msk.f32.gmra.mrb[2].mxu1 %vm422_vm2, %v16679_v42  ;;  %14136 = vmatmul.mubr.msk.f32.vlgmr.msra.gmra.mrb[0].mxu0 %vm422_vm2, %v16698_v59  ;;  %v2743_v42 = vld [vmem:[#allocation2 + $0x198] sm:$0xff] }
  0xb4   : > { %14184 = vmatpush3.msra.mxu0 %v16688_v40  ;;  %13941 = vmatprep.mubr.msk.f32.mxu1 %vm422_vm2, %v16683_v46  ;;  %v17043_v40 = vld [vmem:[#allocation2 + $0x180] sm:$0xff] }
  0xb5   : > { %14138 = vmatprep.mubr.msk.f32.mxu0 %vm422_vm2, %v16704_v33  ;;  %14233 = vmatprep.subr.mxu0 %v16935_v35 }
  0xb7   : > { %13942 = vmatmul.mubr.msk.f32.gmra.mrb[4].mxu1 %vm422_vm2, %v16700_v32  ;;  %14139 = vmatmul.mubr.msk.f32.gmra.mrb[2].mxu0 %vm422_vm2, %v16717_v34 }
  0xb8   : > { %13944 = vmatprep.mubr.msk.f32.mxu1 %vm422_vm2, %v16706_v27  ;;  %14141 = vmatprep.mubr.msk.f32.mxu0 %vm422_vm2, %v16721_v25 }
  0xbb   : > { %13945 = vmatmul.mubr.msk.f32.gmra.mrb[6].mxu1 %vm422_vm2, %v16719_v28  ;;  %14142 = vmatmul.mubr.msk.f32.gmra.mrb[4].mxu0 %vm422_vm2, %v16733_v23 }
  0xbc   : > { %13947 = vmatprep.mubr.msk.f32.mxu1 %vm422_vm2, %v16723_v26  ;;  %14144 = vmatprep.mubr.msk.f32.mxu0 %vm422_vm2, %v16737_v21 }
  0xbf   : > { %13948 = vmatmul.mubr.msk.f32.gmra.mrb[8].mxu1 %vm422_vm2, %v16735_v24  ;;  %14145 = vmatmul.mubr.msk.f32.gmra.mrb[6].mxu0 %vm422_vm2, %v16749_v19 }
  0xc0   : > { %13950 = vmatprep.mubr.msk.f32.mxu1 %vm422_vm2, %v16739_v22  ;;  %14147 = vmatprep.mubr.msk.f32.mxu0 %vm422_vm2, %v16753_v17 }
  0xc3   : > { %13951 = vmatmul.mubr.msk.f32.gmra.mrb[10].mxu1 %vm422_vm2, %v16751_v20  ;;  %14148 = vmatmul.mubr.msk.f32.gmra.mrb[8].mxu0 %vm422_vm2, %v16765_v15 }
  0xc4   : > { %13953 = vmatprep.mubr.msk.f32.mxu1 %vm422_vm2, %v16755_v18  ;;  %14150 = vmatprep.mubr.msk.f32.mxu0 %vm422_vm2, %v16769_v13 }
  0xc7   : > { %13954 = vmatmul.mubr.msk.f32.gmra.mrb[12].mxu1 %vm422_vm2, %v16767_v16  ;;  %14151 = vmatmul.mubr.msk.f32.gmra.mrb[10].mxu0 %vm422_vm2, %v16781_v11 }
  0xc8   : > { %13956 = vmatprep.mubr.msk.f32.mxu1 %vm422_vm2, %v16771_v14  ;;  %14153 = vmatprep.mubr.msk.f32.mxu0 %vm422_vm2, %v16785_v7 }
  0xcb   : > { %13957 = vmatmul.mubr.msk.f32.gmra.mrb[14].mxu1 %vm422_vm2, %v16783_v12  ;;  %14154 = vmatmul.mubr.msk.f32.gmra.mrb[12].mxu0 %vm422_vm2, %v16797_v5 }
  0xcc   : > { %13959 = vmatprep.mubr.msk.f32.mxu1 %vm422_vm2, %v16787_v10  ;;  %14156 = vmatprep.mubr.msk.f32.mxu0 %vm422_vm2, %v16801_v47 }
  0xcf   : > { %13960 = vmatmul.mubr.msk.f32.gmra.mrb[16].mxu1 %vm422_vm2, %v16799_v6  ;;  %14157 = vmatmul.mubr.msk.f32.gmra.mrb[14].mxu0 %vm422_vm2, %v16813_v9 }
  0xd0   : > { %13962 = vmatprep.mubr.msk.f32.mxu1 %vm422_vm2, %v16803_v30  ;;  %14159 = vmatprep.mubr.msk.f32.mxu0 %vm422_vm2, %v16817_v4 }
  0xd3   : > { %13963 = vmatmul.mubr.msk.f32.gmra.mrb[18].mxu1 %vm422_vm2, %v16815_v8  ;;  %14160 = vmatmul.mubr.msk.f32.gmra.mrb[16].mxu0 %vm422_vm2, %v16829_v2 }
  0xd4   : > { %13965 = vmatprep.mubr.msk.f32.mxu1 %vm422_vm2, %v16819_v3  ;;  %14162 = vmatprep.mubr.msk.f32.mxu0 %vm422_vm2, %v16833_v0 }
  0xd7   : > { %13966 = vmatmul.mubr.msk.f32.gmra.mrb[20].mxu1 %vm422_vm2, %v16831_v1  ;;  %14163 = vmatmul.mubr.msk.f32.gmra.mrb[18].mxu0 %vm422_vm2, %v16845_v62 }
  0xd8   : > { %13968 = vmatprep.mubr.msk.f32.mxu1 %vm422_vm2, %v16835_v63  ;;  %14165 = vmatprep.mubr.msk.f32.mxu0 %vm422_vm2, %v16849_v60 }
  0xdb   : > { %13969 = vmatmul.mubr.msk.f32.gmra.mrb[22].mxu1 %vm422_vm2, %v16847_v61  ;;  %14166 = vmatmul.mubr.msk.f32.gmra.mrb[20].mxu0 %vm422_vm2, %v16861_v57 }
  0xdc   : > { %13971 = vmatprep.mubr.msk.f32.mxu1 %vm422_vm2, %v16851_v58  ;;  %14168 = vmatprep.mubr.msk.f32.mxu0 %vm422_vm2, %v16865_v55 }
  0xdf   : > { %13972 = vmatmul.mubr.msk.f32.gmra.mrb[24].mxu1 %vm422_vm2, %v16863_v56  ;;  %14169 = vmatmul.mubr.msk.f32.gmra.mrb[22].mxu0 %vm422_vm2, %v16877_v53 }
  0xe0   : > { %13974 = vmatprep.mubr.msk.f32.mxu1 %vm422_vm2, %v16867_v54  ;;  %14171 = vmatprep.mubr.msk.f32.mxu0 %vm422_vm2, %v16881_v51 }
  0xe3   : > { %13975 = vmatmul.mubr.msk.f32.gmra.mrb[26].mxu1 %vm422_vm2, %v16879_v52  ;;  %14172 = vmatmul.mubr.msk.f32.gmra.mrb[24].mxu0 %vm422_vm2, %v16893_v49 }
  0xe4   : > { %13977 = vmatprep.mubr.msk.f32.mxu1 %vm422_vm2, %v16883_v50  ;;  %14174 = vmatprep.mubr.msk.f32.mxu0 %vm422_vm2, %v16897_v45 }
  0xe7   : > { %13978 = vmatmul.mubr.msk.f32.gmra.mrb[28].mxu1 %vm422_vm2, %v16895_v48  ;;  %14175 = vmatmul.mubr.msk.f32.gmra.mrb[26].mxu0 %vm422_vm2, %v16909_v37 }
  0xe8   : > { %13980 = vmatprep.mubr.msk.f32.mxu1 %vm422_vm2, %v16899_v38  ;;  %14177 = vmatprep.mubr.msk.f32.mxu0 %vm422_vm2, %v17043_v40 }
  0xeb   : > { %13981 = vmatmul.mubr.msk.f32.gmra.mrb[30].mxu1 %vm422_vm2, %v16911_v36  ;;  %14178 = vmatmul.mubr.msk.f32.gmra.mrb[28].mxu0 %vm422_vm2, %v17053_v41  ;;  %v19735_v36 = vld [vmem:[#allocation28_spill] sm:$0xff] }
  0xec   : > { %13985 = vmatprep.mubr.msk.f32.mxu1 %vm422_vm2, %v19732_v44  ;;  %14180 = vmatprep.mubr.msk.f32.mxu0 %vm422_vm2, %v2743_v42 }
  0xef   : > { %13986 = vmatmul.mubr.msk.f32.vlgmr.msra.gmra.mrb[0].mxu1 %vm422_vm2, %v19733_v43  ;;  %14181 = vmatmul.mubr.msk.f32.gmra.mrb[30].mxu0 %vm422_vm2, %v2744_v29  ;;  %v19736_v43 = vld [vmem:[#allocation29_spill] sm:$0xff] }
  0xf0   : > { %13988 = vmatprep.mubr.msk.f32.mxu1 %vm422_vm2, %v16681_v39  ;;  %14185 = vmatprep.mubr.msk.f32.mxu0 %vm422_vm2, %v19734_v31  ;;  %v19737_v39 = vld [vmem:[#allocation30_spill] sm:$0xff]  ;;  %v19738_v31 = vld [vmem:[#allocation31_spill] sm:$0xff] }
  0xf3   : > { %13989 = vmatmul.mubr.msk.f32.gmra.mrb[2].mxu1 %vm422_vm2, %v16698_v59  ;;  %14186 = vmatmul.mubr.msk.f32.vlgmr.msra.gmra.mrb[0].mxu0 %vm422_vm2, %v19735_v36  ;;  %v19739_v36 = vld [vmem:[#allocation38_spill] sm:$0xff] }
  0xf4   : > { %14234 = vmatpush3.msra.mxu0 %v16935_v35  ;;  %13991 = vmatprep.mubr.msk.f32.mxu1 %vm422_vm2, %v16704_v33  ;;  %v19740_v33 = vld [vmem:[#allocation41_spill] sm:$0xff]  ;;  %v19741_v59 = vld [vmem:[#allocation42_spill] sm:$0xff] }
  0xf5   : > { %14188 = vmatprep.mubr.msk.f32.mxu0 %vm422_vm2, %v19736_v43 }
  0xf7   : > { %13992 = vmatmul.mubr.msk.f32.gmra.mrb[4].mxu1 %vm422_vm2, %v16717_v34  ;;  %14189 = vmatmul.mubr.msk.f32.gmra.mrb[2].mxu0 %vm422_vm2, %v19737_v39  ;;  %v3131_v34 = vld [vmem:[#allocation2 + $0x1a1] sm:$0xff] }
  0xf8   : > { %13994 = vmatprep.mubr.msk.f32.mxu1 %vm422_vm2, %v16721_v25  ;;  %14191 = vmatprep.mubr.msk.f32.mxu0 %vm422_vm2, %v19738_v31  ;;  %v19742_v25 = vld [vmem:[#allocation43_spill] sm:$0xff] }
  0xfb   : > { %13995 = vmatmul.mubr.msk.f32.gmra.mrb[6].mxu1 %vm422_vm2, %v16733_v23  ;;  %14192 = vmatmul.mubr.msk.f32.gmra.mrb[4].mxu0 %vm422_vm2, %v19739_v36  ;;  %v19743_v23 = vld [vmem:[#allocation44_spill] sm:$0xff] }
  0xfc   : > { %13997 = vmatprep.mubr.msk.f32.mxu1 %vm422_vm2, %v16737_v21  ;;  %14194 = vmatprep.mubr.msk.f32.mxu0 %vm422_vm2, %v19740_v33  ;;  %v19744_v21 = vld [vmem:[#allocation45_spill] sm:$0xff] }
  0xff   : > { %13998 = vmatmul.mubr.msk.f32.gmra.mrb[8].mxu1 %vm422_vm2, %v16749_v19  ;;  %14195 = vmatmul.mubr.msk.f32.gmra.mrb[6].mxu0 %vm422_vm2, %v19741_v59  ;;  %v19745_v19 = vld [vmem:[#allocation46_spill] sm:$0xff] }
 0x100   : > { %14000 = vmatprep.mubr.msk.f32.mxu1 %vm422_vm2, %v16753_v17  ;;  %14197 = vmatprep.mubr.msk.f32.mxu0 %vm422_vm2, %v19742_v25  ;;  %v19746_v17 = vld [vmem:[#allocation47_spill] sm:$0xff]  ;;  %v4140_v25 = vld [vmem:[#allocation2 + $0x1] sm:$0xff] }
 0x103   : > { %14001 = vmatmul.mubr.msk.f32.gmra.mrb[10].mxu1 %vm422_vm2, %v16765_v15  ;;  %14198 = vmatmul.mubr.msk.f32.gmra.mrb[8].mxu0 %vm422_vm2, %v19743_v23  ;;  %v19747_v15 = vld [vmem:[#allocation48_spill] sm:$0xff]  ;;  %v4141_v23 = vld [vmem:[#allocation2 + $0x9] sm:$0xff] }
 0x104   : > { %14003 = vmatprep.mubr.msk.f32.mxu1 %vm422_vm2, %v16769_v13  ;;  %14200 = vmatprep.mubr.msk.f32.mxu0 %vm422_vm2, %v19744_v21  ;;  %v19748_v13 = vld [vmem:[#allocation49_spill] sm:$0xff] }
 0x105   : > { %v4138_v21 = vld [vmem:[%s19466_s3] sm:$0xff] }
 0x107   : > { %14004 = vmatmul.mubr.msk.f32.gmra.mrb[12].mxu1 %vm422_vm2, %v16781_v11  ;;  %14201 = vmatmul.mubr.msk.f32.gmra.mrb[10].mxu0 %vm422_vm2, %v19745_v19  ;;  %v19749_v11 = vld [vmem:[#allocation50_spill] sm:$0xff] }
 0x108   : > { %14006 = vmatprep.mubr.msk.f32.mxu1 %vm422_vm2, %v16785_v7  ;;  %14203 = vmatprep.mubr.msk.f32.mxu0 %vm422_vm2, %v19746_v17  ;;  %v19750_v7 = vld [vmem:[#allocation51_spill] sm:$0xff]  ;;  %v4139_v17 = vld [vmem:[%s19466_s3 + $0x8] sm:$0xff] }
 0x10b   : > { %14007 = vmatmul.mubr.msk.f32.gmra.mrb[14].mxu1 %vm422_vm2, %v16797_v5  ;;  %14204 = vmatmul.mubr.msk.f32.gmra.mrb[12].mxu0 %vm422_vm2, %v19747_v15  ;;  %v19751_v5 = vld [vmem:[#allocation52_spill] sm:$0xff] }
 0x10c   : > { %14009 = vmatprep.mubr.msk.f32.mxu1 %vm422_vm2, %v16801_v47  ;;  %14206 = vmatprep.mubr.msk.f32.mxu0 %vm422_vm2, %v19748_v13  ;;  %v19752_v47 = vld [vmem:[#allocation53_spill] sm:$0xff] }
 0x10d   : > { %v17316_v13 = vld [vmem:[%s19465_s2] ss:$0 sm:$0xff] }
 0x10f   : > { %14010 = vmatmul.mubr.msk.f32.gmra.mrb[16].mxu1 %vm422_vm2, %v16813_v9  ;;  %14207 = vmatmul.mubr.msk.f32.gmra.mrb[14].mxu0 %vm422_vm2, %v19749_v11  ;;  %v19753_v9 = vld [vmem:[#allocation54_spill] sm:$0xff] }
 0x110   : > { %14012 = vmatprep.mubr.msk.f32.mxu1 %vm422_vm2, %v16817_v4  ;;  %14209 = vmatprep.mubr.msk.f32.mxu0 %vm422_vm2, %v19750_v7  ;;  %v19754_v4 = vld [vmem:[#allocation55_spill] sm:$0xff]  ;;  %v15297_v7 = vpack.c.bf16 %v4139_v17, %v4138_v21 }
 0x113   : > { %14013 = vmatmul.mubr.msk.f32.gmra.mrb[18].mxu1 %vm422_vm2, %v16829_v2  ;;  %14210 = vmatmul.mubr.msk.f32.gmra.mrb[16].mxu0 %vm422_vm2, %v19751_v5  ;;  %v19755_v2 = vld [vmem:[#allocation56_spill] sm:$0xff] }
 0x114   : > { %14015 = vmatprep.mubr.msk.f32.mxu1 %vm422_vm2, %v16833_v0  ;;  %14212 = vmatprep.mubr.msk.f32.mxu0 %vm422_vm2, %v19752_v47  ;;  %v19756_v0 = vld [vmem:[#allocation57_spill] sm:$0xff] }
 0x117   : > { %14016 = vmatmul.mubr.msk.f32.gmra.mrb[20].mxu1 %vm422_vm2, %v16845_v62  ;;  %14213 = vmatmul.mubr.msk.f32.gmra.mrb[18].mxu0 %vm422_vm2, %v19753_v9  ;;  %v19757_v62 = vld [vmem:[#allocation58_spill] sm:$0xff] }
 0x118   : > { %14018 = vmatprep.mubr.msk.f32.mxu1 %vm422_vm2, %v16849_v60  ;;  %14215 = vmatprep.mubr.msk.f32.mxu0 %vm422_vm2, %v19754_v4  ;;  %v19758_v60 = vld [vmem:[#allocation59_spill] sm:$0xff] }
 0x11b   : > { %14019 = vmatmul.mubr.msk.f32.gmra.mrb[22].mxu1 %vm422_vm2, %v16861_v57  ;;  %14216 = vmatmul.mubr.msk.f32.gmra.mrb[20].mxu0 %vm422_vm2, %v19755_v2  ;;  %v19759_v57 = vld [vmem:[#allocation60_spill] sm:$0xff] }
 0x11c   : > { %14021 = vmatprep.mubr.msk.f32.mxu1 %vm422_vm2, %v16865_v55  ;;  %14218 = vmatprep.mubr.msk.f32.mxu0 %vm422_vm2, %v19756_v0  ;;  %v19760_v55 = vld [vmem:[#allocation61_spill] sm:$0xff] }
 0x11f   : > { %14022 = vmatmul.mubr.msk.f32.gmra.mrb[24].mxu1 %vm422_vm2, %v16877_v53  ;;  %14219 = vmatmul.mubr.msk.f32.gmra.mrb[22].mxu0 %vm422_vm2, %v19757_v62  ;;  %v19761_v53 = vld [vmem:[#allocation62_spill] sm:$0xff] }
 0x120   : > { %14024 = vmatprep.mubr.msk.f32.mxu1 %vm422_vm2, %v16881_v51  ;;  %14221 = vmatprep.mubr.msk.f32.mxu0 %vm422_vm2, %v19758_v60  ;;  %v19762_v51 = vld [vmem:[#allocation63_spill] sm:$0xff] }
 0x123   : > { %14025 = vmatmul.mubr.msk.f32.gmra.mrb[26].mxu1 %vm422_vm2, %v16893_v49  ;;  %14222 = vmatmul.mubr.msk.f32.gmra.mrb[24].mxu0 %vm422_vm2, %v19759_v57  ;;  %v3130_v49 = vld [vmem:[#allocation2 + $0x199] sm:$0xff] }
 0x124   : > { %14027 = vmatprep.mubr.msk.f32.mxu1 %vm422_vm2, %v16897_v45  ;;  %14224 = vmatprep.mubr.msk.f32.mxu0 %vm422_vm2, %v19760_v55  ;;  %v19763_v45 = vld [vmem:[#allocation64_spill] sm:$0xff] }
 0x127   : > { %14028 = vmatmul.mubr.msk.f32.gmra.mrb[28].mxu1 %vm422_vm2, %v16909_v37  ;;  %14225 = vmatmul.mubr.msk.f32.gmra.mrb[26].mxu0 %vm422_vm2, %v19761_v53 }
 0x128   : > { %14030 = vmatprep.mubr.msk.f32.mxu1 %vm422_vm2, %v17043_v40  ;;  %14227 = vmatprep.mubr.msk.f32.mxu0 %vm422_vm2, %v19762_v51 }
 0x12b   : > { %14031 = vmatmul.mubr.msk.f32.gmra.mrb[30].mxu1 %vm422_vm2, %v17053_v41  ;;  %14228 = vmatmul.mubr.msk.f32.gmra.mrb[28].mxu0 %vm422_vm2, %v19763_v45 }
 0x12c   : > { %14230 = vmatprep.mubr.msk.f32.mxu0 %vm422_vm2, %v3130_v49  ;;  %14287 = vmatprep.mubr.msk.f32.mxu1 %vm4175_vm3, %v4140_v25 }
 0x12f   : > { %14231 = vmatmul.mubr.msk.f32.gmra.mrb[30].mxu0 %vm422_vm2, %v3131_v34 }
 0x130   : > { %14235 = vmatprep.mubr.msk.f32.mxu0 %vm422_vm2, %v16683_v46 }
 0x133   : > { %14236 = vmatmul.mubr.msk.f32.vlgmr.msra.gmra.mrb[0].mxu0 %vm422_vm2, %v16700_v32 }
 0x134   : > { %14238 = vmatprep.mubr.msk.f32.mxu0 %vm422_vm2, %v16706_v27  ;;  %v12225_v27 = vld [vmem:[%s19466_s3 + $0x18] sm:$0xff] }
 0x137   : > { %14239 = vmatmul.mubr.msk.f32.gmra.mrb[2].mxu0 %vm422_vm2, %v16719_v28 }
 0x138   : > { %14241 = vmatprep.mubr.msk.f32.mxu0 %vm422_vm2, %v16723_v26  ;;  %v12224_v26 = vld [vmem:[%s19466_s3 + $0x10] sm:$0xff] }
 0x139   : > { %v15293_v28 = vpack.c.bf16 %v12225_v27, %v12224_v26 }
 0x13b   : > { %14242 = vmatmul.mubr.msk.f32.gmra.mrb[4].mxu0 %vm422_vm2, %v16735_v24  ;;  %15294 = vmatprep.subr.bf16.mxu1 %v15293_v28 }
 0x13c   : > { %14244 = vmatprep.mubr.msk.f32.mxu0 %vm422_vm2, %v16739_v22  ;;  %15296 = vmatpush3.bf16.msra.mxu1 %v15293_v28 }
 0x13d   : > { %15298 = vmatprep.subr.bf16.mxu1 %v15297_v7 }
 0x13f   : > { %14245 = vmatmul.mubr.msk.f32.gmra.mrb[6].mxu0 %vm422_vm2, %v16751_v20  ;;  %14288 = vmatmul.mubr.msk.f32.vlgmr.msra.gmra.mrb[32].mxu1 %vm4175_vm3, %v4141_v23 }
 0x140   : > { %14247 = vmatprep.mubr.msk.f32.mxu0 %vm422_vm2, %v16755_v18  ;;  %15300 = vmatpush3.bf16.msra.mxu1 %v15297_v7 }
 0x143   : > { %14248 = vmatmul.mubr.msk.f32.gmra.mrb[8].mxu0 %vm422_vm2, %v16767_v16  ;;  %v3518_v16 = vld [vmem:[#allocation2 + $0x1a2] sm:$0xff] }
 0x144   : > { %14250 = vmatprep.mubr.msk.f32.mxu0 %vm422_vm2, %v16771_v14  ;;  %v19766_v14 = vld [vmem:[#allocation69_spill] sm:$0xff] }
 0x147   : > { %14251 = vmatmul.mubr.msk.f32.gmra.mrb[10].mxu0 %vm422_vm2, %v16783_v12  ;;  %v3517_v12 = vld [vmem:[#allocation2 + $0x19a] sm:$0xff] }
 0x148   : > { %14253 = vmatprep.mubr.msk.f32.mxu0 %vm422_vm2, %v16787_v10  ;;  %v19765_v10 = vld [vmem:[#allocation68_spill] sm:$0xff] }
 0x14b   : > { %14254 = vmatmul.mubr.msk.f32.gmra.mrb[12].mxu0 %vm422_vm2, %v16799_v6  ;;  %v19764_v6 = vld [vmem:[#allocation67_spill] sm:$0xff] }
 0x14c   : > { %14256 = vmatprep.mubr.msk.f32.mxu0 %vm422_vm2, %v16803_v30 }
 0x14f   : > { %14257 = vmatmul.mubr.msk.f32.gmra.mrb[14].mxu0 %vm422_vm2, %v16815_v8 }
 0x150   : > { %14259 = vmatprep.mubr.msk.f32.mxu0 %vm422_vm2, %v16819_v3 }
 0x153   : > { %14260 = vmatmul.mubr.msk.f32.gmra.mrb[16].mxu0 %vm422_vm2, %v16831_v1 }
 0x154   : > { %14262 = vmatprep.mubr.msk.f32.mxu0 %vm422_vm2, %v16835_v63 }
 0x157   : > { %14263 = vmatmul.mubr.msk.f32.gmra.mrb[18].mxu0 %vm422_vm2, %v16847_v61 }
 0x158   : > { %14265 = vmatprep.mubr.msk.f32.mxu0 %vm422_vm2, %v16851_v58 }
 0x15b   : > { %14266 = vmatmul.mubr.msk.f32.gmra.mrb[20].mxu0 %vm422_vm2, %v16863_v56 }
 0x15c   : > { %14268 = vmatprep.mubr.msk.f32.mxu0 %vm422_vm2, %v16867_v54 }
 0x15f   : > { %14269 = vmatmul.mubr.msk.f32.gmra.mrb[22].mxu0 %vm422_vm2, %v16879_v52 }
 0x160   : > { %14271 = vmatprep.mubr.msk.f32.mxu0 %vm422_vm2, %v16883_v50 }
 0x163   : > { %14272 = vmatmul.mubr.msk.f32.gmra.mrb[24].mxu0 %vm422_vm2, %v16895_v48 }
 0x164   : > { %14274 = vmatprep.mubr.msk.f32.mxu0 %vm422_vm2, %v16899_v38 }
 0x167   : > { %14275 = vmatmul.mubr.msk.f32.gmra.mrb[26].mxu0 %vm422_vm2, %v19764_v6 }
 0x168   : > { %14277 = vmatprep.mubr.msk.f32.mxu0 %vm422_vm2, %v19765_v10 }
 0x16b   : > { %14278 = vmatmul.mubr.msk.f32.gmra.mrb[28].mxu0 %vm422_vm2, %v19766_v14 }
 0x16c   : > { %14280 = vmatprep.mubr.msk.f32.mxu0 %vm422_vm2, %v3517_v12 }
 0x16f   : > { %14281 = vmatmul.mubr.msk.f32.gmra.mrb[30].mxu0 %vm422_vm2, %v3518_v16 }
 0x1c2   : > { %v13987_v18 = vpop.f32.mrb[0].mxu1 }
 0x1c3   : > { %v1747_v20 = vpop.f32.mrb[1].mxu1 }
 0x1c6   : > { %v13990_v22 = vpop.f32.mrb[2].mxu1 }
 0x1c7   : > { %v1757_v24 = vpop.f32.mrb[3].mxu1 }
 0x1ca   : > { %v13993_v32 = vpop.f32.mrb[4].mxu1 }
 0x1cb   : > { %v1767_v37 = vpop.f32.mrb[5].mxu1 }
 0x1ce   : > { %v13996_v38 = vpop.f32.mrb[6].mxu1 }
 0x1cf   : > { %v17256_v48 = vpop.f32.mrb[7].mxu1 }
 0x1d2   : > { %v17258_v50 = vpop.f32.mrb[8].mxu1 }
 0x1d3   : > { %v17260_v52 = vpop.f32.mrb[9].mxu1 }
 0x1d6   : > { %v17262_v54 = vpop.f32.mrb[10].mxu1 }
 0x1d7   : > { %v17264_v56 = vpop.f32.mrb[11].mxu1 }
 0x1da   : > { %v17266_v58 = vpop.f32.mrb[12].mxu1 }
 0x1db   : > { %v17268_v61 = vpop.f32.mrb[13].mxu1 }
 0x1de   : > { %v17270_v63 = vpop.f32.mrb[14].mxu1 }
 0x1df   : > { %v17272_v1 = vpop.f32.mrb[15].mxu1 }
 0x1e2   : > { %v17274_v3 = vpop.f32.mrb[16].mxu1 }
 0x1e3   : > { %v17276_v8 = vpop.f32.mrb[17].mxu1 }
 0x1e6   : > { %v17278_v30 = vpop.f32.mrb[18].mxu1 }
 0x1e7   : > { %v17280_v46 = vpop.f32.mrb[19].mxu1 }
 0x1ea   : > { %v17282_v35 = vpop.f32.mrb[20].mxu1 }
 0x1eb   : > { %v17284_v40 = vpop.f32.mrb[21].mxu1 }
 0x1ee   : > { %v17286_v41 = vpop.f32.mrb[22].mxu1 }
 0x1ef   : > { %v17288_v42 = vpop.f32.mrb[23].mxu1 }
 0x1f2   : > { %v17290_v44 = vpop.f32.mrb[24].mxu1 }
 0x1f3   : > { %v17292_v29 = vpop.f32.mrb[25].mxu1 }
 0x1f6   : > { %v17294_v43 = vpop.f32.mrb[26].mxu1 }
 0x1f7   : > { %v17296_v39 = vpop.f32.mrb[27].mxu1 }
 0x1fa   : > { %v17298_v31 = vpop.f32.mrb[28].mxu1 }
 0x1fb   : > { %v17300_v36 = vpop.f32.mrb[29].mxu1 }
 0x1fe   : > { %v17302_v33 = vpop.f32.mrb[30].mxu1 }
 0x1ff   : > { %v17304_v59 = vpop.f32.mrb[31].mxu1 }
 0x206   : > { %v14237_v19 = vpop.f32.mrb[0].mxu0 }
 0x207   : > { %v15373_v15 = vadd.f32 %v14237_v19, %v13987_v18  ;;  %v3683_v11 = vpop.f32.mrb[1].mxu0 }
 0x208   : > { %v15374_v5 = vadd.f32 %v3683_v11, %v1747_v20 }
 0x209   : > { %v3882_v0 = vadd.f32 %v15373_v15, %v17316_v13 }
 0x20a   : > { %v14240_v47 = vpop.f32.mrb[2].mxu0  ;;  %v3881_v9 = vadd.f32 %v15374_v5, %v17316_v13 }
 0x20b   : > { %v15375_v4 = vadd.f32 %v14240_v47, %v13990_v22  ;;  %v3693_v2 = vpop.f32.mrb[3].mxu0  ;;  %v3914_v49 = vmax.f32 %v3882_v0, 0.0 }
 0x20c   : > { %v15376_v62 = vadd.f32 %v3693_v2, %v1757_v24  ;;  %v3913_v60 = vmax.f32 %v3881_v9, 0.0 }
 0x20d   : > { %v3884_v45 = vadd.f32 %v15375_v4, %v17316_v13 }
 0x20e   : > { %v14243_v57 = vpop.f32.mrb[4].mxu0  ;;  %3977 = vrot.lane.b32.xlu0 %v3913_v60, %s16162_s25  ;;  %v3883_v55 = vadd.f32 %v15376_v62, %v17316_v13 }
 0x20f   : > { %v15377_v53 = vadd.f32 %v14243_v57, %v13993_v32  ;;  %v3703_v51 = vpop.f32.mrb[5].mxu0  ;;  %v3916_v18 = vmax.f32 %v3884_v45, 0.0 }
 0x210   : > { %v15378_v34 = vadd.f32 %v3703_v51, %v1767_v37  ;;  %v3915_v6 = vmax.f32 %v3883_v55, 0.0 }
 0x211   : > { %v3886_v20 = vadd.f32 %v15377_v53, %v17316_v13 }
 0x212   : > { %v3885_v10 = vadd.f32 %v15378_v34, %v17316_v13  ;;  %v14246_v12 = vpop.f32.mrb[6].mxu0  ;;  %3979 = vrot.lane.b32.xlu0 %v3914_v49, %s16162_s25  ;;  %3981 = vrot.lane.b32.xlu1 %v3915_v6, %s16162_s25 }
 0x213   : > { %v15379_v14 = vadd.f32 %v14246_v12, %v13996_v38  ;;  %v3713_v16 = vpop.f32.mrb[7].mxu0  ;;  %v3918_v37 = vmax.f32 %v3886_v20, 0.0 }
 0x214   : > { %v3917_v22 = vmax.f32 %v3885_v10, 0.0  ;;  %v15380_v24 = vadd.f32 %v3713_v16, %v17256_v48 }
 0x215   : > { %v3888_v38 = vadd.f32 %v15379_v14, %v17316_v13 }
 0x216   : > { %v3887_v26 = vadd.f32 %v15380_v24, %v17316_v13  ;;  %v14249_v27 = vpop.f32.mrb[8].mxu0  ;;  %3983 = vrot.lane.b32.xlu1 %v3916_v18, %s16162_s25  ;;  %3985 = vrot.lane.b32.xlu0 %v3917_v22, %s16162_s25 }
 0x217   : > { %v15381_v28 = vadd.f32 %v14249_v27, %v17258_v50  ;;  %v3723_v32 = vpop.f32.mrb[9].mxu0  ;;  %v3920_v15 = vmax.f32 %v3888_v38, 0.0 }
 0x218   : > { %v3919_v25 = vmax.f32 %v3887_v26, 0.0  ;;  %v15382_v23 = vadd.f32 %v3723_v32, %v17260_v52 }
 0x219   : > { %v3890_v50 = vadd.f32 %v15381_v28, %v17316_v13 }
 0x21a   : > { %v3889_v21 = vadd.f32 %v15382_v23, %v17316_v13  ;;  %v14252_v19 = vpop.f32.mrb[10].mxu0  ;;  %3987 = vrot.lane.b32.xlu1 %v3918_v37, %s16162_s25  ;;  %3989 = vrot.lane.b32.xlu0 %v3919_v25, %s16162_s25 }
 0x21b   : > { %v15383_v48 = vadd.f32 %v14252_v19, %v17262_v54  ;;  %v3733_v17 = vpop.f32.mrb[11].mxu0  ;;  %v3922_v4 = vmax.f32 %v3890_v50, 0.0 }
 0x21c   : > { %v3921_v11 = vmax.f32 %v3889_v21, 0.0  ;;  %v15384_v7 = vadd.f32 %v3733_v17, %v17264_v56 }
 0x21d   : > { %v3892_v54 = vadd.f32 %v15383_v48, %v17316_v13 }
 0x21e   : > { %v3891_v5 = vadd.f32 %v15384_v7, %v17316_v13  ;;  %v14255_v47 = vpop.f32.mrb[12].mxu0  ;;  %3991 = vrot.lane.b32.xlu1 %v3920_v15, %s16162_s25  ;;  %3993 = vrot.lane.b32.xlu0 %v3921_v11, %s16162_s25 }
 0x21f   : > { %v15385_v52 = vadd.f32 %v14255_v47, %v17266_v58  ;;  %v3743_v9 = vpop.f32.mrb[13].mxu0  ;;  %v3924_v55 = vmax.f32 %v3892_v54, 0.0 }
 0x220   : > { %v3923_v2 = vmax.f32 %v3891_v5, 0.0  ;;  %v15386_v0 = vadd.f32 %v3743_v9, %v17268_v61 }
 0x221   : > { %v3894_v58 = vadd.f32 %v15385_v52, %v17316_v13 }
 0x222   : > { %v3893_v62 = vadd.f32 %v15386_v0, %v17316_v13  ;;  %v14258_v60 = vpop.f32.mrb[14].mxu0  ;;  %3995 = vrot.lane.b32.xlu1 %v3922_v4, %s16162_s25  ;;  %3997 = vrot.lane.b32.xlu0 %v3923_v2, %s16162_s25 }
 0x223   : > { %v15387_v56 = vadd.f32 %v14258_v60, %v17270_v63  ;;  %v3753_v57 = vpop.f32.mrb[15].mxu0  ;;  %v3926_v6 = vmax.f32 %v3894_v58, 0.0 }
 0x224   : > { %v3925_v53 = vmax.f32 %v3893_v62, 0.0  ;;  %v15388_v51 = vadd.f32 %v3753_v57, %v17272_v1 }
 0x225   : > { %v3896_v63 = vadd.f32 %v15387_v56, %v17316_v13 }
 0x226   : > { %v3895_v49 = vadd.f32 %v15388_v51, %v17316_v13  ;;  %v14261_v45 = vpop.f32.mrb[16].mxu0  ;;  %3999 = vrot.lane.b32.xlu1 %v3924_v55, %s16162_s25  ;;  %4001 = vrot.lane.b32.xlu0 %v3925_v53, %s16162_s25 }
 0x227   : > { %v15389_v61 = vadd.f32 %v14261_v45, %v17274_v3  ;;  %v3763_v34 = vpop.f32.mrb[17].mxu0  ;;  %v3928_v20 = vmax.f32 %v3896_v63, 0.0  ;;  %v12290_v63 = vld [vmem:[%s19466_s3 + $0x20] sm:$0xff] }
 0x228   : > { %v3927_v10 = vmax.f32 %v3895_v49, 0.0  ;;  %v15390_v12 = vadd.f32 %v3763_v34, %v17276_v8 }
 0x229   : > { %v3898_v3 = vadd.f32 %v15389_v61, %v17316_v13 }
 0x22a   : > { %v3897_v14 = vadd.f32 %v15390_v12, %v17316_v13  ;;  %v14264_v16 = vpop.f32.mrb[18].mxu0  ;;  %4003 = vrot.lane.b32.xlu1 %v3926_v6, %s16162_s25  ;;  %4005 = vrot.lane.b32.xlu0 %v3927_v10, %s16162_s25 }
 0x22b   : > { %v15391_v1 = vadd.f32 %v14264_v16, %v17278_v30  ;;  %v3773_v18 = vpop.f32.mrb[19].mxu0  ;;  %v3930_v32 = vmax.f32 %v3898_v3, 0.0 }
 0x22c   : > { %v3929_v22 = vmax.f32 %v3897_v14, 0.0  ;;  %v15392_v24 = vadd.f32 %v3773_v18, %v17280_v46 }
 0x22d   : > { %v3900_v30 = vadd.f32 %v15391_v1, %v17316_v13 }
 0x22e   : > { %v3899_v26 = vadd.f32 %v15392_v24, %v17316_v13  ;;  %v14267_v27 = vpop.f32.mrb[20].mxu0  ;;  %4007 = vrot.lane.b32.xlu1 %v3928_v20, %s16162_s25  ;;  %4009 = vrot.lane.b32.xlu0 %v3929_v22, %s16162_s25 }
 0x22f   : > { %v15393_v8 = vadd.f32 %v14267_v27, %v17282_v35  ;;  %v3783_v28 = vpop.f32.mrb[21].mxu0  ;;  %v3932_v19 = vmax.f32 %v3900_v30, 0.0 }
 0x230   : > { %v3931_v37 = vmax.f32 %v3899_v26, 0.0  ;;  %v15394_v38 = vadd.f32 %v3783_v28, %v17284_v40 }
 0x231   : > { %v3902_v35 = vadd.f32 %v15393_v8, %v17316_v13 }
 0x232   : > { %v3901_v25 = vadd.f32 %v15394_v38, %v17316_v13  ;;  %v14270_v23 = vpop.f32.mrb[22].mxu0  ;;  %4011 = vrot.lane.b32.xlu1 %v3930_v32, %s16162_s25  ;;  %4013 = vrot.lane.b32.xlu0 %v3931_v37, %s16162_s25 }
 0x233   : > { %v15395_v46 = vadd.f32 %v14270_v23, %v17286_v41  ;;  %v3793_v21 = vpop.f32.mrb[23].mxu0  ;;  %v3934_v7 = vmax.f32 %v3902_v35, 0.0 }
 0x234   : > { %v3933_v48 = vmax.f32 %v3901_v25, 0.0  ;;  %v15396_v17 = vadd.f32 %v3793_v21, %v17288_v42 }
 0x235   : > { %v3904_v41 = vadd.f32 %v15395_v46, %v17316_v13 }
 0x236   : > { %v3903_v15 = vadd.f32 %v15396_v17, %v17316_v13  ;;  %v14273_v50 = vpop.f32.mrb[24].mxu0  ;;  %4015 = vrot.lane.b32.xlu1 %v3932_v19, %s16162_s25  ;;  %4017 = vrot.lane.b32.xlu0 %v3933_v48, %s16162_s25 }
 0x237   : > { %v15397_v40 = vadd.f32 %v14273_v50, %v17290_v44  ;;  %v3803_v11 = vpop.f32.mrb[25].mxu0  ;;  %v3936_v54 = vmax.f32 %v3904_v41, 0.0 }
 0x238   : > { %v3935_v5 = vmax.f32 %v3903_v15, 0.0  ;;  %v15398_v47 = vadd.f32 %v3803_v11, %v17292_v29 }
 0x239   : > { %v3906_v44 = vadd.f32 %v15397_v40, %v17316_v13 }
 0x23a   : > { %v3905_v52 = vadd.f32 %v15398_v47, %v17316_v13  ;;  %v14276_v9 = vpop.f32.mrb[26].mxu0  ;;  %4019 = vrot.lane.b32.xlu1 %v3934_v7, %s16162_s25  ;;  %4021 = vrot.lane.b32.xlu0 %v3935_v5, %s16162_s25 }
 0x23b   : > { %v15399_v42 = vadd.f32 %v14276_v9, %v17294_v43  ;;  %v3813_v4 = vpop.f32.mrb[27].mxu0  ;;  %v3938_v57 = vmax.f32 %v3906_v44, 0.0 }
 0x23c   : > { %v3937_v2 = vmax.f32 %v3905_v52, 0.0  ;;  %v15400_v0 = vadd.f32 %v3813_v4, %v17296_v39 }
 0x23d   : > { %v3908_v43 = vadd.f32 %v15399_v42, %v17316_v13 }
 0x23e   : > { %v3907_v62 = vadd.f32 %v15400_v0, %v17316_v13  ;;  %v14279_v60 = vpop.f32.mrb[28].mxu0  ;;  %4023 = vrot.lane.b32.xlu1 %v3936_v54, %s16162_s25  ;;  %4025 = vrot.lane.b32.xlu0 %v3937_v2, %s16162_s25 }
 0x23f   : > { %v15401_v29 = vadd.f32 %v14279_v60, %v17298_v31  ;;  %v3823_v56 = vpop.f32.mrb[29].mxu0  ;;  %v3940_v45 = vmax.f32 %v3908_v43, 0.0 }
 0x240   : > { %v3939_v55 = vmax.f32 %v3907_v62, 0.0  ;;  %v15402_v58 = vadd.f32 %v3823_v56, %v17300_v36 }
 0x241   : > { %v3910_v31 = vadd.f32 %v15401_v29, %v17316_v13 }
 0x242   : > { %v3909_v53 = vadd.f32 %v15402_v58, %v17316_v13  ;;  %v14282_v51 = vpop.f32.mrb[30].mxu0  ;;  %4027 = vrot.lane.b32.xlu1 %v3938_v57, %s16162_s25  ;;  %4029 = vrot.lane.b32.xlu0 %v3939_v55, %s16162_s25 }
 0x243   : > { %v15403_v39 = vadd.f32 %v14282_v51, %v17302_v33  ;;  %v3833_v49 = vpop.f32.mrb[31].mxu0  ;;  %v12291_v33 = vld [vmem:[%s19466_s3 + $0x28] sm:$0xff]  ;;  %v3942_v12 = vmax.f32 %v3910_v31, 0.0 }
 0x244   : > { %v3941_v61 = vmax.f32 %v3909_v53, 0.0  ;;  %v15404_v34 = vadd.f32 %v3833_v49, %v17304_v59  ;;  %v17411_v10 = vpack.c.bf16 %v12291_v33, %v12290_v63 }
 0x245   : > { %v3912_v6 = vadd.f32 %v15403_v39, %v17316_v13 }
 0x246   : > { %v3911_v36 = vadd.f32 %v15404_v34, %v17316_v13  ;;  %4031 = vrot.lane.b32.xlu1 %v3940_v45, %s16162_s25  ;;  %4033 = vrot.lane.b32.xlu0 %v3941_v61, %s16162_s25 }
 0x247   : > { %15302 = vmatprep.subr.bf16.mxu1 %v17411_v10  ;;  %v3944_v13 = vmax.f32 %v3912_v6, 0.0 }
 0x248   : > { %v3943_v59 = vmax.f32 %v3911_v36, 0.0 }
 0x24a   : > { %4035 = vrot.lane.b32.xlu1 %v3942_v12, %s16162_s25  ;;  %4037 = vrot.lane.b32.xlu0 %v3943_v59, %s16162_s25  ;;  %v4106_v59 = vld [vmem:[#allocation2] sm:$0xff] }
 0x24e   : > { %4039 = vrot.lane.b32.xlu1 %v3944_v13, %s16162_s25 }
 0x280   : > { %v3978_v14 = vpop.permute.xlu0 %3977 }
 0x281   : > { %4074 = vst.msk [vmem:[#allocation2 + $0x19] sm:$0xff] %vm4073_vm4, %v3978_v14  ;;  %v12324_v14 = vld [vmem:[%s19466_s3 + $0x30] sm:$0xff] }
 0x284   : > { %v3980_v16 = vpop.permute.xlu0 %3979  ;;  %v3982_v1 = vpop.permute.xlu1 %3981 }
 0x285   : > { %4075 = vst.msk [vmem:[#allocation2 + $0x21] sm:$0xff] %vm4073_vm4, %v3980_v16  ;;  %4076 = vst.msk [vmem:[#allocation2 + $0x31] sm:$0xff] %vm4073_vm4, %v3982_v1  ;;  %v12325_v16 = vld [vmem:[%s19466_s3 + $0x38] sm:$0xff]  ;;  %v4107_v1 = vld [vmem:[#allocation2 + $0x8] sm:$0xff] }
 0x288   : > { %v3984_v18 = vpop.permute.xlu1 %3983  ;;  %v3986_v20 = vpop.permute.xlu0 %3985  ;;  %v17420_v3 = vld [vmem:[#allocation2 + $0x19] sm:$0xff] }
 0x289   : > { %4077 = vst.msk [vmem:[#allocation2 + $0x39] sm:$0xff] %vm4073_vm4, %v3984_v18  ;;  %4078 = vst.msk [vmem:[#allocation2 + $0x49] sm:$0xff] %vm4073_vm4, %v3986_v20  ;;  %14290 = vmatprep.mubr.msk.f32.mxu1 %vm4175_vm3, %v17420_v3  ;;  %v17576_v18 = vpack.c.bf16 %v12325_v16, %v12324_v14  ;;  %v17579_v20 = vld [vmem:[#allocation2 + $0x18] sm:$0xff]  ;;  %v12358_v16 = vld [vmem:[%s19466_s3 + $0x40] sm:$0xff] }
 0x28c   : > { %v3988_v22 = vpop.permute.xlu1 %3987  ;;  %v3990_v24 = vpop.permute.xlu0 %3989  ;;  %v17426_v26 = vld [vmem:[#allocation2 + $0x21] sm:$0xff]  ;;  %v17428_v27 = vld [vmem:[#allocation2 + $0x31] sm:$0xff] }
 0x28d   : > { %4079 = vst.msk [vmem:[#allocation2 + $0x51] sm:$0xff] %vm4073_vm4, %v3988_v22  ;;  %4080 = vst.msk [vmem:[#allocation2 + $0x61] sm:$0xff] %vm4073_vm4, %v3990_v24  ;;  %14291 = vmatmul.mubr.msk.f32.gmra.mrb[34].mxu1 %vm4175_vm3, %v17426_v26  ;;  %v17585_v22 = vld [vmem:[#allocation2 + $0x20] sm:$0xff]  ;;  %v17589_v24 = vld [vmem:[#allocation2 + $0x30] sm:$0xff] }
 0x28e   : > { %14293 = vmatprep.mubr.msk.f32.mxu1 %vm4175_vm3, %v17428_v27 }
 0x290   : > { %v3992_v8 = vpop.permute.xlu1 %3991  ;;  %v3994_v28 = vpop.permute.xlu0 %3993  ;;  %v17436_v32 = vld [vmem:[#allocation2 + $0x39] sm:$0xff]  ;;  %v17438_v30 = vld [vmem:[#allocation2 + $0x49] sm:$0xff] }
 0x291   : > { %4081 = vst.msk [vmem:[#allocation2 + $0x69] sm:$0xff] %vm4073_vm4, %v3992_v8  ;;  %4082 = vst.msk [vmem:[#allocation2 + $0x79] sm:$0xff] %vm4073_vm4, %v3994_v28  ;;  %14294 = vmatmul.mubr.msk.f32.gmra.mrb[36].mxu1 %vm4175_vm3, %v17436_v32  ;;  %v17593_v8 = vld [vmem:[#allocation2 + $0x38] sm:$0xff] }
 0x292   : > { %14296 = vmatprep.mubr.msk.f32.mxu1 %vm4175_vm3, %v17438_v30 }
 0x294   : > { %v3996_v37 = vpop.permute.xlu1 %3995  ;;  %v3998_v38 = vpop.permute.xlu0 %3997  ;;  %v17446_v25 = vld [vmem:[#allocation2 + $0x51] sm:$0xff]  ;;  %v17448_v23 = vld [vmem:[#allocation2 + $0x61] sm:$0xff] }
 0x295   : > { %4083 = vst.msk [vmem:[#allocation2 + $0x81] sm:$0xff] %vm4073_vm4, %v3996_v37  ;;  %4084 = vst.msk [vmem:[#allocation2 + $0x91] sm:$0xff] %vm4073_vm4, %v3998_v38  ;;  %14297 = vmatmul.mubr.msk.f32.gmra.mrb[38].mxu1 %vm4175_vm3, %v17446_v25  ;;  %v17601_v28 = vld [vmem:[#allocation2 + $0x50] sm:$0xff]  ;;  %v17605_v37 = vld [vmem:[#allocation2 + $0x60] sm:$0xff] }
 0x296   : > { %14299 = vmatprep.mubr.msk.f32.mxu1 %vm4175_vm3, %v17448_v23 }
 0x298   : > { %v4000_v46 = vpop.permute.xlu1 %3999  ;;  %v4002_v21 = vpop.permute.xlu0 %4001  ;;  %v17456_v19 = vld [vmem:[#allocation2 + $0x69] sm:$0xff]  ;;  %v17458_v35 = vld [vmem:[#allocation2 + $0x79] sm:$0xff] }
 0x299   : > { %4085 = vst.msk [vmem:[#allocation2 + $0x99] sm:$0xff] %vm4073_vm4, %v4000_v46  ;;  %4086 = vst.msk [vmem:[#allocation2 + $0xa9] sm:$0xff] %vm4073_vm4, %v4002_v21  ;;  %14300 = vmatmul.mubr.msk.f32.gmra.mrb[40].mxu1 %vm4175_vm3, %v17456_v19  ;;  %v17609_v38 = vld [vmem:[#allocation2 + $0x68] sm:$0xff]  ;;  %v17613_v46 = vld [vmem:[#allocation2 + $0x78] sm:$0xff] }
 0x29a   : > { %14302 = vmatprep.mubr.msk.f32.mxu1 %vm4175_vm3, %v17458_v35 }
 0x29c   : > { %v4004_v48 = vpop.permute.xlu1 %4003  ;;  %v4006_v17 = vpop.permute.xlu0 %4005  ;;  %v17466_v15 = vld [vmem:[#allocation2 + $0x81] sm:$0xff]  ;;  %v17468_v50 = vld [vmem:[#allocation2 + $0x91] sm:$0xff] }
 0x29d   : > { %4087 = vst.msk [vmem:[#allocation2 + $0xb1] sm:$0xff] %vm4073_vm4, %v4004_v48  ;;  %4088 = vst.msk [vmem:[#allocation2 + $0xc1] sm:$0xff] %vm4073_vm4, %v4006_v17  ;;  %14303 = vmatmul.mubr.msk.f32.gmra.mrb[42].mxu1 %vm4175_vm3, %v17466_v15  ;;  %v17617_v21 = vld [vmem:[#allocation2 + $0x80] sm:$0xff]  ;;  %v17621_v48 = vld [vmem:[#allocation2 + $0x90] sm:$0xff] }
 0x29e   : > { %14305 = vmatprep.mubr.msk.f32.mxu1 %vm4175_vm3, %v17468_v50 }
 0x2a0   : > { %v4008_v40 = vpop.permute.xlu1 %4007  ;;  %v4010_v11 = vpop.permute.xlu0 %4009  ;;  %v17476_v7 = vld [vmem:[#allocation2 + $0x99] sm:$0xff]  ;;  %v17478_v41 = vld [vmem:[#allocation2 + $0xa9] sm:$0xff] }
 0x2a1   : > { %4089 = vst.msk [vmem:[#allocation2 + $0xc9] sm:$0xff] %vm4073_vm4, %v4008_v40  ;;  %4090 = vst.msk [vmem:[#allocation2 + $0xd9] sm:$0xff] %vm4073_vm4, %v4010_v11  ;;  %14306 = vmatmul.mubr.msk.f32.gmra.mrb[44].mxu1 %vm4175_vm3, %v17476_v7  ;;  %v17625_v17 = vld [vmem:[#allocation2 + $0x98] sm:$0xff]  ;;  %v17629_v40 = vld [vmem:[#allocation2 + $0xa8] sm:$0xff] }
 0x2a2   : > { %14308 = vmatprep.mubr.msk.f32.mxu1 %vm4175_vm3, %v17478_v41 }
 0x2a4   : > { %v4012_v5 = vpop.permute.xlu1 %4011  ;;  %v4014_v47 = vpop.permute.xlu0 %4013  ;;  %v17486_v52 = vld [vmem:[#allocation2 + $0xb1] sm:$0xff]  ;;  %v17488_v9 = vld [vmem:[#allocation2 + $0xc1] sm:$0xff] }
 0x2a5   : > { %4091 = vst.msk [vmem:[#allocation2 + $0xe1] sm:$0xff] %vm4073_vm4, %v4012_v5  ;;  %4092 = vst.msk [vmem:[#allocation2 + $0xf1] sm:$0xff] %vm4073_vm4, %v4014_v47  ;;  %14309 = vmatmul.mubr.msk.f32.gmra.mrb[46].mxu1 %vm4175_vm3, %v17486_v52  ;;  %v17633_v11 = vld [vmem:[#allocation2 + $0xb0] sm:$0xff]  ;;  %v17637_v5 = vld [vmem:[#allocation2 + $0xc0] sm:$0xff] }
 0x2a6   : > { %14311 = vmatprep.mubr.msk.f32.mxu1 %vm4175_vm3, %v17488_v9 }
 0x2a8   : > { %v4016_v42 = vpop.permute.xlu1 %4015  ;;  %v4018_v4 = vpop.permute.xlu0 %4017  ;;  %v17496_v54 = vld [vmem:[#allocation2 + $0xc9] sm:$0xff]  ;;  %v17498_v44 = vld [vmem:[#allocation2 + $0xd9] sm:$0xff] }
 0x2a9   : > { %4093 = vst.msk [vmem:[#allocation2 + $0xf9] sm:$0xff] %vm4073_vm4, %v4016_v42  ;;  %4094 = vst.msk [vmem:[#allocation2 + $0x109] sm:$0xff] %vm4073_vm4, %v4018_v4  ;;  %14312 = vmatmul.mubr.msk.f32.gmra.mrb[48].mxu1 %vm4175_vm3, %v17496_v54  ;;  %v17641_v47 = vld [vmem:[#allocation2 + $0xc8] sm:$0xff]  ;;  %v17645_v42 = vld [vmem:[#allocation2 + $0xd8] sm:$0xff] }
 0x2aa   : > { %14314 = vmatprep.mubr.msk.f32.mxu1 %vm4175_vm3, %v17498_v44 }
 0x2ac   : > { %v4020_v2 = vpop.permute.xlu1 %4019  ;;  %v4022_v0 = vpop.permute.xlu0 %4021  ;;  %v17506_v62 = vld [vmem:[#allocation2 + $0xe1] sm:$0xff]  ;;  %v17508_v60 = vld [vmem:[#allocation2 + $0xf1] sm:$0xff] }
 0x2ad   : > { %4095 = vst.msk [vmem:[#allocation2 + $0x111] sm:$0xff] %vm4073_vm4, %v4020_v2  ;;  %4096 = vst.msk [vmem:[#allocation2 + $0x121] sm:$0xff] %vm4073_vm4, %v4022_v0  ;;  %14315 = vmatmul.mubr.msk.f32.gmra.mrb[50].mxu1 %vm4175_vm3, %v17506_v62  ;;  %v17649_v4 = vld [vmem:[#allocation2 + $0xe0] sm:$0xff]  ;;  %v17653_v2 = vld [vmem:[#allocation2 + $0xf0] sm:$0xff] }
 0x2ae   : > { %14317 = vmatprep.mubr.msk.f32.mxu1 %vm4175_vm3, %v17508_v60 }
 0x2b0   : > { %v4024_v29 = vpop.permute.xlu1 %4023  ;;  %v4026_v56 = vpop.permute.xlu0 %4025  ;;  %v17516_v57 = vld [vmem:[#allocation2 + $0xf9] sm:$0xff]  ;;  %v17518_v43 = vld [vmem:[#allocation2 + $0x109] sm:$0xff] }
 0x2b1   : > { %4097 = vst.msk [vmem:[#allocation2 + $0x129] sm:$0xff] %vm4073_vm4, %v4024_v29  ;;  %4098 = vst.msk [vmem:[#allocation2 + $0x139] sm:$0xff] %vm4073_vm4, %v4026_v56  ;;  %14318 = vmatmul.mubr.msk.f32.gmra.mrb[52].mxu1 %vm4175_vm3, %v17516_v57  ;;  %v17657_v0 = vld [vmem:[#allocation2 + $0xf8] sm:$0xff]  ;;  %v17661_v29 = vld [vmem:[#allocation2 + $0x108] sm:$0xff] }
 0x2b2   : > { %14320 = vmatprep.mubr.msk.f32.mxu1 %vm4175_vm3, %v17518_v43 }
 0x2b4   : > { %v4028_v55 = vpop.permute.xlu1 %4027  ;;  %v4030_v58 = vpop.permute.xlu0 %4029  ;;  %v17526_v53 = vld [vmem:[#allocation2 + $0x111] sm:$0xff]  ;;  %v17528_v51 = vld [vmem:[#allocation2 + $0x121] sm:$0xff] }
 0x2b5   : > { %4099 = vst.msk [vmem:[#allocation2 + $0x141] sm:$0xff] %vm4073_vm4, %v4028_v55  ;;  %4100 = vst.msk [vmem:[#allocation2 + $0x151] sm:$0xff] %vm4073_vm4, %v4030_v58  ;;  %14321 = vmatmul.mubr.msk.f32.gmra.mrb[54].mxu1 %vm4175_vm3, %v17526_v53  ;;  %v17665_v56 = vld [vmem:[#allocation2 + $0x110] sm:$0xff]  ;;  %v17669_v55 = vld [vmem:[#allocation2 + $0x120] sm:$0xff] }
 0x2b6   : > { %14323 = vmatprep.mubr.msk.f32.mxu1 %vm4175_vm3, %v17528_v51 }
 0x2b8   : > { %v4032_v39 = vpop.permute.xlu1 %4031  ;;  %v4034_v49 = vpop.permute.xlu0 %4033  ;;  %v17536_v45 = vld [vmem:[#allocation2 + $0x129] sm:$0xff]  ;;  %v17538_v31 = vld [vmem:[#allocation2 + $0x139] sm:$0xff] }
 0x2b9   : > { %4101 = vst.msk [vmem:[#allocation2 + $0x159] sm:$0xff] %vm4073_vm4, %v4032_v39  ;;  %4102 = vst.msk [vmem:[#allocation2 + $0x169] sm:$0xff] %vm4073_vm4, %v4034_v49  ;;  %14324 = vmatmul.mubr.msk.f32.gmra.mrb[56].mxu1 %vm4175_vm3, %v17536_v45  ;;  %v17673_v58 = vld [vmem:[#allocation2 + $0x128] sm:$0xff]  ;;  %v17677_v39 = vld [vmem:[#allocation2 + $0x138] sm:$0xff] }
 0x2ba   : > { %14326 = vmatprep.mubr.msk.f32.mxu1 %vm4175_vm3, %v17538_v31 }
 0x2bc   : > { %v4036_v61 = vpop.permute.xlu1 %4035  ;;  %v4038_v34 = vpop.permute.xlu0 %4037  ;;  %v17546_v6 = vld [vmem:[#allocation2 + $0x141] sm:$0xff]  ;;  %v17548_v36 = vld [vmem:[#allocation2 + $0x151] sm:$0xff] }
 0x2bd   : > { %19767 = vst [vmem:[#allocation65_spill] sm:$0xff] %v17548_v36  ;;  %4103 = vst.msk [vmem:[#allocation2 + $0x171] sm:$0xff] %vm4073_vm4, %v4036_v61  ;;  %14327 = vmatmul.mubr.msk.f32.gmra.mrb[58].mxu1 %vm4175_vm3, %v17546_v6  ;;  %v17681_v49 = vld [vmem:[#allocation2 + $0x140] sm:$0xff]  ;;  %v17685_v61 = vld [vmem:[#allocation2 + $0x150] sm:$0xff] }
 0x2be   : > { %4104 = vst.msk [vmem:[#allocation2 + $0x181] sm:$0xff] %vm4073_vm4, %v4038_v34  ;;  %14329 = vmatprep.mubr.msk.f32.mxu1 %vm4175_vm3, %v17548_v36  ;;  %v17717_v36 = vld [vmem:[#allocation2 + $0x22] sm:$0xff] }
 0x2c0   : > { %v4040_v63 = vpop.permute.xlu1 %4039  ;;  %v17556_v33 = vld [vmem:[#allocation2 + $0x159] sm:$0xff]  ;;  %v17558_v12 = vld [vmem:[#allocation2 + $0x169] sm:$0xff] }
 0x2c1   : > { %19768 = vst [vmem:[#allocation66_spill] sm:$0xff] %v17556_v33  ;;  %19769 = vst [vmem:[#allocation25_spill] sm:$0xff] %v17558_v12  ;;  %14330 = vmatmul.mubr.msk.f32.gmra.mrb[60].mxu1 %vm4175_vm3, %v17556_v33  ;;  %v17689_v34 = vld [vmem:[#allocation2 + $0x158] sm:$0xff] }
 0x2c2   : > { %4105 = vst.msk [vmem:[#allocation2 + $0x189] sm:$0xff] %vm4073_vm4, %v4040_v63  ;;  %14332 = vmatprep.mubr.msk.f32.mxu1 %vm4175_vm3, %v17558_v12  ;;  %v17693_v63 = vld [vmem:[#allocation2 + $0x168] sm:$0xff]  ;;  %v17711_v33 = vld [vmem:[#allocation2 + $0x1a] sm:$0xff] }
 0x2c4   : > { %v17565_v13 = vld [vmem:[#allocation2 + $0x171] sm:$0xff] }
 0x2c5   : > { %19770 = vst [vmem:[#allocation28_spill] sm:$0xff] %v17565_v13  ;;  %14333 = vmatmul.mubr.msk.f32.gmra.mrb[62].mxu1 %vm4175_vm3, %v17565_v13  ;;  %v17697_v14 = vld [vmem:[#allocation2 + $0x170] sm:$0xff] }
 0x2c6   : > { %14339 = vmatprep.mubr.msk.f32.mxu1 %vm4175_vm3, %v4106_v59  ;;  %v4818_v59 = vld [vmem:[#allocation2 + $0x2] sm:$0xff]  ;;  %v4819_v13 = vld [vmem:[#allocation2 + $0xa] sm:$0xff] }
 0x2c9   : > { %14340 = vmatmul.mubr.msk.f32.vlgmr.msra.gmra.mrb[32].mxu1 %vm4175_vm3, %v4107_v1  ;;  %v12359_v1 = vld [vmem:[%s19466_s3 + $0x48] sm:$0xff] }
 0x2ca   : > { %15304 = vmatpush3.bf16.msra.mxu1 %v17411_v10  ;;  %14342 = vmatprep.mubr.msk.f32.mxu1 %vm4175_vm3, %v17579_v20  ;;  %v17597_v10 = vld [vmem:[#allocation2 + $0x48] sm:$0xff]  ;;  %v17708_v12 = vpack.c.bf16 %v12359_v1, %v12358_v16  ;;  %v17733_v16 = vld [vmem:[#allocation2 + $0x52] sm:$0xff] }
 0x2cb   : > { %15306 = vmatprep.subr.bf16.mxu1 %v17576_v18  ;;  %19774 = vst [vmem:[#allocation38_spill] sm:$0xff] %v17733_v16  ;;  %v17737_v1 = vld [vmem:[#allocation2 + $0x62] sm:$0xff] }
 0x2cc   : > { %19775 = vst [vmem:[#allocation41_spill] sm:$0xff] %v17737_v1 }
 0x2cd   : > { %14343 = vmatmul.mubr.msk.f32.gmra.mrb[34].mxu1 %vm4175_vm3, %v17585_v22 }
 0x2ce   : > { %14345 = vmatprep.mubr.msk.f32.mxu1 %vm4175_vm3, %v17589_v24 }
 0x2d1   : > { %14346 = vmatmul.mubr.msk.f32.gmra.mrb[36].mxu1 %vm4175_vm3, %v17593_v8 }
 0x2d2   : > { %14348 = vmatprep.mubr.msk.f32.mxu1 %vm4175_vm3, %v17597_v10 }
 0x2d5   : > { %14349 = vmatmul.mubr.msk.f32.gmra.mrb[38].mxu1 %vm4175_vm3, %v17601_v28 }
 0x2d6   : > { %14351 = vmatprep.mubr.msk.f32.mxu1 %vm4175_vm3, %v17605_v37 }
 0x2d9   : > { %14352 = vmatmul.mubr.msk.f32.gmra.mrb[40].mxu1 %vm4175_vm3, %v17609_v38 }
 0x2da   : > { %14354 = vmatprep.mubr.msk.f32.mxu1 %vm4175_vm3, %v17613_v46 }
 0x2dd   : > { %14355 = vmatmul.mubr.msk.f32.gmra.mrb[42].mxu1 %vm4175_vm3, %v17617_v21 }
 0x2de   : > { %14357 = vmatprep.mubr.msk.f32.mxu1 %vm4175_vm3, %v17621_v48 }
 0x2e1   : > { %14358 = vmatmul.mubr.msk.f32.gmra.mrb[44].mxu1 %vm4175_vm3, %v17625_v17 }
 0x2e2   : > { %14360 = vmatprep.mubr.msk.f32.mxu1 %vm4175_vm3, %v17629_v40 }
 0x2e5   : > { %14361 = vmatmul.mubr.msk.f32.gmra.mrb[46].mxu1 %vm4175_vm3, %v17633_v11 }
 0x2e6   : > { %14363 = vmatprep.mubr.msk.f32.mxu1 %vm4175_vm3, %v17637_v5 }
 0x2e9   : > { %14364 = vmatmul.mubr.msk.f32.gmra.mrb[48].mxu1 %vm4175_vm3, %v17641_v47 }
 0x2ea   : > { %14366 = vmatprep.mubr.msk.f32.mxu1 %vm4175_vm3, %v17645_v42 }
 0x2ed   : > { %14367 = vmatmul.mubr.msk.f32.gmra.mrb[50].mxu1 %vm4175_vm3, %v17649_v4 }
 0x2ee   : > { %14369 = vmatprep.mubr.msk.f32.mxu1 %vm4175_vm3, %v17653_v2 }
 0x2f1   : > { %14370 = vmatmul.mubr.msk.f32.gmra.mrb[52].mxu1 %vm4175_vm3, %v17657_v0 }
 0x2f2   : > { %14372 = vmatprep.mubr.msk.f32.mxu1 %vm4175_vm3, %v17661_v29 }
 0x2f5   : > { %14373 = vmatmul.mubr.msk.f32.gmra.mrb[54].mxu1 %vm4175_vm3, %v17665_v56 }
 0x2f6   : > { %14375 = vmatprep.mubr.msk.f32.mxu1 %vm4175_vm3, %v17669_v55 }
 0x2f9   : > { %14376 = vmatmul.mubr.msk.f32.gmra.mrb[56].mxu1 %vm4175_vm3, %v17673_v58 }
 0x2fa   : > { %14378 = vmatprep.mubr.msk.f32.mxu1 %vm4175_vm3, %v17677_v39 }
 0x2fd   : > { %14379 = vmatmul.mubr.msk.f32.gmra.mrb[58].mxu1 %vm4175_vm3, %v17681_v49 }
 0x2fe   : > { %14381 = vmatprep.mubr.msk.f32.mxu1 %vm4175_vm3, %v17685_v61 }
 0x301   : > { %14382 = vmatmul.mubr.msk.f32.gmra.mrb[60].mxu1 %vm4175_vm3, %v17689_v34 }
 0x302   : > { %14384 = vmatprep.mubr.msk.f32.mxu1 %vm4175_vm3, %v17693_v63 }
 0x305   : > { %14385 = vmatmul.mubr.msk.f32.gmra.mrb[62].mxu1 %vm4175_vm3, %v17697_v14 }
 0x306   : > { %14391 = vmatprep.mubr.msk.f32.mxu1 %vm4175_vm3, %v4818_v59  ;;  %v17721_v59 = vld [vmem:[#allocation2 + $0x32] sm:$0xff] }
 0x307   : > { %19771 = vst [vmem:[#allocation29_spill] sm:$0xff] %v17721_v59 }
 0x309   : > { %14392 = vmatmul.mubr.msk.f32.vlgmr.msra.gmra.mrb[32].mxu1 %vm4175_vm3, %v4819_v13  ;;  %v17725_v13 = vld [vmem:[#allocation2 + $0x3a] sm:$0xff] }
 0x30a   : > { %15308 = vmatpush3.bf16.msra.mxu1 %v17576_v18  ;;  %14394 = vmatprep.mubr.msk.f32.mxu1 %vm4175_vm3, %v17711_v33  ;;  %19772 = vst [vmem:[#allocation30_spill] sm:$0xff] %v17725_v13  ;;  %v17729_v18 = vld [vmem:[#allocation2 + $0x4a] sm:$0xff] }
 0x30b   : > { %15310 = vmatprep.subr.bf16.mxu1 %v17708_v12  ;;  %19773 = vst [vmem:[#allocation31_spill] sm:$0xff] %v17729_v18 }
 0x30d   : > { %14395 = vmatmul.mubr.msk.f32.gmra.mrb[34].mxu1 %vm4175_vm3, %v17717_v36 }
 0x30e   : > { %14397 = vmatprep.mubr.msk.f32.mxu1 %vm4175_vm3, %v17721_v59  ;;  %v17741_v59 = vld [vmem:[#allocation2 + $0x6a] sm:$0xff] }
 0x30f   : > { %19776 = vst [vmem:[#allocation42_spill] sm:$0xff] %v17741_v59 }
 0x311   : > { %14398 = vmatmul.mubr.msk.f32.gmra.mrb[36].mxu1 %vm4175_vm3, %v17725_v13  ;;  %v17745_v13 = vld [vmem:[#allocation2 + $0x7a] sm:$0xff] }
 0x312   : > { %14400 = vmatprep.mubr.msk.f32.mxu1 %vm4175_vm3, %v17729_v18  ;;  %19777 = vst [vmem:[#allocation43_spill] sm:$0xff] %v17745_v13  ;;  %v17749_v18 = vld [vmem:[#allocation2 + $0x82] sm:$0xff] }
 0x313   : > { %19778 = vst [vmem:[#allocation44_spill] sm:$0xff] %v17749_v18 }
 0x315   : > { %14401 = vmatmul.mubr.msk.f32.gmra.mrb[38].mxu1 %vm4175_vm3, %v17733_v16  ;;  %v17753_v16 = vld [vmem:[#allocation2 + $0x92] sm:$0xff] }
 0x316   : > { %14403 = vmatprep.mubr.msk.f32.mxu1 %vm4175_vm3, %v17737_v1  ;;  %19779 = vst [vmem:[#allocation45_spill] sm:$0xff] %v17753_v16  ;;  %v17757_v1 = vld [vmem:[#allocation2 + $0x9a] sm:$0xff] }
 0x317   : > { %19780 = vst [vmem:[#allocation46_spill] sm:$0xff] %v17757_v1 }
 0x319   : > { %14404 = vmatmul.mubr.msk.f32.gmra.mrb[40].mxu1 %vm4175_vm3, %v17741_v59  ;;  %v17761_v59 = vld [vmem:[#allocation2 + $0xaa] sm:$0xff] }
 0x31a   : > { %14406 = vmatprep.mubr.msk.f32.mxu1 %vm4175_vm3, %v17745_v13  ;;  %19781 = vst [vmem:[#allocation47_spill] sm:$0xff] %v17761_v59  ;;  %v17765_v13 = vld [vmem:[#allocation2 + $0xb2] sm:$0xff] }
 0x31b   : > { %19782 = vst [vmem:[#allocation48_spill] sm:$0xff] %v17765_v13 }
 0x31d   : > { %14407 = vmatmul.mubr.msk.f32.gmra.mrb[42].mxu1 %vm4175_vm3, %v17749_v18  ;;  %v17769_v18 = vld [vmem:[#allocation2 + $0xc2] sm:$0xff] }
 0x31e   : > { %14409 = vmatprep.mubr.msk.f32.mxu1 %vm4175_vm3, %v17753_v16  ;;  %19783 = vst [vmem:[#allocation49_spill] sm:$0xff] %v17769_v18  ;;  %v17773_v16 = vld [vmem:[#allocation2 + $0xca] sm:$0xff] }
 0x31f   : > { %19784 = vst [vmem:[#allocation50_spill] sm:$0xff] %v17773_v16 }
 0x321   : > { %14410 = vmatmul.mubr.msk.f32.gmra.mrb[44].mxu1 %vm4175_vm3, %v17757_v1  ;;  %v17777_v1 = vld [vmem:[#allocation2 + $0xda] sm:$0xff] }
 0x322   : > { %14412 = vmatprep.mubr.msk.f32.mxu1 %vm4175_vm3, %v17761_v59  ;;  %19785 = vst [vmem:[#allocation51_spill] sm:$0xff] %v17777_v1  ;;  %v17781_v59 = vld [vmem:[#allocation2 + $0xe2] sm:$0xff] }
 0x323   : > { %19786 = vst [vmem:[#allocation52_spill] sm:$0xff] %v17781_v59 }
 0x325   : > { %14413 = vmatmul.mubr.msk.f32.gmra.mrb[46].mxu1 %vm4175_vm3, %v17765_v13  ;;  %v17785_v13 = vld [vmem:[#allocation2 + $0xf2] sm:$0xff] }
 0x326   : > { %14415 = vmatprep.mubr.msk.f32.mxu1 %vm4175_vm3, %v17769_v18  ;;  %19787 = vst [vmem:[#allocation53_spill] sm:$0xff] %v17785_v13  ;;  %v17789_v18 = vld [vmem:[#allocation2 + $0xfa] sm:$0xff] }
 0x327   : > { %19788 = vst [vmem:[#allocation54_spill] sm:$0xff] %v17789_v18 }
 0x329   : > { %14416 = vmatmul.mubr.msk.f32.gmra.mrb[48].mxu1 %vm4175_vm3, %v17773_v16  ;;  %v17793_v16 = vld [vmem:[#allocation2 + $0x10a] sm:$0xff] }
 0x32a   : > { %14418 = vmatprep.mubr.msk.f32.mxu1 %vm4175_vm3, %v17777_v1  ;;  %19789 = vst [vmem:[#allocation55_spill] sm:$0xff] %v17793_v16  ;;  %v17797_v1 = vld [vmem:[#allocation2 + $0x112] sm:$0xff] }
 0x32b   : > { %19790 = vst [vmem:[#allocation56_spill] sm:$0xff] %v17797_v1 }
 0x32d   : > { %14419 = vmatmul.mubr.msk.f32.gmra.mrb[50].mxu1 %vm4175_vm3, %v17781_v59  ;;  %v17801_v59 = vld [vmem:[#allocation2 + $0x122] sm:$0xff] }
 0x32e   : > { %14421 = vmatprep.mubr.msk.f32.mxu1 %vm4175_vm3, %v17785_v13  ;;  %19791 = vst [vmem:[#allocation57_spill] sm:$0xff] %v17801_v59  ;;  %v17805_v13 = vld [vmem:[#allocation2 + $0x12a] sm:$0xff] }
 0x32f   : > { %19792 = vst [vmem:[#allocation58_spill] sm:$0xff] %v17805_v13 }
 0x331   : > { %14422 = vmatmul.mubr.msk.f32.gmra.mrb[52].mxu1 %vm4175_vm3, %v17789_v18  ;;  %v17809_v18 = vld [vmem:[#allocation2 + $0x13a] sm:$0xff] }
 0x332   : > { %14424 = vmatprep.mubr.msk.f32.mxu1 %vm4175_vm3, %v17793_v16  ;;  %19793 = vst [vmem:[#allocation59_spill] sm:$0xff] %v17809_v18  ;;  %v17813_v16 = vld [vmem:[#allocation2 + $0x142] sm:$0xff] }
 0x333   : > { %19794 = vst [vmem:[#allocation60_spill] sm:$0xff] %v17813_v16 }
 0x335   : > { %14425 = vmatmul.mubr.msk.f32.gmra.mrb[54].mxu1 %vm4175_vm3, %v17797_v1  ;;  %v17817_v1 = vld [vmem:[#allocation2 + $0x152] sm:$0xff] }
 0x336   : > { %14427 = vmatprep.mubr.msk.f32.mxu1 %vm4175_vm3, %v17801_v59  ;;  %19795 = vst [vmem:[#allocation61_spill] sm:$0xff] %v17817_v1  ;;  %v17821_v59 = vld [vmem:[#allocation2 + $0x15a] sm:$0xff] }
 0x337   : > { %19796 = vst [vmem:[#allocation62_spill] sm:$0xff] %v17821_v59 }
 0x339   : > { %14428 = vmatmul.mubr.msk.f32.gmra.mrb[56].mxu1 %vm4175_vm3, %v17805_v13  ;;  %v17825_v13 = vld [vmem:[#allocation2 + $0x16a] sm:$0xff] }
 0x33a   : > { %14430 = vmatprep.mubr.msk.f32.mxu1 %vm4175_vm3, %v17809_v18  ;;  %v17829_v18 = vld [vmem:[#allocation2 + $0x172] sm:$0xff] }
 0x33b   : > { %19797 = vst [vmem:[#allocation63_spill] sm:$0xff] %v17829_v18 }
 0x33d   : > { %14431 = vmatmul.mubr.msk.f32.gmra.mrb[58].mxu1 %vm4175_vm3, %v17813_v16  ;;  %v12392_v16 = vld [vmem:[%s19466_s3 + $0x50] sm:$0xff] }
 0x33e   : > { %14433 = vmatprep.mubr.msk.f32.mxu1 %vm4175_vm3, %v17817_v1  ;;  %v12393_v1 = vld [vmem:[%s19466_s3 + $0x58] sm:$0xff] }
 0x341   : > { %14434 = vmatmul.mubr.msk.f32.gmra.mrb[60].mxu1 %vm4175_vm3, %v17821_v59  ;;  %v15313_v59 = vpack.c.bf16 %v12393_v1, %v12392_v16  ;;  %v12427_v16 = vld [vmem:[%s19466_s3 + $0x68] sm:$0xff] }
 0x342   : > { %14436 = vmatprep.mubr.msk.f32.mxu1 %vm4175_vm3, %v17825_v13 }
 0x345   : > { %14437 = vmatmul.mubr.msk.f32.gmra.mrb[62].mxu1 %vm4175_vm3, %v17829_v18 }
 0x346   : > { %14443 = vmatprep.mubr.msk.f32.mxu1 %vm4175_vm3, %v17579_v20  ;;  %v17904_v20 = vld [vmem:[#allocation2 + $0x188] sm:$0xff] }
 0x349   : > { %14444 = vmatmul.mubr.msk.f32.vlgmr.msra.gmra.mrb[32].mxu1 %vm4175_vm3, %v17585_v22  ;;  %v12426_v22 = vld [vmem:[%s19466_s3 + $0x60] sm:$0xff] }
 0x34a   : > { %15312 = vmatpush3.bf16.msra.mxu1 %v17708_v12  ;;  %14446 = vmatprep.mubr.msk.f32.mxu1 %vm4175_vm3, %v17589_v24  ;;  %v17900_v12 = vld [vmem:[#allocation2 + $0x180] sm:$0xff]  ;;  %v15317_v1 = vpack.c.bf16 %v12427_v16, %v12426_v22  ;;  %v19805_v22 = vld [vmem:[#allocation30_spill] sm:$0xff]  ;;  %v19806_v16 = vld [vmem:[#allocation31_spill] sm:$0xff] }
 0x34b   : > { %15314 = vmatprep.subr.bf16.mxu1 %v15313_v59 }
 0x34d   : > { %14447 = vmatmul.mubr.msk.f32.gmra.mrb[34].mxu1 %vm4175_vm3, %v17593_v8 }
 0x34e   : > { %14449 = vmatprep.mubr.msk.f32.mxu1 %vm4175_vm3, %v17597_v10 }
 0x351   : > { %14450 = vmatmul.mubr.msk.f32.gmra.mrb[36].mxu1 %vm4175_vm3, %v17601_v28 }
 0x352   : > { %14452 = vmatprep.mubr.msk.f32.mxu1 %vm4175_vm3, %v17605_v37 }
 0x355   : > { %14453 = vmatmul.mubr.msk.f32.gmra.mrb[38].mxu1 %vm4175_vm3, %v17609_v38 }
 0x356   : > { %14455 = vmatprep.mubr.msk.f32.mxu1 %vm4175_vm3, %v17613_v46 }
 0x359   : > { %14456 = vmatmul.mubr.msk.f32.gmra.mrb[40].mxu1 %vm4175_vm3, %v17617_v21 }
 0x35a   : > { %14458 = vmatprep.mubr.msk.f32.mxu1 %vm4175_vm3, %v17621_v48 }
 0x35d   : > { %14459 = vmatmul.mubr.msk.f32.gmra.mrb[42].mxu1 %vm4175_vm3, %v17625_v17 }
 0x35e   : > { %14461 = vmatprep.mubr.msk.f32.mxu1 %vm4175_vm3, %v17629_v40 }
 0x361   : > { %14462 = vmatmul.mubr.msk.f32.gmra.mrb[44].mxu1 %vm4175_vm3, %v17633_v11 }
 0x362   : > { %14464 = vmatprep.mubr.msk.f32.mxu1 %vm4175_vm3, %v17637_v5 }
 0x365   : > { %14465 = vmatmul.mubr.msk.f32.gmra.mrb[46].mxu1 %vm4175_vm3, %v17641_v47 }
 0x366   : > { %14467 = vmatprep.mubr.msk.f32.mxu1 %vm4175_vm3, %v17645_v42 }
 0x369   : > { %14468 = vmatmul.mubr.msk.f32.gmra.mrb[48].mxu1 %vm4175_vm3, %v17649_v4 }
 0x36a   : > { %14470 = vmatprep.mubr.msk.f32.mxu1 %vm4175_vm3, %v17653_v2 }
 0x36d   : > { %14471 = vmatmul.mubr.msk.f32.gmra.mrb[50].mxu1 %vm4175_vm3, %v17657_v0 }
 0x36e   : > { %14473 = vmatprep.mubr.msk.f32.mxu1 %vm4175_vm3, %v17661_v29 }
 0x371   : > { %14474 = vmatmul.mubr.msk.f32.gmra.mrb[52].mxu1 %vm4175_vm3, %v17665_v56 }
 0x372   : > { %14476 = vmatprep.mubr.msk.f32.mxu1 %vm4175_vm3, %v17669_v55 }
 0x375   : > { %14477 = vmatmul.mubr.msk.f32.gmra.mrb[54].mxu1 %vm4175_vm3, %v17673_v58 }
 0x376   : > { %14479 = vmatprep.mubr.msk.f32.mxu1 %vm4175_vm3, %v17677_v39 }
 0x379   : > { %14480 = vmatmul.mubr.msk.f32.gmra.mrb[56].mxu1 %vm4175_vm3, %v17681_v49 }
 0x37a   : > { %14482 = vmatprep.mubr.msk.f32.mxu1 %vm4175_vm3, %v17685_v61 }
 0x37d   : > { %14483 = vmatmul.mubr.msk.f32.gmra.mrb[58].mxu1 %vm4175_vm3, %v17689_v34 }
 0x37e   : > { %14485 = vmatprep.mubr.msk.f32.mxu1 %vm4175_vm3, %v17693_v63 }
 0x381   : > { %14486 = vmatmul.mubr.msk.f32.gmra.mrb[60].mxu1 %vm4175_vm3, %v17697_v14 }
 0x382   : > { %14488 = vmatprep.mubr.msk.f32.mxu1 %vm4175_vm3, %v17900_v12 }
 0x385   : > { %14489 = vmatmul.mubr.msk.f32.gmra.mrb[62].mxu1 %vm4175_vm3, %v17904_v20 }
 0x386   : > { %14495 = vmatprep.mubr.msk.f32.mxu1 %vm4175_vm3, %v17420_v3  ;;  %v19798_v3 = vld [vmem:[#allocation65_spill] sm:$0xff] }
 0x389   : > { %14496 = vmatmul.mubr.msk.f32.vlgmr.msra.gmra.mrb[32].mxu1 %vm4175_vm3, %v17426_v26  ;;  %v19799_v26 = vld [vmem:[#allocation66_spill] sm:$0xff] }
 0x38a   : > { %15316 = vmatpush3.bf16.msra.mxu1 %v15313_v59  ;;  %14498 = vmatprep.mubr.msk.f32.mxu1 %vm4175_vm3, %v17428_v27  ;;  %v19800_v27 = vld [vmem:[#allocation25_spill] sm:$0xff] }
 0x38b   : > { %15318 = vmatprep.subr.bf16.mxu1 %v15317_v1  ;;  %v19804_v59 = vld [vmem:[#allocation29_spill] sm:$0xff] }
 0x38d   : > { %14499 = vmatmul.mubr.msk.f32.gmra.mrb[34].mxu1 %vm4175_vm3, %v17436_v32  ;;  %v19801_v32 = vld [vmem:[#allocation28_spill] sm:$0xff] }
 0x38e   : > { %14501 = vmatprep.mubr.msk.f32.mxu1 %vm4175_vm3, %v17438_v30  ;;  %v17974_v30 = vld [vmem:[#allocation2 + $0x181] sm:$0xff] }
 0x38f   : > { %19802 = vst [vmem:[#allocation64_spill] sm:$0xff] %v17974_v30 }
 0x391   : > { %14502 = vmatmul.mubr.msk.f32.gmra.mrb[36].mxu1 %vm4175_vm3, %v17446_v25  ;;  %v17978_v25 = vld [vmem:[#allocation2 + $0x189] sm:$0xff] }
 0x392   : > { %14504 = vmatprep.mubr.msk.f32.mxu1 %vm4175_vm3, %v17448_v23  ;;  %19803 = vst [vmem:[#allocation67_spill] sm:$0xff] %v17978_v25  ;;  %v12460_v23 = vld [vmem:[%s19466_s3 + $0x70] sm:$0xff] }
 0x395   : > { %14505 = vmatmul.mubr.msk.f32.gmra.mrb[38].mxu1 %vm4175_vm3, %v17456_v19  ;;  %v12461_v19 = vld [vmem:[%s19466_s3 + $0x78] sm:$0xff] }
 0x396   : > { %14507 = vmatprep.mubr.msk.f32.mxu1 %vm4175_vm3, %v17458_v35  ;;  %v15321_v35 = vpack.c.bf16 %v12461_v19, %v12460_v23  ;;  %v19812_v23 = vld [vmem:[#allocation45_spill] sm:$0xff]  ;;  %v19813_v19 = vld [vmem:[#allocation46_spill] sm:$0xff] }
 0x399   : > { %14508 = vmatmul.mubr.msk.f32.gmra.mrb[40].mxu1 %vm4175_vm3, %v17466_v15 }
 0x39a   : > { %14510 = vmatprep.mubr.msk.f32.mxu1 %vm4175_vm3, %v17468_v50 }
 0x39d   : > { %14511 = vmatmul.mubr.msk.f32.gmra.mrb[42].mxu1 %vm4175_vm3, %v17476_v7 }
 0x39e   : > { %14513 = vmatprep.mubr.msk.f32.mxu1 %vm4175_vm3, %v17478_v41 }
 0x3a1   : > { %14514 = vmatmul.mubr.msk.f32.gmra.mrb[44].mxu1 %vm4175_vm3, %v17486_v52 }
 0x3a2   : > { %14516 = vmatprep.mubr.msk.f32.mxu1 %vm4175_vm3, %v17488_v9 }
 0x3a5   : > { %14517 = vmatmul.mubr.msk.f32.gmra.mrb[46].mxu1 %vm4175_vm3, %v17496_v54 }
 0x3a6   : > { %14519 = vmatprep.mubr.msk.f32.mxu1 %vm4175_vm3, %v17498_v44 }
 0x3a9   : > { %14520 = vmatmul.mubr.msk.f32.gmra.mrb[48].mxu1 %vm4175_vm3, %v17506_v62 }
 0x3aa   : > { %14522 = vmatprep.mubr.msk.f32.mxu1 %vm4175_vm3, %v17508_v60 }
 0x3ad   : > { %14523 = vmatmul.mubr.msk.f32.gmra.mrb[50].mxu1 %vm4175_vm3, %v17516_v57 }
 0x3ae   : > { %14525 = vmatprep.mubr.msk.f32.mxu1 %vm4175_vm3, %v17518_v43 }
 0x3b1   : > { %14526 = vmatmul.mubr.msk.f32.gmra.mrb[52].mxu1 %vm4175_vm3, %v17526_v53 }
 0x3b2   : > { %14528 = vmatprep.mubr.msk.f32.mxu1 %vm4175_vm3, %v17528_v51 }
 0x3b5   : > { %14529 = vmatmul.mubr.msk.f32.gmra.mrb[54].mxu1 %vm4175_vm3, %v17536_v45 }
 0x3b6   : > { %14531 = vmatprep.mubr.msk.f32.mxu1 %vm4175_vm3, %v17538_v31 }
 0x3b9   : > { %14532 = vmatmul.mubr.msk.f32.gmra.mrb[56].mxu1 %vm4175_vm3, %v17546_v6 }
 0x3ba   : > { %14534 = vmatprep.mubr.msk.f32.mxu1 %vm4175_vm3, %v19798_v3 }
 0x3bd   : > { %14535 = vmatmul.mubr.msk.f32.gmra.mrb[58].mxu1 %vm4175_vm3, %v19799_v26 }
 0x3be   : > { %14537 = vmatprep.mubr.msk.f32.mxu1 %vm4175_vm3, %v19800_v27 }
 0x3c1   : > { %14538 = vmatmul.mubr.msk.f32.gmra.mrb[60].mxu1 %vm4175_vm3, %v19801_v32 }
 0x3c2   : > { %14540 = vmatprep.mubr.msk.f32.mxu1 %vm4175_vm3, %v17974_v30  ;;  %v19807_v30 = vld [vmem:[#allocation38_spill] sm:$0xff] }
 0x3c5   : > { %14541 = vmatmul.mubr.msk.f32.gmra.mrb[62].mxu1 %vm4175_vm3, %v17978_v25  ;;  %v19808_v25 = vld [vmem:[#allocation41_spill] sm:$0xff] }
 0x3c6   : > { %14547 = vmatprep.mubr.msk.f32.mxu1 %vm4175_vm3, %v17711_v33  ;;  %v19809_v33 = vld [vmem:[#allocation42_spill] sm:$0xff] }
 0x3c9   : > { %14548 = vmatmul.mubr.msk.f32.vlgmr.msra.gmra.mrb[32].mxu1 %vm4175_vm3, %v17717_v36  ;;  %v19810_v36 = vld [vmem:[#allocation43_spill] sm:$0xff] }
 0x3ca   : > { %15320 = vmatpush3.bf16.msra.mxu1 %v15317_v1  ;;  %14550 = vmatprep.mubr.msk.f32.mxu1 %vm4175_vm3, %v19804_v59  ;;  %v19811_v1 = vld [vmem:[#allocation44_spill] sm:$0xff] }
 0x3cb   : > { %15322 = vmatprep.subr.bf16.mxu1 %v15321_v35 }
 0x3cd   : > { %14551 = vmatmul.mubr.msk.f32.gmra.mrb[34].mxu1 %vm4175_vm3, %v19805_v22 }
 0x3ce   : > { %14553 = vmatprep.mubr.msk.f32.mxu1 %vm4175_vm3, %v19806_v16  ;;  %v19814_v16 = vld [vmem:[#allocation47_spill] sm:$0xff] }
 0x3d1   : > { %14554 = vmatmul.mubr.msk.f32.gmra.mrb[36].mxu1 %vm4175_vm3, %v19807_v30  ;;  %v19815_v30 = vld [vmem:[#allocation48_spill] sm:$0xff] }
 0x3d2   : > { %14556 = vmatprep.mubr.msk.f32.mxu1 %vm4175_vm3, %v19808_v25  ;;  %v19816_v25 = vld [vmem:[#allocation49_spill] sm:$0xff] }
 0x3d5   : > { %14557 = vmatmul.mubr.msk.f32.gmra.mrb[38].mxu1 %vm4175_vm3, %v19809_v33  ;;  %v19817_v33 = vld [vmem:[#allocation50_spill] sm:$0xff] }
 0x3d6   : > { %14559 = vmatprep.mubr.msk.f32.mxu1 %vm4175_vm3, %v19810_v36  ;;  %v19818_v36 = vld [vmem:[#allocation51_spill] sm:$0xff] }
 0x3d9   : > { %14560 = vmatmul.mubr.msk.f32.gmra.mrb[40].mxu1 %vm4175_vm3, %v19811_v1  ;;  %v19819_v1 = vld [vmem:[#allocation52_spill] sm:$0xff] }
 0x3da   : > { %14562 = vmatprep.mubr.msk.f32.mxu1 %vm4175_vm3, %v19812_v23  ;;  %v19820_v23 = vld [vmem:[#allocation53_spill] sm:$0xff] }
 0x3dd   : > { %14563 = vmatmul.mubr.msk.f32.gmra.mrb[42].mxu1 %vm4175_vm3, %v19813_v19  ;;  %v19821_v19 = vld [vmem:[#allocation54_spill] sm:$0xff] }
 0x3de   : > { %14565 = vmatprep.mubr.msk.f32.mxu1 %vm4175_vm3, %v19814_v16  ;;  %v19822_v16 = vld [vmem:[#allocation55_spill] sm:$0xff] }
 0x3e1   : > { %14566 = vmatmul.mubr.msk.f32.gmra.mrb[44].mxu1 %vm4175_vm3, %v19815_v30  ;;  %v19823_v30 = vld [vmem:[#allocation56_spill] sm:$0xff] }
 0x3e2   : > { %14568 = vmatprep.mubr.msk.f32.mxu1 %vm4175_vm3, %v19816_v25  ;;  %v19824_v25 = vld [vmem:[#allocation57_spill] sm:$0xff] }
 0x3e5   : > { %14569 = vmatmul.mubr.msk.f32.gmra.mrb[46].mxu1 %vm4175_vm3, %v19817_v33  ;;  %v19825_v33 = vld [vmem:[#allocation58_spill] sm:$0xff] }
 0x3e6   : > { %14571 = vmatprep.mubr.msk.f32.mxu1 %vm4175_vm3, %v19818_v36  ;;  %v19826_v36 = vld [vmem:[#allocation59_spill] sm:$0xff] }
 0x3e9   : > { %14572 = vmatmul.mubr.msk.f32.gmra.mrb[48].mxu1 %vm4175_vm3, %v19819_v1  ;;  %v19827_v1 = vld [vmem:[#allocation60_spill] sm:$0xff] }
 0x3ea   : > { %14574 = vmatprep.mubr.msk.f32.mxu1 %vm4175_vm3, %v19820_v23  ;;  %v19828_v23 = vld [vmem:[#allocation61_spill] sm:$0xff] }
 0x3ed   : > { %14575 = vmatmul.mubr.msk.f32.gmra.mrb[50].mxu1 %vm4175_vm3, %v19821_v19  ;;  %v19829_v19 = vld [vmem:[#allocation62_spill] sm:$0xff] }
 0x3ee   : > { %14577 = vmatprep.mubr.msk.f32.mxu1 %vm4175_vm3, %v19822_v16 }
 0x3f1   : > { %14578 = vmatmul.mubr.msk.f32.gmra.mrb[52].mxu1 %vm4175_vm3, %v19823_v30 }
 0x3f2   : > { %14580 = vmatprep.mubr.msk.f32.mxu1 %vm4175_vm3, %v19824_v25  ;;  %v18048_v25 = vld [vmem:[#allocation2 + $0x182] sm:$0xff] }
 0x3f5   : > { %14581 = vmatmul.mubr.msk.f32.gmra.mrb[54].mxu1 %vm4175_vm3, %v19825_v33 }
 0x3f6   : > { %14583 = vmatprep.mubr.msk.f32.mxu1 %vm4175_vm3, %v19826_v36  ;;  %v18052_v36 = vld [vmem:[#allocation2 + $0x18a] sm:$0xff] }
 0x3f9   : > { %14584 = vmatmul.mubr.msk.f32.gmra.mrb[56].mxu1 %vm4175_vm3, %v19827_v1 }
 0x3fa   : > { %14586 = vmatprep.mubr.msk.f32.mxu1 %vm4175_vm3, %v19828_v23  ;;  %v12494_v23 = vld [vmem:[%s19466_s3 + $0x80] sm:$0xff] }
 0x3fd   : > { %14587 = vmatmul.mubr.msk.f32.gmra.mrb[58].mxu1 %vm4175_vm3, %v19829_v19  ;;  %v12495_v19 = vld [vmem:[%s19466_s3 + $0x88] sm:$0xff] }
 0x3fe   : > { %14589 = vmatprep.mubr.msk.f32.mxu1 %vm4175_vm3, %v17825_v13 }
 0x401   : > { %14590 = vmatmul.mubr.msk.f32.gmra.mrb[60].mxu1 %vm4175_vm3, %v17829_v18  ;;  %v15325_v18 = vpack.c.bf16 %v12495_v19, %v12494_v23 }
 0x402   : > { %14592 = vmatprep.mubr.msk.f32.mxu1 %vm4175_vm3, %v18048_v25 }
 0x405   : > { %14593 = vmatmul.mubr.msk.f32.gmra.mrb[62].mxu1 %vm4175_vm3, %v18052_v36 }
 0x406   : > { %14599 = vmatprep.mubr.msk.f32.mxu1 %vm4175_vm3, %v17589_v24  ;;  %v6400_v24 = vld [vmem:[#allocation2 + $0x198] sm:$0xff] }
 0x409   : > { %14600 = vmatmul.mubr.msk.f32.vlgmr.msra.gmra.mrb[32].mxu1 %vm4175_vm3, %v17593_v8  ;;  %v6401_v8 = vld [vmem:[#allocation2 + $0x1a0] sm:$0xff] }
 0x40a   : > { %15324 = vmatpush3.bf16.msra.mxu1 %v15321_v35  ;;  %14602 = vmatprep.mubr.msk.f32.mxu1 %vm4175_vm3, %v17597_v10  ;;  %v6758_v10 = vld [vmem:[#allocation2 + $0x31] sm:$0xff] }
 0x40b   : > { %15326 = vmatprep.subr.bf16.mxu1 %v15325_v18 }
 0x40d   : > { %14603 = vmatmul.mubr.msk.f32.gmra.mrb[34].mxu1 %vm4175_vm3, %v17601_v28  ;;  %v6759_v28 = vld [vmem:[#allocation2 + $0x39] sm:$0xff] }
 0x40e   : > { %14605 = vmatprep.mubr.msk.f32.mxu1 %vm4175_vm3, %v17605_v37  ;;  %v6760_v37 = vld [vmem:[#allocation2 + $0x49] sm:$0xff] }
 0x411   : > { %14606 = vmatmul.mubr.msk.f32.gmra.mrb[36].mxu1 %vm4175_vm3, %v17609_v38  ;;  %v6761_v38 = vld [vmem:[#allocation2 + $0x51] sm:$0xff] }
 0x412   : > { %14608 = vmatprep.mubr.msk.f32.mxu1 %vm4175_vm3, %v17613_v46  ;;  %v6762_v46 = vld [vmem:[#allocation2 + $0x61] sm:$0xff] }
 0x415   : > { %14609 = vmatmul.mubr.msk.f32.gmra.mrb[38].mxu1 %vm4175_vm3, %v17617_v21  ;;  %v6763_v21 = vld [vmem:[#allocation2 + $0x69] sm:$0xff] }
 0x416   : > { %14611 = vmatprep.mubr.msk.f32.mxu1 %vm4175_vm3, %v17621_v48  ;;  %v6764_v48 = vld [vmem:[#allocation2 + $0x79] sm:$0xff] }
 0x419   : > { %14612 = vmatmul.mubr.msk.f32.gmra.mrb[40].mxu1 %vm4175_vm3, %v17625_v17  ;;  %v19845_v17 = vld [vmem:[#allocation52_spill] sm:$0xff] }
 0x41a   : > { %14614 = vmatprep.mubr.msk.f32.mxu1 %vm4175_vm3, %v17629_v40  ;;  %v19846_v40 = vld [vmem:[#allocation53_spill] sm:$0xff] }
 0x41d   : > { %14615 = vmatmul.mubr.msk.f32.gmra.mrb[42].mxu1 %vm4175_vm3, %v17633_v11  ;;  %v19847_v11 = vld [vmem:[#allocation54_spill] sm:$0xff] }
 0x41e   : > { %14617 = vmatprep.mubr.msk.f32.mxu1 %vm4175_vm3, %v17637_v5  ;;  %v19848_v5 = vld [vmem:[#allocation57_spill] sm:$0xff] }
 0x421   : > { %14618 = vmatmul.mubr.msk.f32.gmra.mrb[44].mxu1 %vm4175_vm3, %v17641_v47  ;;  %v19849_v47 = vld [vmem:[#allocation59_spill] sm:$0xff] }
 0x422   : > { %14620 = vmatprep.mubr.msk.f32.mxu1 %vm4175_vm3, %v17645_v42  ;;  %v19850_v42 = vld [vmem:[#allocation61_spill] sm:$0xff] }
 0x425   : > { %14621 = vmatmul.mubr.msk.f32.gmra.mrb[46].mxu1 %vm4175_vm3, %v17649_v4  ;;  %v19851_v4 = vld [vmem:[#allocation62_spill] sm:$0xff] }
 0x426   : > { %14623 = vmatprep.mubr.msk.f32.mxu1 %vm4175_vm3, %v17653_v2  ;;  %v19852_v2 = vld [vmem:[#allocation63_spill] sm:$0xff] }
 0x429   : > { %14624 = vmatmul.mubr.msk.f32.gmra.mrb[48].mxu1 %vm4175_vm3, %v17657_v0  ;;  %v7176_v0 = vld [vmem:[#allocation2 + $0x19a] sm:$0xff] }
 0x42a   : > { %14626 = vmatprep.mubr.msk.f32.mxu1 %vm4175_vm3, %v17661_v29  ;;  %v7177_v29 = vld [vmem:[#allocation2 + $0x1a2] sm:$0xff] }
 0x42d   : > { %14627 = vmatmul.mubr.msk.f32.gmra.mrb[50].mxu1 %vm4175_vm3, %v17665_v56  ;;  %v12529_v56 = vld [vmem:[%s19468_s5 + $0x18] sm:$0xff] }
 0x42e   : > { %14629 = vmatprep.mubr.msk.f32.mxu1 %vm4175_vm3, %v17669_v55  ;;  %v12530_v55 = vld [vmem:[%s19468_s5 + $0x20] sm:$0xff] }
 0x431   : > { %14630 = vmatmul.mubr.msk.f32.gmra.mrb[52].mxu1 %vm4175_vm3, %v17673_v58  ;;  %v15329_v58 = vpack.c.bf16 %v12530_v55, %v12529_v56 }
 0x432   : > { %14632 = vmatprep.mubr.msk.f32.mxu1 %vm4175_vm3, %v17677_v39  ;;  %v12531_v39 = vld [vmem:[%s19468_s5 + $0x28] sm:$0xff] }
 0x433   : > { %15330 = vmatprep.subr.bf16.mxu0 %v15329_v58 }
 0x434   : > { %15332 = vmatpush3.bf16.msra.mxu0 %v15329_v58 }
 0x435   : > { %14633 = vmatmul.mubr.msk.f32.gmra.mrb[54].mxu1 %vm4175_vm3, %v17681_v49  ;;  %14755 = vmatprep.subr.mxu0 %v12531_v39  ;;  %v7801_v49 = vld [vmem:[#allocation2 + $0x1] sm:$0xff] }
 0x436   : > { %14635 = vmatprep.mubr.msk.f32.mxu1 %vm4175_vm3, %v17685_v61  ;;  %v7798_v61 = vld [vmem:[%s19468_s5] sm:$0xff]  ;;  %14757 = vmatprep.mubr.msk.f32.mxu0 %vm7837_vm5, %v7801_v49 }
 0x438   : > { %14756 = vmatpush3.msra.mxu0 %v12531_v39 }
 0x439   : > { %14636 = vmatmul.mubr.msk.f32.gmra.mrb[56].mxu1 %vm4175_vm3, %v17689_v34  ;;  %v7799_v34 = vld [vmem:[%s19468_s5 + $0x8] sm:$0xff] }
 0x43a   : > { %14638 = vmatprep.mubr.msk.f32.mxu1 %vm4175_vm3, %v17693_v63  ;;  %v15333_v63 = vpack.c.bf16 %v7799_v34, %v7798_v61 }
 0x43c   : > { %15334 = vmatprep.subr.bf16.mxu0 %v15333_v63 }
 0x43d   : > { %14639 = vmatmul.mubr.msk.f32.gmra.mrb[58].mxu1 %vm4175_vm3, %v17697_v14  ;;  %v7802_v14 = vld [vmem:[#allocation2 + $0x9] sm:$0xff] }
 0x43e   : > { %14641 = vmatprep.mubr.msk.f32.mxu1 %vm4175_vm3, %v17900_v12  ;;  %14758 = vmatmul.mubr.msk.f32.vlgmr.msra.gmra.mrb[32].mxu0 %vm7837_vm5, %v7802_v14 }
 0x43f   : > { %15336 = vmatpush3.bf16.msra.mxu0 %v15333_v63 }
 0x441   : > { %14642 = vmatmul.mubr.msk.f32.gmra.mrb[60].mxu1 %vm4175_vm3, %v17904_v20 }
 0x442   : > { %14644 = vmatprep.mubr.msk.f32.mxu1 %vm4175_vm3, %v6400_v24 }
 0x445   : > { %14645 = vmatmul.mubr.msk.f32.gmra.mrb[62].mxu1 %vm4175_vm3, %v6401_v8 }
 0x446   : > { %14651 = vmatprep.mubr.msk.f32.mxu1 %vm4175_vm3, %v6758_v10 }
 0x449   : > { %14652 = vmatmul.mubr.msk.f32.vlgmr.msra.gmra.mrb[32].mxu1 %vm4175_vm3, %v6759_v28 }
 0x44a   : > { %15328 = vmatpush3.bf16.msra.mxu1 %v15325_v18  ;;  %14654 = vmatprep.mubr.msk.f32.mxu1 %vm4175_vm3, %v6760_v37 }
 0x44d   : > { %14655 = vmatmul.mubr.msk.f32.gmra.mrb[34].mxu1 %vm4175_vm3, %v6761_v38 }
 0x44e   : > { %14657 = vmatprep.mubr.msk.f32.mxu1 %vm4175_vm3, %v6762_v46 }
 0x451   : > { %14658 = vmatmul.mubr.msk.f32.gmra.mrb[36].mxu1 %vm4175_vm3, %v6763_v21 }
 0x452   : > { %14660 = vmatprep.mubr.msk.f32.mxu1 %vm4175_vm3, %v6764_v48 }
 0x455   : > { %14661 = vmatmul.mubr.msk.f32.gmra.mrb[38].mxu1 %vm4175_vm3, %v17466_v15  ;;  %v19830_v15 = vld [vmem:[#allocation64_spill] sm:$0xff] }
 0x456   : > { %14663 = vmatprep.mubr.msk.f32.mxu1 %vm4175_vm3, %v17468_v50  ;;  %v6788_v50 = vld [vmem:[#allocation2 + $0x199] sm:$0xff] }
 0x459   : > { %14664 = vmatmul.mubr.msk.f32.gmra.mrb[40].mxu1 %vm4175_vm3, %v17476_v7  ;;  %v19831_v7 = vld [vmem:[#allocation67_spill] sm:$0xff] }
 0x45a   : > { %14666 = vmatprep.mubr.msk.f32.mxu1 %vm4175_vm3, %v17478_v41  ;;  %v6789_v41 = vld [vmem:[#allocation2 + $0x1a1] sm:$0xff] }
 0x45d   : > { %14667 = vmatmul.mubr.msk.f32.gmra.mrb[42].mxu1 %vm4175_vm3, %v17486_v52  ;;  %v19832_v52 = vld [vmem:[#allocation31_spill] sm:$0xff] }
 0x45e   : > { %14669 = vmatprep.mubr.msk.f32.mxu1 %vm4175_vm3, %v17488_v9  ;;  %v19833_v9 = vld [vmem:[#allocation38_spill] sm:$0xff] }
 0x461   : > { %14670 = vmatmul.mubr.msk.f32.gmra.mrb[44].mxu1 %vm4175_vm3, %v17496_v54  ;;  %v19834_v54 = vld [vmem:[#allocation41_spill] sm:$0xff] }
 0x462   : > { %14672 = vmatprep.mubr.msk.f32.mxu1 %vm4175_vm3, %v17498_v44  ;;  %v19835_v44 = vld [vmem:[#allocation42_spill] sm:$0xff] }
 0x465   : > { %14673 = vmatmul.mubr.msk.f32.gmra.mrb[46].mxu1 %vm4175_vm3, %v17506_v62  ;;  %v19836_v62 = vld [vmem:[#allocation43_spill] sm:$0xff] }
 0x466   : > { %14675 = vmatprep.mubr.msk.f32.mxu1 %vm4175_vm3, %v17508_v60  ;;  %v19837_v60 = vld [vmem:[#allocation44_spill] sm:$0xff] }
 0x469   : > { %14676 = vmatmul.mubr.msk.f32.gmra.mrb[48].mxu1 %vm4175_vm3, %v17516_v57  ;;  %v19838_v57 = vld [vmem:[#allocation45_spill] sm:$0xff] }
 0x46a   : > { %14678 = vmatprep.mubr.msk.f32.mxu1 %vm4175_vm3, %v17518_v43  ;;  %v19839_v43 = vld [vmem:[#allocation46_spill] sm:$0xff] }
 0x46d   : > { %14679 = vmatmul.mubr.msk.f32.gmra.mrb[50].mxu1 %vm4175_vm3, %v17526_v53  ;;  %v19840_v53 = vld [vmem:[#allocation47_spill] sm:$0xff] }
 0x46e   : > { %14681 = vmatprep.mubr.msk.f32.mxu1 %vm4175_vm3, %v17528_v51  ;;  %v19841_v51 = vld [vmem:[#allocation48_spill] sm:$0xff] }
 0x471   : > { %14682 = vmatmul.mubr.msk.f32.gmra.mrb[52].mxu1 %vm4175_vm3, %v17536_v45  ;;  %v19842_v45 = vld [vmem:[#allocation49_spill] sm:$0xff] }
 0x472   : > { %14684 = vmatprep.mubr.msk.f32.mxu1 %vm4175_vm3, %v17538_v31  ;;  %v19843_v31 = vld [vmem:[#allocation50_spill] sm:$0xff] }
 0x475   : > { %14685 = vmatmul.mubr.msk.f32.gmra.mrb[54].mxu1 %vm4175_vm3, %v17546_v6  ;;  %v19844_v6 = vld [vmem:[#allocation51_spill] sm:$0xff] }
 0x476   : > { %14687 = vmatprep.mubr.msk.f32.mxu1 %vm4175_vm3, %v19798_v3 }
 0x479   : > { %14688 = vmatmul.mubr.msk.f32.gmra.mrb[56].mxu1 %vm4175_vm3, %v19799_v26 }
 0x47a   : > { %14690 = vmatprep.mubr.msk.f32.mxu1 %vm4175_vm3, %v19800_v27 }
 0x47d   : > { %14691 = vmatmul.mubr.msk.f32.gmra.mrb[58].mxu1 %vm4175_vm3, %v19801_v32 }
 0x47e   : > { %14693 = vmatprep.mubr.msk.f32.mxu1 %vm4175_vm3, %v19830_v15 }
 0x481   : > { %14694 = vmatmul.mubr.msk.f32.gmra.mrb[60].mxu1 %vm4175_vm3, %v19831_v7 }
 0x482   : > { %14696 = vmatprep.mubr.msk.f32.mxu1 %vm4175_vm3, %v6788_v50 }
 0x485   : > { %14697 = vmatmul.mubr.msk.f32.gmra.mrb[62].mxu1 %vm4175_vm3, %v6789_v41 }
 0x486   : > { %14703 = vmatprep.mubr.msk.f32.mxu1 %vm4175_vm3, %v19804_v59 }
 0x489   : > { %14704 = vmatmul.mubr.msk.f32.vlgmr.msra.gmra.mrb[32].mxu1 %vm4175_vm3, %v19805_v22 }
 0x48a   : > { %14706 = vmatprep.mubr.msk.f32.mxu1 %vm4175_vm3, %v19832_v52 }
 0x48d   : > { %14707 = vmatmul.mubr.msk.f32.gmra.mrb[34].mxu1 %vm4175_vm3, %v19833_v9 }
 0x48e   : > { %14709 = vmatprep.mubr.msk.f32.mxu1 %vm4175_vm3, %v19834_v54 }
 0x491   : > { %14710 = vmatmul.mubr.msk.f32.gmra.mrb[36].mxu1 %vm4175_vm3, %v19835_v44 }
 0x492   : > { %14712 = vmatprep.mubr.msk.f32.mxu1 %vm4175_vm3, %v19836_v62 }
 0x495   : > { %14713 = vmatmul.mubr.msk.f32.gmra.mrb[38].mxu1 %vm4175_vm3, %v19837_v60 }
 0x496   : > { %14715 = vmatprep.mubr.msk.f32.mxu1 %vm4175_vm3, %v19838_v57 }
 0x499   : > { %14716 = vmatmul.mubr.msk.f32.gmra.mrb[40].mxu1 %vm4175_vm3, %v19839_v43 }
 0x49a   : > { %14718 = vmatprep.mubr.msk.f32.mxu1 %vm4175_vm3, %v19840_v53 }
 0x49d   : > { %14719 = vmatmul.mubr.msk.f32.gmra.mrb[42].mxu1 %vm4175_vm3, %v19841_v51 }
 0x49e   : > { %14721 = vmatprep.mubr.msk.f32.mxu1 %vm4175_vm3, %v19842_v45 }
 0x4a1   : > { %14722 = vmatmul.mubr.msk.f32.gmra.mrb[44].mxu1 %vm4175_vm3, %v19843_v31 }
 0x4a2   : > { %14724 = vmatprep.mubr.msk.f32.mxu1 %vm4175_vm3, %v19844_v6 }
 0x4a5   : > { %14725 = vmatmul.mubr.msk.f32.gmra.mrb[46].mxu1 %vm4175_vm3, %v19845_v17 }
 0x4a6   : > { %14727 = vmatprep.mubr.msk.f32.mxu1 %vm4175_vm3, %v19846_v40  ;;  %v7800_v40 = vld [vmem:[%s19468_s5 + $0x10] sm:$0xff] }
 0x4a7   : > { %14809 = vmatprep.subr.mxu0 %v7800_v40 }
 0x4a8   : > { %14810 = vmatpush3.msra.mxu0 %v7800_v40 }
 0x4a9   : > { %14728 = vmatmul.mubr.msk.f32.gmra.mrb[48].mxu1 %vm4175_vm3, %v19847_v11 }
 0x4aa   : > { %14730 = vmatprep.mubr.msk.f32.mxu1 %vm4175_vm3, %v19822_v16 }
 0x4ad   : > { %14731 = vmatmul.mubr.msk.f32.gmra.mrb[50].mxu1 %vm4175_vm3, %v19823_v30 }
 0x4ae   : > { %14733 = vmatprep.mubr.msk.f32.mxu1 %vm4175_vm3, %v19848_v5 }
 0x4b1   : > { %14734 = vmatmul.mubr.msk.f32.gmra.mrb[52].mxu1 %vm4175_vm3, %v19825_v33 }
 0x4b2   : > { %14736 = vmatprep.mubr.msk.f32.mxu1 %vm4175_vm3, %v19849_v47 }
 0x4b5   : > { %14737 = vmatmul.mubr.msk.f32.gmra.mrb[54].mxu1 %vm4175_vm3, %v19827_v1 }
 0x4b6   : > { %14739 = vmatprep.mubr.msk.f32.mxu1 %vm4175_vm3, %v19850_v42 }
 0x4b9   : > { %14740 = vmatmul.mubr.msk.f32.gmra.mrb[56].mxu1 %vm4175_vm3, %v19851_v4 }
 0x4ba   : > { %14742 = vmatprep.mubr.msk.f32.mxu1 %vm4175_vm3, %v17825_v13  ;;  %v18260_v13 = vld [vmem:[%s19467_s4] ss:$0 sm:$0xff] }
 0x4bd   : > { %14743 = vmatmul.mubr.msk.f32.gmra.mrb[58].mxu1 %vm4175_vm3, %v19852_v2 }
 0x4be   : > { %14745 = vmatprep.mubr.msk.f32.mxu1 %vm4175_vm3, %v18048_v25 }
 0x4c1   : > { %14746 = vmatmul.mubr.msk.f32.gmra.mrb[60].mxu1 %vm4175_vm3, %v18052_v36 }
 0x4c2   : > { %14748 = vmatprep.mubr.msk.f32.mxu1 %vm4175_vm3, %v7176_v0 }
 0x4c5   : > { %14749 = vmatmul.mubr.msk.f32.gmra.mrb[62].mxu1 %vm4175_vm3, %v7177_v29 }
 0x55c   : > { %v14705_v18 = vpop.f32.mrb[32].mxu1 }
 0x55d   : > { %v7542_v12 = vadd.f32 %v14705_v18, %v18260_v13  ;;  %v7343_v20 = vpop.f32.mrb[33].mxu1 }
 0x55e   : > { %v7541_v3 = vadd.f32 %v18260_v13, %v7343_v20 }
 0x55f   : > { %v7574_v26 = vmax.f32 %v7542_v12, 0.0 }
 0x560   : > { %v7573_v27 = vmax.f32 %v7541_v3, 0.0  ;;  %v14708_v32 = vpop.f32.mrb[34].mxu1 }
 0x561   : > { %v7544_v30 = vadd.f32 %v14708_v32, %v18260_v13  ;;  %7639 = vrot.lane.b32.xlu1 %v7574_v26, %s16163_s11  ;;  %v7353_v25 = vpop.f32.mrb[35].mxu1 }
 0x562   : > { %v7543_v35 = vadd.f32 %v18260_v13, %v7353_v25  ;;  %7637 = vrot.lane.b32.xlu0 %v7573_v27, %s16163_s11 }
 0x563   : > { %v7576_v59 = vmax.f32 %v7544_v30, 0.0 }
 0x564   : > { %v7575_v22 = vmax.f32 %v7543_v35, 0.0  ;;  %v14711_v16 = vpop.f32.mrb[36].mxu1 }
 0x565   : > { %v7546_v33 = vadd.f32 %v14711_v16, %v18260_v13  ;;  %7643 = vrot.lane.b32.xlu1 %v7576_v59, %s16163_s11  ;;  %v7363_v36 = vpop.f32.mrb[37].mxu1 }
 0x566   : > { %v7545_v1 = vadd.f32 %v18260_v13, %v7363_v36  ;;  %7641 = vrot.lane.b32.xlu0 %v7575_v22, %s16163_s11 }
 0x567   : > { %v7578_v23 = vmax.f32 %v7546_v33, 0.0 }
 0x568   : > { %v7577_v19 = vmax.f32 %v7545_v1, 0.0  ;;  %v14714_v24 = vpop.f32.mrb[38].mxu1 }
 0x569   : > { %v7548_v8 = vadd.f32 %v14714_v24, %v18260_v13  ;;  %7647 = vrot.lane.b32.xlu1 %v7578_v23, %s16163_s11  ;;  %v7373_v10 = vpop.f32.mrb[39].mxu1 }
 0x56a   : > { %v7547_v28 = vadd.f32 %v18260_v13, %v7373_v10  ;;  %7645 = vrot.lane.b32.xlu0 %v7577_v19, %s16163_s11 }
 0x56b   : > { %v7580_v37 = vmax.f32 %v7548_v8, 0.0 }
 0x56c   : > { %v7579_v38 = vmax.f32 %v7547_v28, 0.0  ;;  %v14717_v46 = vpop.f32.mrb[40].mxu1 }
 0x56d   : > { %v7550_v21 = vadd.f32 %v14717_v46, %v18260_v13  ;;  %7651 = vrot.lane.b32.xlu1 %v7580_v37, %s16163_s11  ;;  %v7383_v48 = vpop.f32.mrb[41].mxu1 }
 0x56e   : > { %v7549_v15 = vadd.f32 %v18260_v13, %v7383_v48  ;;  %7649 = vrot.lane.b32.xlu0 %v7579_v38, %s16163_s11 }
 0x56f   : > { %v7582_v50 = vmax.f32 %v7550_v21, 0.0 }
 0x570   : > { %v7581_v7 = vmax.f32 %v7549_v15, 0.0  ;;  %v14720_v41 = vpop.f32.mrb[42].mxu1  ;;  %v12596_v15 = vld [vmem:[%s19468_s5 + $0x30] sm:$0xff] }
 0x571   : > { %v7552_v52 = vadd.f32 %v14720_v41, %v18260_v13  ;;  %7655 = vrot.lane.b32.xlu1 %v7582_v50, %s16163_s11  ;;  %v7393_v9 = vpop.f32.mrb[43].mxu1  ;;  %v12597_v50 = vld [vmem:[%s19468_s5 + $0x38] sm:$0xff] }
 0x572   : > { %v7551_v54 = vadd.f32 %v18260_v13, %v7393_v9  ;;  %7653 = vrot.lane.b32.xlu0 %v7581_v7, %s16163_s11 }
 0x573   : > { %v7584_v44 = vmax.f32 %v7552_v52, 0.0  ;;  %v18330_v52 = vpack.c.bf16 %v12597_v50, %v12596_v15 }
 0x574   : > { %v7583_v62 = vmax.f32 %v7551_v54, 0.0  ;;  %v14723_v60 = vpop.f32.mrb[44].mxu1 }
 0x575   : > { %v7554_v57 = vadd.f32 %v14723_v60, %v18260_v13  ;;  %7659 = vrot.lane.b32.xlu1 %v7584_v44, %s16163_s11  ;;  %v7403_v43 = vpop.f32.mrb[45].mxu1  ;;  %15338 = vmatprep.subr.bf16.mxu0 %v18330_v52 }
 0x576   : > { %v7553_v53 = vadd.f32 %v18260_v13, %v7403_v43  ;;  %7657 = vrot.lane.b32.xlu0 %v7583_v62, %s16163_s11 }
 0x577   : > { %v7586_v51 = vmax.f32 %v7554_v57, 0.0 }
 0x578   : > { %v7585_v45 = vmax.f32 %v7553_v53, 0.0  ;;  %v14726_v31 = vpop.f32.mrb[46].mxu1 }
 0x579   : > { %v7556_v6 = vadd.f32 %v14726_v31, %v18260_v13  ;;  %7663 = vrot.lane.b32.xlu1 %v7586_v51, %s16163_s11  ;;  %v7413_v17 = vpop.f32.mrb[47].mxu1 }
 0x57a   : > { %v7555_v11 = vadd.f32 %v18260_v13, %v7413_v17  ;;  %7661 = vrot.lane.b32.xlu0 %v7585_v45, %s16163_s11 }
 0x57b   : > { %v7588_v5 = vmax.f32 %v7556_v6, 0.0 }
 0x57c   : > { %v7587_v47 = vmax.f32 %v7555_v11, 0.0  ;;  %v14729_v42 = vpop.f32.mrb[48].mxu1 }
 0x57d   : > { %v7558_v4 = vadd.f32 %v14729_v42, %v18260_v13  ;;  %7667 = vrot.lane.b32.xlu1 %v7588_v5, %s16163_s11  ;;  %v7423_v2 = vpop.f32.mrb[49].mxu1 }
 0x57e   : > { %v7557_v0 = vadd.f32 %v18260_v13, %v7423_v2  ;;  %7665 = vrot.lane.b32.xlu0 %v7587_v47, %s16163_s11 }
 0x57f   : > { %v7590_v29 = vmax.f32 %v7558_v4, 0.0 }
 0x580   : > { %v7589_v56 = vmax.f32 %v7557_v0, 0.0  ;;  %v14732_v55 = vpop.f32.mrb[50].mxu1 }
 0x581   : > { %v7560_v58 = vadd.f32 %v14732_v55, %v18260_v13  ;;  %7671 = vrot.lane.b32.xlu1 %v7590_v29, %s16163_s11  ;;  %v7433_v39 = vpop.f32.mrb[51].mxu1 }
 0x582   : > { %v7559_v49 = vadd.f32 %v18260_v13, %v7433_v39  ;;  %7669 = vrot.lane.b32.xlu0 %v7589_v56, %s16163_s11 }
 0x583   : > { %v7592_v61 = vmax.f32 %v7560_v58, 0.0 }
 0x584   : > { %v7591_v34 = vmax.f32 %v7559_v49, 0.0  ;;  %v14735_v63 = vpop.f32.mrb[52].mxu1 }
 0x585   : > { %v7562_v14 = vadd.f32 %v14735_v63, %v18260_v13  ;;  %7675 = vrot.lane.b32.xlu1 %v7592_v61, %s16163_s11  ;;  %v7443_v18 = vpop.f32.mrb[53].mxu1 }
 0x586   : > { %v7561_v12 = vadd.f32 %v18260_v13, %v7443_v18  ;;  %7673 = vrot.lane.b32.xlu0 %v7591_v34, %s16163_s11 }
 0x587   : > { %v7594_v20 = vmax.f32 %v7562_v14, 0.0 }
 0x588   : > { %v7593_v3 = vmax.f32 %v7561_v12, 0.0  ;;  %v14738_v26 = vpop.f32.mrb[54].mxu1 }
 0x589   : > { %v7564_v27 = vadd.f32 %v14738_v26, %v18260_v13  ;;  %7679 = vrot.lane.b32.xlu1 %v7594_v20, %s16163_s11  ;;  %v7453_v32 = vpop.f32.mrb[55].mxu1 }
 0x58a   : > { %v7563_v30 = vadd.f32 %v18260_v13, %v7453_v32  ;;  %7677 = vrot.lane.b32.xlu0 %v7593_v3, %s16163_s11 }
 0x58b   : > { %v7596_v25 = vmax.f32 %v7564_v27, 0.0 }
 0x58c   : > { %v7595_v35 = vmax.f32 %v7563_v30, 0.0  ;;  %v14741_v59 = vpop.f32.mrb[56].mxu1 }
 0x58d   : > { %v7566_v22 = vadd.f32 %v14741_v59, %v18260_v13  ;;  %7683 = vrot.lane.b32.xlu1 %v7596_v25, %s16163_s11  ;;  %v7463_v16 = vpop.f32.mrb[57].mxu1 }
 0x58e   : > { %v7565_v33 = vadd.f32 %v18260_v13, %v7463_v16  ;;  %7681 = vrot.lane.b32.xlu0 %v7595_v35, %s16163_s11 }
 0x58f   : > { %v7598_v36 = vmax.f32 %v7566_v22, 0.0 }
 0x590   : > { %v7597_v1 = vmax.f32 %v7565_v33, 0.0  ;;  %v14744_v23 = vpop.f32.mrb[58].mxu1 }
 0x591   : > { %v7568_v19 = vadd.f32 %v14744_v23, %v18260_v13  ;;  %7687 = vrot.lane.b32.xlu1 %v7598_v36, %s16163_s11  ;;  %v7473_v24 = vpop.f32.mrb[59].mxu1 }
 0x592   : > { %v7567_v8 = vadd.f32 %v18260_v13, %v7473_v24  ;;  %7685 = vrot.lane.b32.xlu0 %v7597_v1, %s16163_s11 }
 0x593   : > { %v7600_v10 = vmax.f32 %v7568_v19, 0.0 }
 0x594   : > { %v7599_v28 = vmax.f32 %v7567_v8, 0.0  ;;  %v14747_v37 = vpop.f32.mrb[60].mxu1 }
 0x595   : > { %v7570_v38 = vadd.f32 %v14747_v37, %v18260_v13  ;;  %7691 = vrot.lane.b32.xlu1 %v7600_v10, %s16163_s11  ;;  %v7483_v46 = vpop.f32.mrb[61].mxu1 }
 0x596   : > { %v7569_v21 = vadd.f32 %v18260_v13, %v7483_v46  ;;  %7689 = vrot.lane.b32.xlu0 %v7599_v28, %s16163_s11 }
 0x597   : > { %v7602_v48 = vmax.f32 %v7570_v38, 0.0 }
 0x598   : > { %v7601_v7 = vmax.f32 %v7569_v21, 0.0  ;;  %v14750_v41 = vpop.f32.mrb[62].mxu1 }
 0x599   : > { %v7572_v9 = vadd.f32 %v14750_v41, %v18260_v13  ;;  %7695 = vrot.lane.b32.xlu1 %v7602_v48, %s16163_s11  ;;  %v7493_v54 = vpop.f32.mrb[63].mxu1 }
 0x59a   : > { %v7571_v44 = vadd.f32 %v18260_v13, %v7493_v54  ;;  %7693 = vrot.lane.b32.xlu0 %v7601_v7, %s16163_s11 }
 0x59b   : > { %v7604_v62 = vmax.f32 %v7572_v9, 0.0 }
 0x59c   : > { %v7603_v60 = vmax.f32 %v7571_v44, 0.0 }
 0x59d   : > { %7699 = vrot.lane.b32.xlu1 %v7604_v62, %s16163_s11  ;;  %v7766_v62 = vld [vmem:[#allocation2] sm:$0xff] }
 0x59e   : > { %7697 = vrot.lane.b32.xlu0 %v7603_v60, %s16163_s11 }
 0x5d3   : > { %v7640_v57 = vpop.permute.xlu1 %7639 }
 0x5d4   : > { %v7638_v43 = vpop.permute.xlu0 %7637  ;;  %7735 = vst.msk [vmem:[#allocation2 + $0x21] sm:$0xff] %vm7733_vm6, %v7640_v57  ;;  %v7767_v57 = vld [vmem:[#allocation2 + $0x8] sm:$0xff] }
 0x5d5   : > { %7734 = vst.msk [vmem:[#allocation2 + $0x19] sm:$0xff] %vm7733_vm6, %v7638_v43  ;;  %v12598_v43 = vld [vmem:[%s19468_s5 + $0x40] sm:$0xff] }
 0x5d7   : > { %v7644_v53 = vpop.permute.xlu1 %7643 }
 0x5d8   : > { %v7642_v51 = vpop.permute.xlu0 %7641  ;;  %7737 = vst.msk [vmem:[#allocation2 + $0x39] sm:$0xff] %vm7733_vm6, %v7644_v53  ;;  %v12631_v53 = vld [vmem:[%s19468_s5 + $0x48] sm:$0xff] }
 0x5d9   : > { %7736 = vst.msk [vmem:[#allocation2 + $0x31] sm:$0xff] %vm7733_vm6, %v7642_v51  ;;  %v12632_v51 = vld [vmem:[%s19468_s5 + $0x50] sm:$0xff] }
 0x5db   : > { %v7648_v13 = vpop.permute.xlu1 %7647  ;;  %v18349_v6 = vld [vmem:[#allocation2 + $0x21] sm:$0xff] }
 0x5dc   : > { %v7646_v45 = vpop.permute.xlu0 %7645  ;;  %v18343_v31 = vld [vmem:[#allocation2 + $0x19] sm:$0xff]  ;;  %7739 = vst.msk [vmem:[#allocation2 + $0x51] sm:$0xff] %vm7733_vm6, %v7648_v13 }
 0x5dd   : > { %14760 = vmatprep.mubr.msk.f32.mxu0 %vm7837_vm5, %v18343_v31  ;;  %7738 = vst.msk [vmem:[#allocation2 + $0x49] sm:$0xff] %vm7733_vm6, %v7646_v45  ;;  %v18502_v13 = vld [vmem:[#allocation2 + $0x18] sm:$0xff]  ;;  %v18507_v45 = vpack.c.bf16 %v12632_v51, %v12631_v53  ;;  %v8481_v53 = vld [vmem:[#allocation2 + $0xa] sm:$0xff] }
 0x5de   : > { %14761 = vmatmul.mubr.msk.f32.gmra.mrb[34].mxu0 %vm7837_vm5, %v18349_v6  ;;  %v12633_v51 = vld [vmem:[%s19468_s5 + $0x58] sm:$0xff] }
 0x5df   : > { %v7652_v17 = vpop.permute.xlu1 %7651  ;;  %v18359_v5 = vld [vmem:[#allocation2 + $0x39] sm:$0xff] }
 0x5e0   : > { %7741 = vst.msk [vmem:[#allocation2 + $0x69] sm:$0xff] %vm7733_vm6, %v7652_v17  ;;  %v7650_v40 = vpop.permute.xlu0 %7649  ;;  %v18354_v11 = vld [vmem:[#allocation2 + $0x31] sm:$0xff]  ;;  %v18509_v17 = vld [vmem:[#allocation2 + $0x20] sm:$0xff] }
 0x5e1   : > { %7740 = vst.msk [vmem:[#allocation2 + $0x61] sm:$0xff] %vm7733_vm6, %v7650_v40  ;;  %14763 = vmatprep.mubr.msk.f32.mxu0 %vm7837_vm5, %v18354_v11  ;;  %v18513_v40 = vld [vmem:[#allocation2 + $0x30] sm:$0xff] }
 0x5e2   : > { %14764 = vmatmul.mubr.msk.f32.gmra.mrb[36].mxu0 %vm7837_vm5, %v18359_v5 }
 0x5e3   : > { %v7656_v47 = vpop.permute.xlu1 %7655  ;;  %v18369_v2 = vld [vmem:[#allocation2 + $0x51] sm:$0xff] }
 0x5e4   : > { %7743 = vst.msk [vmem:[#allocation2 + $0x81] sm:$0xff] %vm7733_vm6, %v7656_v47  ;;  %v7654_v42 = vpop.permute.xlu0 %7653  ;;  %v18364_v4 = vld [vmem:[#allocation2 + $0x49] sm:$0xff] }
 0x5e5   : > { %7742 = vst.msk [vmem:[#allocation2 + $0x79] sm:$0xff] %vm7733_vm6, %v7654_v42  ;;  %14766 = vmatprep.mubr.msk.f32.mxu0 %vm7837_vm5, %v18364_v4  ;;  %v18522_v47 = vld [vmem:[#allocation2 + $0x48] sm:$0xff]  ;;  %v18526_v42 = vld [vmem:[#allocation2 + $0x50] sm:$0xff] }
 0x5e6   : > { %14767 = vmatmul.mubr.msk.f32.gmra.mrb[38].mxu0 %vm7837_vm5, %v18369_v2 }
 0x5e7   : > { %v7660_v0 = vpop.permute.xlu1 %7659  ;;  %v18379_v55 = vld [vmem:[#allocation2 + $0x69] sm:$0xff] }
 0x5e8   : > { %7745 = vst.msk [vmem:[#allocation2 + $0x99] sm:$0xff] %vm7733_vm6, %v7660_v0  ;;  %v7658_v29 = vpop.permute.xlu0 %7657  ;;  %v18374_v56 = vld [vmem:[#allocation2 + $0x61] sm:$0xff] }
 0x5e9   : > { %7744 = vst.msk [vmem:[#allocation2 + $0x91] sm:$0xff] %vm7733_vm6, %v7658_v29  ;;  %14769 = vmatprep.mubr.msk.f32.mxu0 %vm7837_vm5, %v18374_v56  ;;  %v18530_v0 = vld [vmem:[#allocation2 + $0x60] sm:$0xff]  ;;  %v18534_v29 = vld [vmem:[#allocation2 + $0x68] sm:$0xff] }
 0x5ea   : > { %14770 = vmatmul.mubr.msk.f32.gmra.mrb[40].mxu0 %vm7837_vm5, %v18379_v55 }
 0x5eb   : > { %v7664_v58 = vpop.permute.xlu1 %7663  ;;  %v18389_v61 = vld [vmem:[#allocation2 + $0x81] sm:$0xff] }
 0x5ec   : > { %7747 = vst.msk [vmem:[#allocation2 + $0xb1] sm:$0xff] %vm7733_vm6, %v7664_v58  ;;  %v7662_v39 = vpop.permute.xlu0 %7661  ;;  %v18384_v49 = vld [vmem:[#allocation2 + $0x79] sm:$0xff] }
 0x5ed   : > { %7746 = vst.msk [vmem:[#allocation2 + $0xa9] sm:$0xff] %vm7733_vm6, %v7662_v39  ;;  %14772 = vmatprep.mubr.msk.f32.mxu0 %vm7837_vm5, %v18384_v49  ;;  %v18538_v58 = vld [vmem:[#allocation2 + $0x78] sm:$0xff]  ;;  %v18542_v39 = vld [vmem:[#allocation2 + $0x80] sm:$0xff] }
 0x5ee   : > { %14773 = vmatmul.mubr.msk.f32.gmra.mrb[42].mxu0 %vm7837_vm5, %v18389_v61 }
 0x5ef   : > { %v7668_v34 = vpop.permute.xlu1 %7667  ;;  %v18399_v18 = vld [vmem:[#allocation2 + $0x99] sm:$0xff] }
 0x5f0   : > { %7749 = vst.msk [vmem:[#allocation2 + $0xc9] sm:$0xff] %vm7733_vm6, %v7668_v34  ;;  %v7666_v63 = vpop.permute.xlu0 %7665  ;;  %v18394_v14 = vld [vmem:[#allocation2 + $0x91] sm:$0xff] }
 0x5f1   : > { %7748 = vst.msk [vmem:[#allocation2 + $0xc1] sm:$0xff] %vm7733_vm6, %v7666_v63  ;;  %14775 = vmatprep.mubr.msk.f32.mxu0 %vm7837_vm5, %v18394_v14  ;;  %v18546_v34 = vld [vmem:[#allocation2 + $0x90] sm:$0xff]  ;;  %v18550_v63 = vld [vmem:[#allocation2 + $0x98] sm:$0xff] }
 0x5f2   : > { %14776 = vmatmul.mubr.msk.f32.gmra.mrb[44].mxu0 %vm7837_vm5, %v18399_v18 }
 0x5f3   : > { %v7672_v12 = vpop.permute.xlu1 %7671  ;;  %v18409_v26 = vld [vmem:[#allocation2 + $0xb1] sm:$0xff] }
 0x5f4   : > { %7751 = vst.msk [vmem:[#allocation2 + $0xe1] sm:$0xff] %vm7733_vm6, %v7672_v12  ;;  %v7670_v20 = vpop.permute.xlu0 %7669  ;;  %v18404_v3 = vld [vmem:[#allocation2 + $0xa9] sm:$0xff] }
 0x5f5   : > { %7750 = vst.msk [vmem:[#allocation2 + $0xd9] sm:$0xff] %vm7733_vm6, %v7670_v20  ;;  %14778 = vmatprep.mubr.msk.f32.mxu0 %vm7837_vm5, %v18404_v3  ;;  %v18554_v12 = vld [vmem:[#allocation2 + $0xa8] sm:$0xff]  ;;  %v18558_v20 = vld [vmem:[#allocation2 + $0xb0] sm:$0xff] }
 0x5f6   : > { %14779 = vmatmul.mubr.msk.f32.gmra.mrb[46].mxu0 %vm7837_vm5, %v18409_v26 }
 0x5f7   : > { %v7676_v27 = vpop.permute.xlu1 %7675  ;;  %v18419_v25 = vld [vmem:[#allocation2 + $0xc9] sm:$0xff] }
 0x5f8   : > { %7753 = vst.msk [vmem:[#allocation2 + $0xf9] sm:$0xff] %vm7733_vm6, %v7676_v27  ;;  %v7674_v32 = vpop.permute.xlu0 %7673  ;;  %v18414_v30 = vld [vmem:[#allocation2 + $0xc1] sm:$0xff] }
 0x5f9   : > { %7752 = vst.msk [vmem:[#allocation2 + $0xf1] sm:$0xff] %vm7733_vm6, %v7674_v32  ;;  %14781 = vmatprep.mubr.msk.f32.mxu0 %vm7837_vm5, %v18414_v30  ;;  %v18562_v27 = vld [vmem:[#allocation2 + $0xc0] sm:$0xff]  ;;  %v18566_v32 = vld [vmem:[#allocation2 + $0xc8] sm:$0xff] }
 0x5fa   : > { %14782 = vmatmul.mubr.msk.f32.gmra.mrb[48].mxu0 %vm7837_vm5, %v18419_v25 }
 0x5fb   : > { %v7680_v35 = vpop.permute.xlu1 %7679  ;;  %v18429_v16 = vld [vmem:[#allocation2 + $0xe1] sm:$0xff] }
 0x5fc   : > { %7755 = vst.msk [vmem:[#allocation2 + $0x111] sm:$0xff] %vm7733_vm6, %v7680_v35  ;;  %v7678_v59 = vpop.permute.xlu0 %7677  ;;  %v18424_v22 = vld [vmem:[#allocation2 + $0xd9] sm:$0xff] }
 0x5fd   : > { %7754 = vst.msk [vmem:[#allocation2 + $0x109] sm:$0xff] %vm7733_vm6, %v7678_v59  ;;  %14784 = vmatprep.mubr.msk.f32.mxu0 %vm7837_vm5, %v18424_v22  ;;  %v18570_v35 = vld [vmem:[#allocation2 + $0xd8] sm:$0xff]  ;;  %v18574_v59 = vld [vmem:[#allocation2 + $0xe0] sm:$0xff] }
 0x5fe   : > { %14785 = vmatmul.mubr.msk.f32.gmra.mrb[50].mxu0 %vm7837_vm5, %v18429_v16 }
 0x5ff   : > { %v7684_v33 = vpop.permute.xlu1 %7683  ;;  %v18439_v23 = vld [vmem:[#allocation2 + $0xf9] sm:$0xff] }
 0x600   : > { %7757 = vst.msk [vmem:[#allocation2 + $0x129] sm:$0xff] %vm7733_vm6, %v7684_v33  ;;  %v7682_v36 = vpop.permute.xlu0 %7681  ;;  %v18434_v1 = vld [vmem:[#allocation2 + $0xf1] sm:$0xff] }
 0x601   : > { %7756 = vst.msk [vmem:[#allocation2 + $0x121] sm:$0xff] %vm7733_vm6, %v7682_v36  ;;  %14787 = vmatprep.mubr.msk.f32.mxu0 %vm7837_vm5, %v18434_v1  ;;  %v18578_v33 = vld [vmem:[#allocation2 + $0xf0] sm:$0xff]  ;;  %v18582_v36 = vld [vmem:[#allocation2 + $0xf8] sm:$0xff] }
 0x602   : > { %14788 = vmatmul.mubr.msk.f32.gmra.mrb[52].mxu0 %vm7837_vm5, %v18439_v23 }
 0x603   : > { %v7688_v19 = vpop.permute.xlu1 %7687  ;;  %v18449_v10 = vld [vmem:[#allocation2 + $0x111] sm:$0xff] }
 0x604   : > { %7759 = vst.msk [vmem:[#allocation2 + $0x141] sm:$0xff] %vm7733_vm6, %v7688_v19  ;;  %v7686_v24 = vpop.permute.xlu0 %7685  ;;  %v18444_v8 = vld [vmem:[#allocation2 + $0x109] sm:$0xff] }
 0x605   : > { %7758 = vst.msk [vmem:[#allocation2 + $0x139] sm:$0xff] %vm7733_vm6, %v7686_v24  ;;  %14790 = vmatprep.mubr.msk.f32.mxu0 %vm7837_vm5, %v18444_v8  ;;  %v18586_v19 = vld [vmem:[#allocation2 + $0x108] sm:$0xff]  ;;  %v18590_v24 = vld [vmem:[#allocation2 + $0x110] sm:$0xff] }
 0x606   : > { %14791 = vmatmul.mubr.msk.f32.gmra.mrb[54].mxu0 %vm7837_vm5, %v18449_v10 }
 0x607   : > { %v7692_v28 = vpop.permute.xlu1 %7691  ;;  %v18459_v46 = vld [vmem:[#allocation2 + $0x129] sm:$0xff] }
 0x608   : > { %7761 = vst.msk [vmem:[#allocation2 + $0x159] sm:$0xff] %vm7733_vm6, %v7692_v28  ;;  %v7690_v37 = vpop.permute.xlu0 %7689  ;;  %v18454_v38 = vld [vmem:[#allocation2 + $0x121] sm:$0xff] }
 0x609   : > { %7760 = vst.msk [vmem:[#allocation2 + $0x151] sm:$0xff] %vm7733_vm6, %v7690_v37  ;;  %14793 = vmatprep.mubr.msk.f32.mxu0 %vm7837_vm5, %v18454_v38  ;;  %v18594_v28 = vld [vmem:[#allocation2 + $0x120] sm:$0xff]  ;;  %v18598_v37 = vld [vmem:[#allocation2 + $0x128] sm:$0xff] }
 0x60a   : > { %14794 = vmatmul.mubr.msk.f32.gmra.mrb[56].mxu0 %vm7837_vm5, %v18459_v46 }
 0x60b   : > { %v7696_v21 = vpop.permute.xlu1 %7695  ;;  %v18469_v50 = vld [vmem:[#allocation2 + $0x141] sm:$0xff] }
 0x60c   : > { %7763 = vst.msk [vmem:[#allocation2 + $0x171] sm:$0xff] %vm7733_vm6, %v7696_v21  ;;  %v7694_v48 = vpop.permute.xlu0 %7693  ;;  %v18464_v15 = vld [vmem:[#allocation2 + $0x139] sm:$0xff]  ;;  %19853 = vst [vmem:[#allocation68_spill] sm:$0xff] %v18469_v50 }
 0x60d   : > { %7762 = vst.msk [vmem:[#allocation2 + $0x169] sm:$0xff] %vm7733_vm6, %v7694_v48  ;;  %14796 = vmatprep.mubr.msk.f32.mxu0 %vm7837_vm5, %v18464_v15  ;;  %v18602_v21 = vld [vmem:[#allocation2 + $0x138] sm:$0xff]  ;;  %v18606_v48 = vld [vmem:[#allocation2 + $0x140] sm:$0xff] }
 0x60e   : > { %14797 = vmatmul.mubr.msk.f32.gmra.mrb[58].mxu0 %vm7837_vm5, %v18469_v50  ;;  %v18648_v50 = vld [vmem:[#allocation2 + $0x32] sm:$0xff] }
 0x60f   : > { %v7700_v7 = vpop.permute.xlu1 %7699  ;;  %v18479_v54 = vld [vmem:[#allocation2 + $0x159] sm:$0xff] }
 0x610   : > { %7765 = vst.msk [vmem:[#allocation2 + $0x189] sm:$0xff] %vm7733_vm6, %v7700_v7  ;;  %v7698_v41 = vpop.permute.xlu0 %7697  ;;  %v18474_v9 = vld [vmem:[#allocation2 + $0x151] sm:$0xff]  ;;  %19855 = vst [vmem:[#allocation65_spill] sm:$0xff] %v18479_v54 }
 0x611   : > { %19854 = vst [vmem:[#allocation69_spill] sm:$0xff] %v18474_v9  ;;  %7764 = vst.msk [vmem:[#allocation2 + $0x181] sm:$0xff] %vm7733_vm6, %v7698_v41  ;;  %14799 = vmatprep.mubr.msk.f32.mxu0 %vm7837_vm5, %v18474_v9  ;;  %v18610_v7 = vld [vmem:[#allocation2 + $0x150] sm:$0xff]  ;;  %v18614_v41 = vld [vmem:[#allocation2 + $0x158] sm:$0xff] }
 0x612   : > { %14800 = vmatmul.mubr.msk.f32.gmra.mrb[60].mxu0 %vm7837_vm5, %v18479_v54  ;;  %v18637_v54 = vld [vmem:[#allocation2 + $0x1a] sm:$0xff]  ;;  %v18644_v9 = vld [vmem:[#allocation2 + $0x22] sm:$0xff] }
 0x613   : > { %v18487_v60 = vld [vmem:[#allocation2 + $0x171] sm:$0xff] }
 0x614   : > { %v18483_v44 = vld [vmem:[#allocation2 + $0x169] sm:$0xff]  ;;  %19857 = vst [vmem:[#allocation25_spill] sm:$0xff] %v18487_v60 }
 0x615   : > { %19856 = vst [vmem:[#allocation66_spill] sm:$0xff] %v18483_v44  ;;  %14802 = vmatprep.mubr.msk.f32.mxu0 %vm7837_vm5, %v18483_v44  ;;  %v12667_v44 = vld [vmem:[%s19468_s5 + $0x68] sm:$0xff] }
 0x616   : > { %14803 = vmatmul.mubr.msk.f32.gmra.mrb[62].mxu0 %vm7837_vm5, %v18487_v60  ;;  %v12666_v60 = vld [vmem:[%s19468_s5 + $0x60] sm:$0xff] }
 0x617   : > { %14811 = vmatprep.mubr.msk.f32.mxu0 %vm7837_vm5, %v7766_v62  ;;  %v18618_v62 = vld [vmem:[#allocation2 + $0x168] sm:$0xff] }
 0x61a   : > { %14812 = vmatmul.mubr.msk.f32.vlgmr.msra.gmra.mrb[32].mxu0 %vm7837_vm5, %v7767_v57  ;;  %v8480_v57 = vld [vmem:[#allocation2 + $0x2] sm:$0xff] }
 0x61b   : > { %15340 = vmatpush3.bf16.msra.mxu0 %v18330_v52  ;;  %14814 = vmatprep.mubr.msk.f32.mxu0 %vm7837_vm5, %v18502_v13  ;;  %v18518_v52 = vld [vmem:[#allocation2 + $0x38] sm:$0xff] }
 0x61c   : > { %14863 = vmatprep.subr.mxu0 %v12598_v43 }
 0x61e   : > { %14815 = vmatmul.mubr.msk.f32.gmra.mrb[34].mxu0 %vm7837_vm5, %v18509_v17 }
 0x61f   : > { %14817 = vmatprep.mubr.msk.f32.mxu0 %vm7837_vm5, %v18513_v40  ;;  %14864 = vmatpush3.msra.mxu0 %v12598_v43  ;;  %v18622_v43 = vld [vmem:[#allocation2 + $0x170] sm:$0xff] }
 0x620   : > { %15342 = vmatprep.subr.bf16.mxu0 %v18507_v45 }
 0x622   : > { %14818 = vmatmul.mubr.msk.f32.gmra.mrb[36].mxu0 %vm7837_vm5, %v18518_v52 }
 0x623   : > { %14820 = vmatprep.mubr.msk.f32.mxu0 %vm7837_vm5, %v18522_v47 }
 0x626   : > { %14821 = vmatmul.mubr.msk.f32.gmra.mrb[38].mxu0 %vm7837_vm5, %v18526_v42 }
 0x627   : > { %14823 = vmatprep.mubr.msk.f32.mxu0 %vm7837_vm5, %v18530_v0 }
 0x62a   : > { %14824 = vmatmul.mubr.msk.f32.gmra.mrb[40].mxu0 %vm7837_vm5, %v18534_v29 }
 0x62b   : > { %14826 = vmatprep.mubr.msk.f32.mxu0 %vm7837_vm5, %v18538_v58 }
 0x62e   : > { %14827 = vmatmul.mubr.msk.f32.gmra.mrb[42].mxu0 %vm7837_vm5, %v18542_v39 }
 0x62f   : > { %14829 = vmatprep.mubr.msk.f32.mxu0 %vm7837_vm5, %v18546_v34 }
 0x632   : > { %14830 = vmatmul.mubr.msk.f32.gmra.mrb[44].mxu0 %vm7837_vm5, %v18550_v63 }
 0x633   : > { %14832 = vmatprep.mubr.msk.f32.mxu0 %vm7837_vm5, %v18554_v12 }
 0x636   : > { %14833 = vmatmul.mubr.msk.f32.gmra.mrb[46].mxu0 %vm7837_vm5, %v18558_v20 }
 0x637   : > { %14835 = vmatprep.mubr.msk.f32.mxu0 %vm7837_vm5, %v18562_v27 }
 0x63a   : > { %14836 = vmatmul.mubr.msk.f32.gmra.mrb[48].mxu0 %vm7837_vm5, %v18566_v32 }
 0x63b   : > { %14838 = vmatprep.mubr.msk.f32.mxu0 %vm7837_vm5, %v18570_v35 }
 0x63e   : > { %14839 = vmatmul.mubr.msk.f32.gmra.mrb[50].mxu0 %vm7837_vm5, %v18574_v59 }
 0x63f   : > { %14841 = vmatprep.mubr.msk.f32.mxu0 %vm7837_vm5, %v18578_v33 }
 0x642   : > { %14842 = vmatmul.mubr.msk.f32.gmra.mrb[52].mxu0 %vm7837_vm5, %v18582_v36 }
 0x643   : > { %14844 = vmatprep.mubr.msk.f32.mxu0 %vm7837_vm5, %v18586_v19 }
 0x646   : > { %14845 = vmatmul.mubr.msk.f32.gmra.mrb[54].mxu0 %vm7837_vm5, %v18590_v24 }
 0x647   : > { %14847 = vmatprep.mubr.msk.f32.mxu0 %vm7837_vm5, %v18594_v28 }
 0x64a   : > { %14848 = vmatmul.mubr.msk.f32.gmra.mrb[56].mxu0 %vm7837_vm5, %v18598_v37 }
 0x64b   : > { %14850 = vmatprep.mubr.msk.f32.mxu0 %vm7837_vm5, %v18602_v21 }
 0x64e   : > { %14851 = vmatmul.mubr.msk.f32.gmra.mrb[58].mxu0 %vm7837_vm5, %v18606_v48 }
 0x64f   : > { %14853 = vmatprep.mubr.msk.f32.mxu0 %vm7837_vm5, %v18610_v7 }
 0x652   : > { %14854 = vmatmul.mubr.msk.f32.gmra.mrb[60].mxu0 %vm7837_vm5, %v18614_v41 }
 0x653   : > { %14856 = vmatprep.mubr.msk.f32.mxu0 %vm7837_vm5, %v18618_v62 }
 0x656   : > { %14857 = vmatmul.mubr.msk.f32.gmra.mrb[62].mxu0 %vm7837_vm5, %v18622_v43 }
 0x657   : > { %14865 = vmatprep.mubr.msk.f32.mxu0 %vm7837_vm5, %v8480_v57  ;;  %v18642_v57 = vpack.c.bf16 %v12667_v44, %v12666_v60  ;;  %v18657_v44 = vld [vmem:[#allocation2 + $0x4a] sm:$0xff]  ;;  %v18661_v60 = vld [vmem:[#allocation2 + $0x52] sm:$0xff] }
 0x658   : > { %19859 = vst [vmem:[#allocation29_spill] sm:$0xff] %v18657_v44  ;;  %19860 = vst [vmem:[#allocation30_spill] sm:$0xff] %v18661_v60 }
 0x65a   : > { %14866 = vmatmul.mubr.msk.f32.vlgmr.msra.gmra.mrb[32].mxu0 %vm7837_vm5, %v8481_v53  ;;  %v18665_v53 = vld [vmem:[#allocation2 + $0x62] sm:$0xff] }
 0x65b   : > { %15344 = vmatpush3.bf16.msra.mxu0 %v18507_v45  ;;  %14868 = vmatprep.mubr.msk.f32.mxu0 %vm7837_vm5, %v18637_v54  ;;  %v18653_v45 = vld [vmem:[#allocation2 + $0x3a] sm:$0xff]  ;;  %19861 = vst [vmem:[#allocation55_spill] sm:$0xff] %v18665_v53 }
 0x65c   : > { %14917 = vmatprep.subr.mxu0 %v12633_v51  ;;  %19858 = vst [vmem:[#allocation28_spill] sm:$0xff] %v18653_v45 }
 0x65e   : > { %14869 = vmatmul.mubr.msk.f32.gmra.mrb[34].mxu0 %vm7837_vm5, %v18644_v9 }
 0x65f   : > { %14871 = vmatprep.mubr.msk.f32.mxu0 %vm7837_vm5, %v18648_v50  ;;  %14918 = vmatpush3.msra.mxu0 %v12633_v51  ;;  %v18669_v51 = vld [vmem:[#allocation2 + $0x6a] sm:$0xff] }
 0x660   : > { %15346 = vmatprep.subr.bf16.mxu0 %v18642_v57  ;;  %19862 = vst [vmem:[#allocation56_spill] sm:$0xff] %v18669_v51 }
 0x662   : > { %14872 = vmatmul.mubr.msk.f32.gmra.mrb[36].mxu0 %vm7837_vm5, %v18653_v45  ;;  %v18673_v45 = vld [vmem:[#allocation2 + $0x7a] sm:$0xff] }
 0x663   : > { %14874 = vmatprep.mubr.msk.f32.mxu0 %vm7837_vm5, %v18657_v44  ;;  %19863 = vst [vmem:[#allocation58_spill] sm:$0xff] %v18673_v45  ;;  %v18677_v44 = vld [vmem:[#allocation2 + $0x82] sm:$0xff] }
 0x664   : > { %19864 = vst [vmem:[#allocation60_spill] sm:$0xff] %v18677_v44 }
 0x666   : > { %14875 = vmatmul.mubr.msk.f32.gmra.mrb[38].mxu0 %vm7837_vm5, %v18661_v60  ;;  %v18681_v60 = vld [vmem:[#allocation2 + $0x92] sm:$0xff] }
 0x667   : > { %14877 = vmatprep.mubr.msk.f32.mxu0 %vm7837_vm5, %v18665_v53  ;;  %19865 = vst [vmem:[#allocation64_spill] sm:$0xff] %v18681_v60  ;;  %v18685_v53 = vld [vmem:[#allocation2 + $0x9a] sm:$0xff] }
 0x668   : > { %19866 = vst [vmem:[#allocation67_spill] sm:$0xff] %v18685_v53 }
 0x66a   : > { %14878 = vmatmul.mubr.msk.f32.gmra.mrb[40].mxu0 %vm7837_vm5, %v18669_v51  ;;  %v18689_v51 = vld [vmem:[#allocation2 + $0xaa] sm:$0xff] }
 0x66b   : > { %14880 = vmatprep.mubr.msk.f32.mxu0 %vm7837_vm5, %v18673_v45  ;;  %19867 = vst [vmem:[#allocation31_spill] sm:$0xff] %v18689_v51  ;;  %v18693_v45 = vld [vmem:[#allocation2 + $0xb2] sm:$0xff] }
 0x66c   : > { %19868 = vst [vmem:[#allocation38_spill] sm:$0xff] %v18693_v45 }
 0x66e   : > { %14881 = vmatmul.mubr.msk.f32.gmra.mrb[42].mxu0 %vm7837_vm5, %v18677_v44  ;;  %v18697_v44 = vld [vmem:[#allocation2 + $0xc2] sm:$0xff] }
 0x66f   : > { %14883 = vmatprep.mubr.msk.f32.mxu0 %vm7837_vm5, %v18681_v60  ;;  %19869 = vst [vmem:[#allocation41_spill] sm:$0xff] %v18697_v44  ;;  %v18701_v60 = vld [vmem:[#allocation2 + $0xca] sm:$0xff] }
 0x670   : > { %19870 = vst [vmem:[#allocation42_spill] sm:$0xff] %v18701_v60 }
 0x672   : > { %14884 = vmatmul.mubr.msk.f32.gmra.mrb[44].mxu0 %vm7837_vm5, %v18685_v53  ;;  %v18705_v53 = vld [vmem:[#allocation2 + $0xda] sm:$0xff] }
 0x673   : > { %14886 = vmatprep.mubr.msk.f32.mxu0 %vm7837_vm5, %v18689_v51  ;;  %19871 = vst [vmem:[#allocation43_spill] sm:$0xff] %v18705_v53  ;;  %v18709_v51 = vld [vmem:[#allocation2 + $0xe2] sm:$0xff] }
 0x674   : > { %19872 = vst [vmem:[#allocation44_spill] sm:$0xff] %v18709_v51 }
 0x676   : > { %14887 = vmatmul.mubr.msk.f32.gmra.mrb[46].mxu0 %vm7837_vm5, %v18693_v45  ;;  %v18713_v45 = vld [vmem:[#allocation2 + $0xf2] sm:$0xff] }
 0x677   : > { %14889 = vmatprep.mubr.msk.f32.mxu0 %vm7837_vm5, %v18697_v44  ;;  %19873 = vst [vmem:[#allocation45_spill] sm:$0xff] %v18713_v45  ;;  %v18717_v44 = vld [vmem:[#allocation2 + $0xfa] sm:$0xff] }
 0x678   : > { %19874 = vst [vmem:[#allocation46_spill] sm:$0xff] %v18717_v44 }
 0x67a   : > { %14890 = vmatmul.mubr.msk.f32.gmra.mrb[48].mxu0 %vm7837_vm5, %v18701_v60  ;;  %v18721_v60 = vld [vmem:[#allocation2 + $0x10a] sm:$0xff] }
 0x67b   : > { %14892 = vmatprep.mubr.msk.f32.mxu0 %vm7837_vm5, %v18705_v53  ;;  %19875 = vst [vmem:[#allocation47_spill] sm:$0xff] %v18721_v60  ;;  %v18725_v53 = vld [vmem:[#allocation2 + $0x112] sm:$0xff] }
 0x67c   : > { %19876 = vst [vmem:[#allocation48_spill] sm:$0xff] %v18725_v53 }
 0x67e   : > { %14893 = vmatmul.mubr.msk.f32.gmra.mrb[50].mxu0 %vm7837_vm5, %v18709_v51  ;;  %v18729_v51 = vld [vmem:[#allocation2 + $0x122] sm:$0xff] }
 0x67f   : > { %14895 = vmatprep.mubr.msk.f32.mxu0 %vm7837_vm5, %v18713_v45  ;;  %19877 = vst [vmem:[#allocation49_spill] sm:$0xff] %v18729_v51  ;;  %v18733_v45 = vld [vmem:[#allocation2 + $0x12a] sm:$0xff] }
 0x680   : > { %19878 = vst [vmem:[#allocation50_spill] sm:$0xff] %v18733_v45 }
 0x682   : > { %14896 = vmatmul.mubr.msk.f32.gmra.mrb[52].mxu0 %vm7837_vm5, %v18717_v44  ;;  %v18737_v44 = vld [vmem:[#allocation2 + $0x13a] sm:$0xff] }
 0x683   : > { %14898 = vmatprep.mubr.msk.f32.mxu0 %vm7837_vm5, %v18721_v60  ;;  %19879 = vst [vmem:[#allocation51_spill] sm:$0xff] %v18737_v44  ;;  %v18741_v60 = vld [vmem:[#allocation2 + $0x142] sm:$0xff] }
 0x686   : > { %14899 = vmatmul.mubr.msk.f32.gmra.mrb[54].mxu0 %vm7837_vm5, %v18725_v53  ;;  %v18745_v53 = vld [vmem:[#allocation2 + $0x152] sm:$0xff] }
 0x687   : > { %14901 = vmatprep.mubr.msk.f32.mxu0 %vm7837_vm5, %v18729_v51  ;;  %19880 = vst [vmem:[#allocation52_spill] sm:$0xff] %v18745_v53  ;;  %v18749_v51 = vld [vmem:[#allocation2 + $0x15a] sm:$0xff] }
 0x688   : > { %19881 = vst [vmem:[#allocation53_spill] sm:$0xff] %v18749_v51 }
 0x68a   : > { %14902 = vmatmul.mubr.msk.f32.gmra.mrb[56].mxu0 %vm7837_vm5, %v18733_v45  ;;  %v18753_v45 = vld [vmem:[#allocation2 + $0x16a] sm:$0xff] }
 0x68b   : > { %14904 = vmatprep.mubr.msk.f32.mxu0 %vm7837_vm5, %v18737_v44  ;;  %19882 = vst [vmem:[#allocation54_spill] sm:$0xff] %v18753_v45  ;;  %v18757_v44 = vld [vmem:[#allocation2 + $0x172] sm:$0xff] }
 0x68c   : > { %19883 = vst [vmem:[#allocation57_spill] sm:$0xff] %v18757_v44 }
 0x68e   : > { %14905 = vmatmul.mubr.msk.f32.gmra.mrb[58].mxu0 %vm7837_vm5, %v18741_v60 }
 0x68f   : > { %14907 = vmatprep.mubr.msk.f32.mxu0 %vm7837_vm5, %v18745_v53  ;;  %v12668_v53 = vld [vmem:[%s19468_s5 + $0x70] sm:$0xff] }
 0x692   : > { %14908 = vmatmul.mubr.msk.f32.gmra.mrb[60].mxu0 %vm7837_vm5, %v18749_v51  ;;  %v12701_v51 = vld [vmem:[%s19468_s5 + $0x78] sm:$0xff] }
 0x693   : > { %14910 = vmatprep.mubr.msk.f32.mxu0 %vm7837_vm5, %v18753_v45  ;;  %v12702_v45 = vld [vmem:[%s19468_s5 + $0x80] sm:$0xff] }
 0x696   : > { %14911 = vmatmul.mubr.msk.f32.gmra.mrb[62].mxu0 %vm7837_vm5, %v18757_v44 }
 0x697   : > { %14919 = vmatprep.mubr.msk.f32.mxu0 %vm7837_vm5, %v18502_v13  ;;  %v15349_v13 = vpack.c.bf16 %v12702_v45, %v12701_v51  ;;  %v12703_v45 = vld [vmem:[%s19468_s5 + $0x88] sm:$0xff]  ;;  %v12737_v51 = vld [vmem:[%s19468_s5 + $0x98] sm:$0xff] }
 0x69a   : > { %14920 = vmatmul.mubr.msk.f32.vlgmr.msra.gmra.mrb[32].mxu0 %vm7837_vm5, %v18509_v17  ;;  %v18831_v17 = vld [vmem:[#allocation2 + $0x180] sm:$0xff] }
 0x69b   : > { %15348 = vmatpush3.bf16.msra.mxu0 %v18642_v57  ;;  %14922 = vmatprep.mubr.msk.f32.mxu0 %vm7837_vm5, %v18513_v40  ;;  %v18835_v57 = vld [vmem:[#allocation2 + $0x188] sm:$0xff] }
 0x69c   : > { %14971 = vmatprep.subr.mxu0 %v12668_v53 }
 0x69e   : > { %14923 = vmatmul.mubr.msk.f32.gmra.mrb[34].mxu0 %vm7837_vm5, %v18518_v52 }
 0x69f   : > { %14925 = vmatprep.mubr.msk.f32.mxu0 %vm7837_vm5, %v18522_v47  ;;  %14972 = vmatpush3.msra.mxu0 %v12668_v53  ;;  %v12736_v53 = vld [vmem:[%s19468_s5 + $0x90] sm:$0xff] }
 0x6a0   : > { %15350 = vmatprep.subr.bf16.mxu0 %v15349_v13 }
 0x6a2   : > { %14926 = vmatmul.mubr.msk.f32.gmra.mrb[36].mxu0 %vm7837_vm5, %v18526_v42 }
 0x6a3   : > { %14928 = vmatprep.mubr.msk.f32.mxu0 %vm7837_vm5, %v18530_v0 }
 0x6a6   : > { %14929 = vmatmul.mubr.msk.f32.gmra.mrb[38].mxu0 %vm7837_vm5, %v18534_v29 }
 0x6a7   : > { %14931 = vmatprep.mubr.msk.f32.mxu0 %vm7837_vm5, %v18538_v58 }
 0x6aa   : > { %14932 = vmatmul.mubr.msk.f32.gmra.mrb[40].mxu0 %vm7837_vm5, %v18542_v39 }
 0x6ab   : > { %14934 = vmatprep.mubr.msk.f32.mxu0 %vm7837_vm5, %v18546_v34 }
 0x6ae   : > { %14935 = vmatmul.mubr.msk.f32.gmra.mrb[42].mxu0 %vm7837_vm5, %v18550_v63 }
 0x6af   : > { %14937 = vmatprep.mubr.msk.f32.mxu0 %vm7837_vm5, %v18554_v12 }
 0x6b2   : > { %14938 = vmatmul.mubr.msk.f32.gmra.mrb[44].mxu0 %vm7837_vm5, %v18558_v20 }
 0x6b3   : > { %14940 = vmatprep.mubr.msk.f32.mxu0 %vm7837_vm5, %v18562_v27 }
 0x6b6   : > { %14941 = vmatmul.mubr.msk.f32.gmra.mrb[46].mxu0 %vm7837_vm5, %v18566_v32 }
 0x6b7   : > { %14943 = vmatprep.mubr.msk.f32.mxu0 %vm7837_vm5, %v18570_v35 }
 0x6ba   : > { %14944 = vmatmul.mubr.msk.f32.gmra.mrb[48].mxu0 %vm7837_vm5, %v18574_v59 }
 0x6bb   : > { %14946 = vmatprep.mubr.msk.f32.mxu0 %vm7837_vm5, %v18578_v33 }
 0x6be   : > { %14947 = vmatmul.mubr.msk.f32.gmra.mrb[50].mxu0 %vm7837_vm5, %v18582_v36 }
 0x6bf   : > { %14949 = vmatprep.mubr.msk.f32.mxu0 %vm7837_vm5, %v18586_v19 }
 0x6c2   : > { %14950 = vmatmul.mubr.msk.f32.gmra.mrb[52].mxu0 %vm7837_vm5, %v18590_v24 }
 0x6c3   : > { %14952 = vmatprep.mubr.msk.f32.mxu0 %vm7837_vm5, %v18594_v28 }
 0x6c6   : > { %14953 = vmatmul.mubr.msk.f32.gmra.mrb[54].mxu0 %vm7837_vm5, %v18598_v37 }
 0x6c7   : > { %14955 = vmatprep.mubr.msk.f32.mxu0 %vm7837_vm5, %v18602_v21 }
 0x6ca   : > { %14956 = vmatmul.mubr.msk.f32.gmra.mrb[56].mxu0 %vm7837_vm5, %v18606_v48 }
 0x6cb   : > { %14958 = vmatprep.mubr.msk.f32.mxu0 %vm7837_vm5, %v18610_v7 }
 0x6ce   : > { %14959 = vmatmul.mubr.msk.f32.gmra.mrb[58].mxu0 %vm7837_vm5, %v18614_v41 }
 0x6cf   : > { %14961 = vmatprep.mubr.msk.f32.mxu0 %vm7837_vm5, %v18618_v62 }
 0x6d2   : > { %14962 = vmatmul.mubr.msk.f32.gmra.mrb[60].mxu0 %vm7837_vm5, %v18622_v43 }
 0x6d3   : > { %14964 = vmatprep.mubr.msk.f32.mxu0 %vm7837_vm5, %v18831_v17 }
 0x6d6   : > { %14965 = vmatmul.mubr.msk.f32.gmra.mrb[62].mxu0 %vm7837_vm5, %v18835_v57 }
 0x6d7   : > { %14973 = vmatprep.mubr.msk.f32.mxu0 %vm7837_vm5, %v18343_v31  ;;  %v15353_v31 = vpack.c.bf16 %v12737_v51, %v12736_v53  ;;  %v19899_v53 = vld [vmem:[#allocation38_spill] sm:$0xff]  ;;  %v19900_v51 = vld [vmem:[#allocation41_spill] sm:$0xff] }
 0x6da   : > { %14974 = vmatmul.mubr.msk.f32.vlgmr.msra.gmra.mrb[32].mxu0 %vm7837_vm5, %v18349_v6  ;;  %v19884_v6 = vld [vmem:[#allocation68_spill] sm:$0xff] }
 0x6db   : > { %15352 = vmatpush3.bf16.msra.mxu0 %v15349_v13  ;;  %14976 = vmatprep.mubr.msk.f32.mxu0 %vm7837_vm5, %v18354_v11  ;;  %v19885_v11 = vld [vmem:[#allocation69_spill] sm:$0xff]  ;;  %v19897_v13 = vld [vmem:[#allocation67_spill] sm:$0xff] }
 0x6dc   : > { %15025 = vmatprep.subr.mxu0 %v12703_v45 }
 0x6de   : > { %14977 = vmatmul.mubr.msk.f32.gmra.mrb[34].mxu0 %vm7837_vm5, %v18359_v5  ;;  %v19886_v5 = vld [vmem:[#allocation65_spill] sm:$0xff] }
 0x6df   : > { %14979 = vmatprep.mubr.msk.f32.mxu0 %vm7837_vm5, %v18364_v4  ;;  %15026 = vmatpush3.msra.mxu0 %v12703_v45  ;;  %v19887_v4 = vld [vmem:[#allocation66_spill] sm:$0xff]  ;;  %v19898_v45 = vld [vmem:[#allocation31_spill] sm:$0xff] }
 0x6e0   : > { %15354 = vmatprep.subr.bf16.mxu0 %v15353_v31 }
 0x6e2   : > { %14980 = vmatmul.mubr.msk.f32.gmra.mrb[36].mxu0 %vm7837_vm5, %v18369_v2  ;;  %v19888_v2 = vld [vmem:[#allocation25_spill] sm:$0xff] }
 0x6e3   : > { %14982 = vmatprep.mubr.msk.f32.mxu0 %vm7837_vm5, %v18374_v56  ;;  %v18908_v56 = vld [vmem:[#allocation2 + $0x181] sm:$0xff] }
 0x6e6   : > { %14983 = vmatmul.mubr.msk.f32.gmra.mrb[38].mxu0 %vm7837_vm5, %v18379_v55  ;;  %v18912_v55 = vld [vmem:[#allocation2 + $0x189] sm:$0xff] }
 0x6e7   : > { %14985 = vmatprep.mubr.msk.f32.mxu0 %vm7837_vm5, %v18384_v49  ;;  %v12738_v49 = vld [vmem:[%s19468_s5 + $0xa0] sm:$0xff] }
 0x6ea   : > { %14986 = vmatmul.mubr.msk.f32.gmra.mrb[40].mxu0 %vm7837_vm5, %v18389_v61  ;;  %v12771_v61 = vld [vmem:[%s19468_s5 + $0xa8] sm:$0xff] }
 0x6eb   : > { %14988 = vmatprep.mubr.msk.f32.mxu0 %vm7837_vm5, %v18394_v14  ;;  %v12772_v14 = vld [vmem:[%s19468_s5 + $0xb0] sm:$0xff] }
 0x6ee   : > { %14989 = vmatmul.mubr.msk.f32.gmra.mrb[42].mxu0 %vm7837_vm5, %v18399_v18  ;;  %v15357_v18 = vpack.c.bf16 %v12772_v14, %v12771_v61  ;;  %v19903_v61 = vld [vmem:[#allocation44_spill] sm:$0xff]  ;;  %v19904_v14 = vld [vmem:[#allocation45_spill] sm:$0xff] }
 0x6ef   : > { %14991 = vmatprep.mubr.msk.f32.mxu0 %vm7837_vm5, %v18404_v3  ;;  %v19889_v3 = vld [vmem:[#allocation28_spill] sm:$0xff] }
 0x6f2   : > { %14992 = vmatmul.mubr.msk.f32.gmra.mrb[44].mxu0 %vm7837_vm5, %v18409_v26  ;;  %v19890_v26 = vld [vmem:[#allocation29_spill] sm:$0xff] }
 0x6f3   : > { %14994 = vmatprep.mubr.msk.f32.mxu0 %vm7837_vm5, %v18414_v30  ;;  %v19891_v30 = vld [vmem:[#allocation30_spill] sm:$0xff] }
 0x6f6   : > { %14995 = vmatmul.mubr.msk.f32.gmra.mrb[46].mxu0 %vm7837_vm5, %v18419_v25  ;;  %v19892_v25 = vld [vmem:[#allocation55_spill] sm:$0xff] }
 0x6f7   : > { %14997 = vmatprep.mubr.msk.f32.mxu0 %vm7837_vm5, %v18424_v22  ;;  %v19893_v22 = vld [vmem:[#allocation56_spill] sm:$0xff] }
 0x6fa   : > { %14998 = vmatmul.mubr.msk.f32.gmra.mrb[48].mxu0 %vm7837_vm5, %v18429_v16  ;;  %v19894_v16 = vld [vmem:[#allocation58_spill] sm:$0xff] }
 0x6fb   : > { %15000 = vmatprep.mubr.msk.f32.mxu0 %vm7837_vm5, %v18434_v1 }
 0x6fe   : > { %15001 = vmatmul.mubr.msk.f32.gmra.mrb[50].mxu0 %vm7837_vm5, %v18439_v23 }
 0x6ff   : > { %15003 = vmatprep.mubr.msk.f32.mxu0 %vm7837_vm5, %v18444_v8 }
 0x702   : > { %15004 = vmatmul.mubr.msk.f32.gmra.mrb[52].mxu0 %vm7837_vm5, %v18449_v10 }
 0x703   : > { %15006 = vmatprep.mubr.msk.f32.mxu0 %vm7837_vm5, %v18454_v38 }
 0x706   : > { %15007 = vmatmul.mubr.msk.f32.gmra.mrb[54].mxu0 %vm7837_vm5, %v18459_v46 }
 0x707   : > { %15009 = vmatprep.mubr.msk.f32.mxu0 %vm7837_vm5, %v18464_v15 }
 0x70a   : > { %15010 = vmatmul.mubr.msk.f32.gmra.mrb[56].mxu0 %vm7837_vm5, %v19884_v6 }
 0x70b   : > { %15012 = vmatprep.mubr.msk.f32.mxu0 %vm7837_vm5, %v19885_v11 }
 0x70e   : > { %15013 = vmatmul.mubr.msk.f32.gmra.mrb[58].mxu0 %vm7837_vm5, %v19886_v5 }
 0x70f   : > { %15015 = vmatprep.mubr.msk.f32.mxu0 %vm7837_vm5, %v19887_v4 }
 0x712   : > { %15016 = vmatmul.mubr.msk.f32.gmra.mrb[60].mxu0 %vm7837_vm5, %v19888_v2 }
 0x713   : > { %15018 = vmatprep.mubr.msk.f32.mxu0 %vm7837_vm5, %v18908_v56 }
 0x716   : > { %15019 = vmatmul.mubr.msk.f32.gmra.mrb[62].mxu0 %vm7837_vm5, %v18912_v55 }
 0x717   : > { %15027 = vmatprep.mubr.msk.f32.mxu0 %vm7837_vm5, %v18637_v54  ;;  %v19896_v54 = vld [vmem:[#allocation64_spill] sm:$0xff] }
 0x71a   : > { %15028 = vmatmul.mubr.msk.f32.vlgmr.msra.gmra.mrb[32].mxu0 %vm7837_vm5, %v18644_v9  ;;  %v19895_v9 = vld [vmem:[#allocation60_spill] sm:$0xff] }
 0x71b   : > { %15356 = vmatpush3.bf16.msra.mxu0 %v15353_v31  ;;  %15030 = vmatprep.mubr.msk.f32.mxu0 %vm7837_vm5, %v18648_v50  ;;  %v19901_v31 = vld [vmem:[#allocation42_spill] sm:$0xff] }
 0x71c   : > { %15079 = vmatprep.subr.mxu0 %v12738_v49 }
 0x71e   : > { %15031 = vmatmul.mubr.msk.f32.gmra.mrb[34].mxu0 %vm7837_vm5, %v19889_v3 }
 0x71f   : > { %15033 = vmatprep.mubr.msk.f32.mxu0 %vm7837_vm5, %v19890_v26  ;;  %15080 = vmatpush3.msra.mxu0 %v12738_v49  ;;  %v19902_v49 = vld [vmem:[#allocation43_spill] sm:$0xff] }
 0x720   : > { %15358 = vmatprep.subr.bf16.mxu0 %v15357_v18 }
 0x722   : > { %15034 = vmatmul.mubr.msk.f32.gmra.mrb[36].mxu0 %vm7837_vm5, %v19891_v30 }
 0x723   : > { %15036 = vmatprep.mubr.msk.f32.mxu0 %vm7837_vm5, %v19892_v25 }
 0x726   : > { %15037 = vmatmul.mubr.msk.f32.gmra.mrb[38].mxu0 %vm7837_vm5, %v19893_v22 }
 0x727   : > { %15039 = vmatprep.mubr.msk.f32.mxu0 %vm7837_vm5, %v19894_v16 }
 0x72a   : > { %15040 = vmatmul.mubr.msk.f32.gmra.mrb[40].mxu0 %vm7837_vm5, %v19895_v9 }
 0x72b   : > { %15042 = vmatprep.mubr.msk.f32.mxu0 %vm7837_vm5, %v19896_v54 }
 0x72e   : > { %15043 = vmatmul.mubr.msk.f32.gmra.mrb[42].mxu0 %vm7837_vm5, %v19897_v13  ;;  %v19905_v13 = vld [vmem:[#allocation46_spill] sm:$0xff] }
 0x72f   : > { %15045 = vmatprep.mubr.msk.f32.mxu0 %vm7837_vm5, %v19898_v45  ;;  %v19906_v45 = vld [vmem:[#allocation47_spill] sm:$0xff] }
 0x732   : > { %15046 = vmatmul.mubr.msk.f32.gmra.mrb[44].mxu0 %vm7837_vm5, %v19899_v53  ;;  %v19907_v53 = vld [vmem:[#allocation48_spill] sm:$0xff] }
 0x733   : > { %15048 = vmatprep.mubr.msk.f32.mxu0 %vm7837_vm5, %v19900_v51  ;;  %v19908_v51 = vld [vmem:[#allocation49_spill] sm:$0xff] }
 0x736   : > { %15049 = vmatmul.mubr.msk.f32.gmra.mrb[46].mxu0 %vm7837_vm5, %v19901_v31  ;;  %v19909_v31 = vld [vmem:[#allocation50_spill] sm:$0xff] }
 0x737   : > { %15051 = vmatprep.mubr.msk.f32.mxu0 %vm7837_vm5, %v19902_v49  ;;  %v19910_v49 = vld [vmem:[#allocation51_spill] sm:$0xff] }
 0x73a   : > { %15052 = vmatmul.mubr.msk.f32.gmra.mrb[48].mxu0 %vm7837_vm5, %v19903_v61 }
 0x73b   : > { %15054 = vmatprep.mubr.msk.f32.mxu0 %vm7837_vm5, %v19904_v14  ;;  %v19911_v14 = vld [vmem:[#allocation52_spill] sm:$0xff] }
 0x73e   : > { %15055 = vmatmul.mubr.msk.f32.gmra.mrb[50].mxu0 %vm7837_vm5, %v19905_v13  ;;  %v19912_v13 = vld [vmem:[#allocation53_spill] sm:$0xff] }
 0x73f   : > { %15057 = vmatprep.mubr.msk.f32.mxu0 %vm7837_vm5, %v19906_v45  ;;  %v19913_v45 = vld [vmem:[#allocation54_spill] sm:$0xff] }
 0x742   : > { %15058 = vmatmul.mubr.msk.f32.gmra.mrb[52].mxu0 %vm7837_vm5, %v19907_v53 }
 0x743   : > { %15060 = vmatprep.mubr.msk.f32.mxu0 %vm7837_vm5, %v19908_v51  ;;  %v18985_v51 = vld [vmem:[#allocation2 + $0x182] sm:$0xff] }
 0x744   : > { %19914 = vst [vmem:[#allocation59_spill] sm:$0xff] %v18985_v51 }
 0x746   : > { %15061 = vmatmul.mubr.msk.f32.gmra.mrb[54].mxu0 %vm7837_vm5, %v19909_v31 }
 0x747   : > { %15063 = vmatprep.mubr.msk.f32.mxu0 %vm7837_vm5, %v19910_v49  ;;  %v18989_v49 = vld [vmem:[#allocation2 + $0x18a] sm:$0xff] }
 0x74a   : > { %15064 = vmatmul.mubr.msk.f32.gmra.mrb[56].mxu0 %vm7837_vm5, %v18741_v60 }
 0x74b   : > { %15066 = vmatprep.mubr.msk.f32.mxu0 %vm7837_vm5, %v19911_v14 }
 0x74e   : > { %15067 = vmatmul.mubr.msk.f32.gmra.mrb[58].mxu0 %vm7837_vm5, %v19912_v13 }
 0x74f   : > { %15069 = vmatprep.mubr.msk.f32.mxu0 %vm7837_vm5, %v19913_v45  ;;  %v12773_v45 = vld [vmem:[%s19468_s5 + $0xb8] sm:$0xff] }
 0x752   : > { %15070 = vmatmul.mubr.msk.f32.gmra.mrb[60].mxu0 %vm7837_vm5, %v18757_v44  ;;  %v12806_v44 = vld [vmem:[%s19468_s5 + $0xc0] sm:$0xff] }
 0x753   : > { %15072 = vmatprep.mubr.msk.f32.mxu0 %vm7837_vm5, %v18985_v51  ;;  %v12807_v51 = vld [vmem:[%s19468_s5 + $0xc8] sm:$0xff] }
 0x756   : > { %15073 = vmatmul.mubr.msk.f32.gmra.mrb[62].mxu0 %vm7837_vm5, %v18989_v49 }
 0x757   : > { %15081 = vmatprep.mubr.msk.f32.mxu0 %vm7837_vm5, %v18513_v40  ;;  %v15361_v40 = vpack.c.bf16 %v12807_v51, %v12806_v44  ;;  %v10844_v44 = vld [vmem:[#allocation2 + $0x19a] sm:$0xff] }
 0x75a   : > { %15082 = vmatmul.mubr.msk.f32.vlgmr.msra.gmra.mrb[32].mxu0 %vm7837_vm5, %v18518_v52  ;;  %v10066_v52 = vld [vmem:[#allocation2 + $0x198] sm:$0xff] }
 0x75b   : > { %15360 = vmatpush3.bf16.msra.mxu0 %v15357_v18  ;;  %15084 = vmatprep.mubr.msk.f32.mxu0 %vm7837_vm5, %v18522_v47  ;;  %v10067_v47 = vld [vmem:[#allocation2 + $0x1a0] sm:$0xff] }
 0x75c   : > { %15133 = vmatprep.subr.mxu0 %v12773_v45 }
 0x75e   : > { %15085 = vmatmul.mubr.msk.f32.gmra.mrb[34].mxu0 %vm7837_vm5, %v18526_v42  ;;  %v10425_v42 = vld [vmem:[#allocation2 + $0x31] sm:$0xff] }
 0x75f   : > { %15087 = vmatprep.mubr.msk.f32.mxu0 %vm7837_vm5, %v18530_v0  ;;  %15134 = vmatpush3.msra.mxu0 %v12773_v45  ;;  %v10426_v0 = vld [vmem:[#allocation2 + $0x39] sm:$0xff] }
 0x760   : > { %15362 = vmatprep.subr.bf16.mxu0 %v15361_v40 }
 0x762   : > { %15088 = vmatmul.mubr.msk.f32.gmra.mrb[36].mxu0 %vm7837_vm5, %v18534_v29  ;;  %v12808_v29 = vld [vmem:[%s19468_s5 + $0xd0] sm:$0xff] }
 0x763   : > { %15090 = vmatprep.mubr.msk.f32.mxu0 %vm7837_vm5, %v18538_v58  ;;  %v10427_v58 = vld [vmem:[#allocation2 + $0x49] sm:$0xff] }
 0x766   : > { %15091 = vmatmul.mubr.msk.f32.gmra.mrb[38].mxu0 %vm7837_vm5, %v18542_v39  ;;  %v10428_v39 = vld [vmem:[#allocation2 + $0x51] sm:$0xff] }
 0x767   : > { %15093 = vmatprep.mubr.msk.f32.mxu0 %vm7837_vm5, %v18546_v34  ;;  %v10429_v34 = vld [vmem:[#allocation2 + $0x61] sm:$0xff] }
 0x76a   : > { %15094 = vmatmul.mubr.msk.f32.gmra.mrb[40].mxu0 %vm7837_vm5, %v18550_v63  ;;  %v10430_v63 = vld [vmem:[#allocation2 + $0x69] sm:$0xff] }
 0x76b   : > { %15096 = vmatprep.mubr.msk.f32.mxu0 %vm7837_vm5, %v18554_v12  ;;  %v10431_v12 = vld [vmem:[#allocation2 + $0x79] sm:$0xff] }
 0x76e   : > { %15097 = vmatmul.mubr.msk.f32.gmra.mrb[42].mxu0 %vm7837_vm5, %v18558_v20  ;;  %v10432_v20 = vld [vmem:[#allocation2 + $0x81] sm:$0xff] }
 0x76f   : > { %15099 = vmatprep.mubr.msk.f32.mxu0 %vm7837_vm5, %v18562_v27  ;;  %v10433_v27 = vld [vmem:[#allocation2 + $0x91] sm:$0xff] }
 0x772   : > { %15100 = vmatmul.mubr.msk.f32.gmra.mrb[44].mxu0 %vm7837_vm5, %v18566_v32  ;;  %v10434_v32 = vld [vmem:[#allocation2 + $0x99] sm:$0xff] }
 0x773   : > { %15102 = vmatprep.mubr.msk.f32.mxu0 %vm7837_vm5, %v18570_v35  ;;  %v10435_v35 = vld [vmem:[#allocation2 + $0xa9] sm:$0xff] }
 0x776   : > { %15103 = vmatmul.mubr.msk.f32.gmra.mrb[46].mxu0 %vm7837_vm5, %v18574_v59  ;;  %v10436_v59 = vld [vmem:[#allocation2 + $0xb1] sm:$0xff] }
 0x777   : > { %15105 = vmatprep.mubr.msk.f32.mxu0 %vm7837_vm5, %v18578_v33  ;;  %v10437_v33 = vld [vmem:[#allocation2 + $0xc1] sm:$0xff] }
 0x77a   : > { %15106 = vmatmul.mubr.msk.f32.gmra.mrb[48].mxu0 %vm7837_vm5, %v18582_v36  ;;  %v10438_v36 = vld [vmem:[#allocation2 + $0xc9] sm:$0xff] }
 0x77b   : > { %15108 = vmatprep.mubr.msk.f32.mxu0 %vm7837_vm5, %v18586_v19  ;;  %v10439_v19 = vld [vmem:[#allocation2 + $0xd9] sm:$0xff] }
 0x77e   : > { %15109 = vmatmul.mubr.msk.f32.gmra.mrb[50].mxu0 %vm7837_vm5, %v18590_v24  ;;  %v10440_v24 = vld [vmem:[#allocation2 + $0xe1] sm:$0xff] }
 0x77f   : > { %15111 = vmatprep.mubr.msk.f32.mxu0 %vm7837_vm5, %v18594_v28  ;;  %v19921_v28 = vld [vmem:[#allocation45_spill] sm:$0xff] }
 0x782   : > { %15112 = vmatmul.mubr.msk.f32.gmra.mrb[52].mxu0 %vm7837_vm5, %v18598_v37  ;;  %v19922_v37 = vld [vmem:[#allocation46_spill] sm:$0xff] }
 0x783   : > { %15114 = vmatprep.mubr.msk.f32.mxu0 %vm7837_vm5, %v18602_v21  ;;  %v19923_v21 = vld [vmem:[#allocation47_spill] sm:$0xff] }
 0x786   : > { %15115 = vmatmul.mubr.msk.f32.gmra.mrb[54].mxu0 %vm7837_vm5, %v18606_v48  ;;  %v19924_v48 = vld [vmem:[#allocation49_spill] sm:$0xff] }
 0x787   : > { %15117 = vmatprep.mubr.msk.f32.mxu0 %vm7837_vm5, %v18610_v7  ;;  %v19925_v7 = vld [vmem:[#allocation51_spill] sm:$0xff] }
 0x78a   : > { %15118 = vmatmul.mubr.msk.f32.gmra.mrb[56].mxu0 %vm7837_vm5, %v18614_v41  ;;  %v19926_v41 = vld [vmem:[#allocation54_spill] sm:$0xff] }
 0x78b   : > { %15120 = vmatprep.mubr.msk.f32.mxu0 %vm7837_vm5, %v18618_v62  ;;  %v19927_v62 = vld [vmem:[#allocation57_spill] sm:$0xff] }
 0x78e   : > { %15121 = vmatmul.mubr.msk.f32.gmra.mrb[58].mxu0 %vm7837_vm5, %v18622_v43  ;;  %v19928_v43 = vld [vmem:[#allocation59_spill] sm:$0xff] }
 0x78f   : > { %15123 = vmatprep.mubr.msk.f32.mxu0 %vm7837_vm5, %v18831_v17  ;;  %v11467_v17 = vld [vmem:[%s19470_s7] sm:$0xff] }
 0x792   : > { %15124 = vmatmul.mubr.msk.f32.gmra.mrb[60].mxu0 %vm7837_vm5, %v18835_v57  ;;  %v11468_v57 = vld [vmem:[%s19470_s7 + $0x8] sm:$0xff] }
 0x793   : > { %15126 = vmatprep.mubr.msk.f32.mxu0 %vm7837_vm5, %v10066_v52 }
 0x796   : > { %15127 = vmatmul.mubr.msk.f32.gmra.mrb[62].mxu0 %vm7837_vm5, %v10067_v47 }
 0x797   : > { %15135 = vmatprep.mubr.msk.f32.mxu0 %vm7837_vm5, %v10425_v42 }
 0x79a   : > { %15136 = vmatmul.mubr.msk.f32.vlgmr.msra.gmra.mrb[32].mxu0 %vm7837_vm5, %v10426_v0 }
 0x79b   : > { %15364 = vmatpush3.bf16.msra.mxu0 %v15361_v40  ;;  %15138 = vmatprep.mubr.msk.f32.mxu0 %vm7837_vm5, %v10427_v58 }
 0x79c   : > { %15187 = vmatprep.subr.mxu0 %v12808_v29 }
 0x79e   : > { %15139 = vmatmul.mubr.msk.f32.gmra.mrb[34].mxu0 %vm7837_vm5, %v10428_v39 }
 0x79f   : > { %15141 = vmatprep.mubr.msk.f32.mxu0 %vm7837_vm5, %v10429_v34  ;;  %15188 = vmatpush3.msra.mxu0 %v12808_v29 }
 0x7a2   : > { %15142 = vmatmul.mubr.msk.f32.gmra.mrb[36].mxu0 %vm7837_vm5, %v10430_v63 }
 0x7a3   : > { %15144 = vmatprep.mubr.msk.f32.mxu0 %vm7837_vm5, %v10431_v12 }
 0x7a6   : > { %15145 = vmatmul.mubr.msk.f32.gmra.mrb[38].mxu0 %vm7837_vm5, %v10432_v20 }
 0x7a7   : > { %15147 = vmatprep.mubr.msk.f32.mxu0 %vm7837_vm5, %v10433_v27 }
 0x7aa   : > { %15148 = vmatmul.mubr.msk.f32.gmra.mrb[40].mxu0 %vm7837_vm5, %v10434_v32 }
 0x7ab   : > { %15150 = vmatprep.mubr.msk.f32.mxu0 %vm7837_vm5, %v10435_v35 }
 0x7ae   : > { %15151 = vmatmul.mubr.msk.f32.gmra.mrb[42].mxu0 %vm7837_vm5, %v10436_v59 }
 0x7af   : > { %15153 = vmatprep.mubr.msk.f32.mxu0 %vm7837_vm5, %v10437_v33 }
 0x7b2   : > { %15154 = vmatmul.mubr.msk.f32.gmra.mrb[44].mxu0 %vm7837_vm5, %v10438_v36 }
 0x7b3   : > { %15156 = vmatprep.mubr.msk.f32.mxu0 %vm7837_vm5, %v10439_v19 }
 0x7b6   : > { %15157 = vmatmul.mubr.msk.f32.gmra.mrb[46].mxu0 %vm7837_vm5, %v10440_v24 }
 0x7b7   : > { %15159 = vmatprep.mubr.msk.f32.mxu0 %vm7837_vm5, %v18434_v1  ;;  %v10455_v1 = vld [vmem:[#allocation2 + $0x199] sm:$0xff] }
 0x7ba   : > { %15160 = vmatmul.mubr.msk.f32.gmra.mrb[48].mxu0 %vm7837_vm5, %v18439_v23  ;;  %v10456_v23 = vld [vmem:[#allocation2 + $0x1a1] sm:$0xff] }
 0x7bb   : > { %15162 = vmatprep.mubr.msk.f32.mxu0 %vm7837_vm5, %v18444_v8  ;;  %v19915_v8 = vld [vmem:[#allocation67_spill] sm:$0xff] }
 0x7be   : > { %15163 = vmatmul.mubr.msk.f32.gmra.mrb[50].mxu0 %vm7837_vm5, %v18449_v10  ;;  %v19916_v10 = vld [vmem:[#allocation31_spill] sm:$0xff] }
 0x7bf   : > { %15165 = vmatprep.mubr.msk.f32.mxu0 %vm7837_vm5, %v18454_v38  ;;  %v19917_v38 = vld [vmem:[#allocation38_spill] sm:$0xff] }
 0x7c2   : > { %15166 = vmatmul.mubr.msk.f32.gmra.mrb[52].mxu0 %vm7837_vm5, %v18459_v46  ;;  %v19918_v46 = vld [vmem:[#allocation41_spill] sm:$0xff] }
 0x7c3   : > { %15168 = vmatprep.mubr.msk.f32.mxu0 %vm7837_vm5, %v18464_v15  ;;  %v19919_v15 = vld [vmem:[#allocation42_spill] sm:$0xff] }
 0x7c6   : > { %15169 = vmatmul.mubr.msk.f32.gmra.mrb[54].mxu0 %vm7837_vm5, %v19884_v6  ;;  %v15365_v6 = vpack.c.bf16 %v11468_v57, %v11467_v17 }
 0x7c7   : > { %15171 = vmatprep.mubr.msk.f32.mxu0 %vm7837_vm5, %v19885_v11  ;;  %v11469_v11 = vld [vmem:[%s19470_s7 + $0x10] sm:$0xff] }
 0x7c8   : > { %15366 = vmatprep.subr.bf16.mxu1 %v15365_v6 }
 0x7c9   : > { %15368 = vmatpush3.bf16.msra.mxu1 %v15365_v6 }
 0x7ca   : > { %15172 = vmatmul.mubr.msk.f32.gmra.mrb[56].mxu0 %vm7837_vm5, %v19886_v5  ;;  %v11470_v5 = vld [vmem:[%s19470_s7 + $0x18] sm:$0xff] }
 0x7cb   : > { %15174 = vmatprep.mubr.msk.f32.mxu0 %vm7837_vm5, %v19887_v4  ;;  %v15369_v4 = vpack.c.bf16 %v11470_v5, %v11469_v11 }
 0x7cd   : > { %15370 = vmatprep.subr.bf16.mxu1 %v15369_v4 }
 0x7ce   : > { %15175 = vmatmul.mubr.msk.f32.gmra.mrb[58].mxu0 %vm7837_vm5, %v19888_v2  ;;  %15372 = vmatpush3.bf16.msra.mxu1 %v15369_v4  ;;  %v19190_v2 = vld [vmem:[%s19469_s6] ss:$0 sm:$0xff] }
 0x7cf   : > { %15177 = vmatprep.mubr.msk.f32.mxu0 %vm7837_vm5, %v18908_v56 }
 0x7d2   : > { %15178 = vmatmul.mubr.msk.f32.gmra.mrb[60].mxu0 %vm7837_vm5, %v18912_v55 }
 0x7d3   : > { %15180 = vmatprep.mubr.msk.f32.mxu0 %vm7837_vm5, %v10455_v1 }
 0x7d6   : > { %15181 = vmatmul.mubr.msk.f32.gmra.mrb[62].mxu0 %vm7837_vm5, %v10456_v23 }
 0x7d7   : > { %15189 = vmatprep.mubr.msk.f32.mxu0 %vm7837_vm5, %v18648_v50  ;;  %v19920_v50 = vld [vmem:[#allocation43_spill] sm:$0xff] }
 0x7da   : > { %15190 = vmatmul.mubr.msk.f32.vlgmr.msra.gmra.mrb[32].mxu0 %vm7837_vm5, %v19889_v3 }
 0x7db   : > { %15192 = vmatprep.mubr.msk.f32.mxu0 %vm7837_vm5, %v19890_v26 }
 0x7de   : > { %15193 = vmatmul.mubr.msk.f32.gmra.mrb[34].mxu0 %vm7837_vm5, %v19891_v30 }
 0x7df   : > { %15195 = vmatprep.mubr.msk.f32.mxu0 %vm7837_vm5, %v19892_v25 }
 0x7e2   : > { %15196 = vmatmul.mubr.msk.f32.gmra.mrb[36].mxu0 %vm7837_vm5, %v19893_v22 }
 0x7e3   : > { %15198 = vmatprep.mubr.msk.f32.mxu0 %vm7837_vm5, %v19894_v16 }
 0x7e6   : > { %15199 = vmatmul.mubr.msk.f32.gmra.mrb[38].mxu0 %vm7837_vm5, %v19895_v9 }
 0x7e7   : > { %15201 = vmatprep.mubr.msk.f32.mxu0 %vm7837_vm5, %v19896_v54 }
 0x7ea   : > { %15202 = vmatmul.mubr.msk.f32.gmra.mrb[40].mxu0 %vm7837_vm5, %v19915_v8 }
 0x7eb   : > { %15204 = vmatprep.mubr.msk.f32.mxu0 %vm7837_vm5, %v19916_v10 }
 0x7ee   : > { %15205 = vmatmul.mubr.msk.f32.gmra.mrb[42].mxu0 %vm7837_vm5, %v19917_v38 }
 0x7ef   : > { %15207 = vmatprep.mubr.msk.f32.mxu0 %vm7837_vm5, %v19918_v46 }
 0x7f2   : > { %15208 = vmatmul.mubr.msk.f32.gmra.mrb[44].mxu0 %vm7837_vm5, %v19919_v15 }
 0x7f3   : > { %15210 = vmatprep.mubr.msk.f32.mxu0 %vm7837_vm5, %v19920_v50 }
 0x7f6   : > { %15211 = vmatmul.mubr.msk.f32.gmra.mrb[46].mxu0 %vm7837_vm5, %v19903_v61 }
 0x7f7   : > { %15213 = vmatprep.mubr.msk.f32.mxu0 %vm7837_vm5, %v19921_v28 }
 0x7fa   : > { %15214 = vmatmul.mubr.msk.f32.gmra.mrb[48].mxu0 %vm7837_vm5, %v19922_v37 }
 0x7fb   : > { %15216 = vmatprep.mubr.msk.f32.mxu0 %vm7837_vm5, %v19923_v21 }
 0x7fe   : > { %15217 = vmatmul.mubr.msk.f32.gmra.mrb[50].mxu0 %vm7837_vm5, %v19907_v53 }
 0x7ff   : > { %15219 = vmatprep.mubr.msk.f32.mxu0 %vm7837_vm5, %v19924_v48 }
 0x802   : > { %15220 = vmatmul.mubr.msk.f32.gmra.mrb[52].mxu0 %vm7837_vm5, %v19909_v31 }
 0x803   : > { %15222 = vmatprep.mubr.msk.f32.mxu0 %vm7837_vm5, %v19925_v7 }
 0x806   : > { %15223 = vmatmul.mubr.msk.f32.gmra.mrb[54].mxu0 %vm7837_vm5, %v18741_v60  ;;  %v10845_v60 = vld [vmem:[#allocation2 + $0x1a2] sm:$0xff] }
 0x807   : > { %15225 = vmatprep.mubr.msk.f32.mxu0 %vm7837_vm5, %v19911_v14 }
 0x80a   : > { %15226 = vmatmul.mubr.msk.f32.gmra.mrb[56].mxu0 %vm7837_vm5, %v19912_v13 }
 0x80b   : > { %15228 = vmatprep.mubr.msk.f32.mxu0 %vm7837_vm5, %v19926_v41 }
 0x80e   : > { %15229 = vmatmul.mubr.msk.f32.gmra.mrb[58].mxu0 %vm7837_vm5, %v19927_v62 }
 0x80f   : > { %15231 = vmatprep.mubr.msk.f32.mxu0 %vm7837_vm5, %v19928_v43 }
 0x812   : > { %15232 = vmatmul.mubr.msk.f32.gmra.mrb[60].mxu0 %vm7837_vm5, %v18989_v49 }
 0x813   : > { %15234 = vmatprep.mubr.msk.f32.mxu0 %vm7837_vm5, %v10844_v44 }
 0x816   : > { %15235 = vmatmul.mubr.msk.f32.gmra.mrb[62].mxu0 %vm7837_vm5, %v10845_v60 }
 0x8ad   : > { %v15191_v56 = vpop.f32.mrb[32].mxu0 }
 0x8ae   : > { %v11211_v55 = vadd.f32 %v15191_v56, %v19190_v2  ;;  %v11012_v18 = vpop.f32.mrb[33].mxu0 }
 0x8af   : > { %v11210_v3 = vadd.f32 %v19190_v2, %v11012_v18 }
 0x8b0   : > { %v11243_v26 = vmax.f32 %v11211_v55, 0.0 }
 0x8b1   : > { %v11242_v30 = vmax.f32 %v11210_v3, 0.0  ;;  %v15194_v25 = vpop.f32.mrb[34].mxu0 }
 0x8b2   : > { %v11213_v22 = vadd.f32 %v15194_v25, %v19190_v2  ;;  %11308 = vrot.lane.b32.xlu1 %v11243_v26, %s16164_s12  ;;  %v11022_v16 = vpop.f32.mrb[35].mxu0 }
 0x8b3   : > { %v11212_v9 = vadd.f32 %v19190_v2, %v11022_v16  ;;  %11306 = vrot.lane.b32.xlu0 %v11242_v30, %s16164_s12 }
 0x8b4   : > { %v11245_v54 = vmax.f32 %v11213_v22, 0.0 }
 0x8b5   : > { %v11244_v13 = vmax.f32 %v11212_v9, 0.0  ;;  %v15197_v45 = vpop.f32.mrb[36].mxu0 }
 0x8b6   : > { %v11215_v53 = vadd.f32 %v15197_v45, %v19190_v2  ;;  %11312 = vrot.lane.b32.xlu1 %v11245_v54, %s16164_s12  ;;  %v11032_v51 = vpop.f32.mrb[37].mxu0 }
 0x8b7   : > { %v11214_v31 = vadd.f32 %v19190_v2, %v11032_v51  ;;  %11310 = vrot.lane.b32.xlu0 %v11244_v13, %s16164_s12 }
 0x8b8   : > { %v11247_v49 = vmax.f32 %v11215_v53, 0.0 }
 0x8b9   : > { %v11246_v61 = vmax.f32 %v11214_v31, 0.0  ;;  %v15200_v14 = vpop.f32.mrb[38].mxu0 }
 0x8ba   : > { %v11217_v40 = vadd.f32 %v15200_v14, %v19190_v2  ;;  %11316 = vrot.lane.b32.xlu1 %v11247_v49, %s16164_s12  ;;  %v11042_v52 = vpop.f32.mrb[39].mxu0 }
 0x8bb   : > { %v11216_v47 = vadd.f32 %v19190_v2, %v11042_v52  ;;  %11314 = vrot.lane.b32.xlu0 %v11246_v61, %s16164_s12 }
 0x8bc   : > { %v11249_v42 = vmax.f32 %v11217_v40, 0.0 }
 0x8bd   : > { %v11248_v0 = vmax.f32 %v11216_v47, 0.0  ;;  %v15203_v29 = vpop.f32.mrb[40].mxu0 }
 0x8be   : > { %v11219_v58 = vadd.f32 %v15203_v29, %v19190_v2  ;;  %11320 = vrot.lane.b32.xlu1 %v11249_v42, %s16164_s12  ;;  %v11052_v39 = vpop.f32.mrb[41].mxu0 }
 0x8bf   : > { %v11218_v34 = vadd.f32 %v19190_v2, %v11052_v39  ;;  %11318 = vrot.lane.b32.xlu0 %v11248_v0, %s16164_s12 }
 0x8c0   : > { %v11251_v63 = vmax.f32 %v11219_v58, 0.0 }
 0x8c1   : > { %v11250_v12 = vmax.f32 %v11218_v34, 0.0  ;;  %v15206_v20 = vpop.f32.mrb[42].mxu0 }
 0x8c2   : > { %v11221_v27 = vadd.f32 %v15206_v20, %v19190_v2  ;;  %11324 = vrot.lane.b32.xlu1 %v11251_v63, %s16164_s12  ;;  %v11062_v32 = vpop.f32.mrb[43].mxu0 }
 0x8c3   : > { %v11220_v35 = vadd.f32 %v19190_v2, %v11062_v32  ;;  %11322 = vrot.lane.b32.xlu0 %v11250_v12, %s16164_s12 }
 0x8c4   : > { %v11253_v59 = vmax.f32 %v11221_v27, 0.0 }
 0x8c5   : > { %v11252_v33 = vmax.f32 %v11220_v35, 0.0  ;;  %v15209_v36 = vpop.f32.mrb[44].mxu0 }
 0x8c6   : > { %v11223_v19 = vadd.f32 %v15209_v36, %v19190_v2  ;;  %11328 = vrot.lane.b32.xlu1 %v11253_v59, %s16164_s12  ;;  %v11072_v24 = vpop.f32.mrb[45].mxu0 }
 0x8c7   : > { %v11222_v1 = vadd.f32 %v19190_v2, %v11072_v24  ;;  %11326 = vrot.lane.b32.xlu0 %v11252_v33, %s16164_s12 }
 0x8c8   : > { %v11255_v23 = vmax.f32 %v11223_v19, 0.0 }
 0x8c9   : > { %v11254_v8 = vmax.f32 %v11222_v1, 0.0  ;;  %v15212_v10 = vpop.f32.mrb[46].mxu0 }
 0x8ca   : > { %v11225_v38 = vadd.f32 %v15212_v10, %v19190_v2  ;;  %11332 = vrot.lane.b32.xlu1 %v11255_v23, %s16164_s12  ;;  %v11082_v46 = vpop.f32.mrb[47].mxu0 }
 0x8cb   : > { %v11224_v15 = vadd.f32 %v19190_v2, %v11082_v46  ;;  %11330 = vrot.lane.b32.xlu0 %v11254_v8, %s16164_s12 }
 0x8cc   : > { %v11257_v50 = vmax.f32 %v11225_v38, 0.0 }
 0x8cd   : > { %v11256_v28 = vmax.f32 %v11224_v15, 0.0  ;;  %v15215_v37 = vpop.f32.mrb[48].mxu0 }
 0x8ce   : > { %v11227_v21 = vadd.f32 %v15215_v37, %v19190_v2  ;;  %11336 = vrot.lane.b32.xlu1 %v11257_v50, %s16164_s12  ;;  %v11092_v48 = vpop.f32.mrb[49].mxu0 }
 0x8cf   : > { %v11226_v7 = vadd.f32 %v19190_v2, %v11092_v48  ;;  %11334 = vrot.lane.b32.xlu0 %v11256_v28, %s16164_s12 }
 0x8d0   : > { %v11259_v41 = vmax.f32 %v11227_v21, 0.0 }
 0x8d1   : > { %v11258_v62 = vmax.f32 %v11226_v7, 0.0  ;;  %v15218_v43 = vpop.f32.mrb[50].mxu0 }
 0x8d2   : > { %v11229_v44 = vadd.f32 %v15218_v43, %v19190_v2  ;;  %11340 = vrot.lane.b32.xlu1 %v11259_v41, %s16164_s12  ;;  %v11102_v60 = vpop.f32.mrb[51].mxu0 }
 0x8d3   : > { %v11228_v17 = vadd.f32 %v19190_v2, %v11102_v60  ;;  %11338 = vrot.lane.b32.xlu0 %v11258_v62, %s16164_s12 }
 0x8d4   : > { %v11261_v57 = vmax.f32 %v11229_v44, 0.0 }
 0x8d5   : > { %v11260_v6 = vmax.f32 %v11228_v17, 0.0  ;;  %v15221_v11 = vpop.f32.mrb[52].mxu0 }
 0x8d6   : > { %v11231_v5 = vadd.f32 %v15221_v11, %v19190_v2  ;;  %11344 = vrot.lane.b32.xlu1 %v11261_v57, %s16164_s12  ;;  %v11112_v4 = vpop.f32.mrb[53].mxu0 }
 0x8d7   : > { %v11230_v56 = vadd.f32 %v19190_v2, %v11112_v4  ;;  %11342 = vrot.lane.b32.xlu0 %v11260_v6, %s16164_s12 }
 0x8d8   : > { %v11263_v55 = vmax.f32 %v11231_v5, 0.0 }
 0x8d9   : > { %v11262_v18 = vmax.f32 %v11230_v56, 0.0  ;;  %v15224_v3 = vpop.f32.mrb[54].mxu0 }
 0x8da   : > { %v11233_v26 = vadd.f32 %v15224_v3, %v19190_v2  ;;  %11348 = vrot.lane.b32.xlu1 %v11263_v55, %s16164_s12  ;;  %v11122_v30 = vpop.f32.mrb[55].mxu0 }
 0x8db   : > { %v11232_v25 = vadd.f32 %v19190_v2, %v11122_v30  ;;  %11346 = vrot.lane.b32.xlu0 %v11262_v18, %s16164_s12 }
 0x8dc   : > { %v11265_v22 = vmax.f32 %v11233_v26, 0.0 }
 0x8dd   : > { %v11264_v16 = vmax.f32 %v11232_v25, 0.0  ;;  %v15227_v9 = vpop.f32.mrb[56].mxu0 }
 0x8de   : > { %v11235_v54 = vadd.f32 %v15227_v9, %v19190_v2  ;;  %11352 = vrot.lane.b32.xlu1 %v11265_v22, %s16164_s12  ;;  %v11132_v13 = vpop.f32.mrb[57].mxu0 }
 0x8df   : > { %v11234_v45 = vadd.f32 %v19190_v2, %v11132_v13  ;;  %11350 = vrot.lane.b32.xlu0 %v11264_v16, %s16164_s12 }
 0x8e0   : > { %v11267_v53 = vmax.f32 %v11235_v54, 0.0 }
 0x8e1   : > { %v11266_v51 = vmax.f32 %v11234_v45, 0.0  ;;  %v15230_v31 = vpop.f32.mrb[58].mxu0 }
 0x8e2   : > { %v11237_v49 = vadd.f32 %v15230_v31, %v19190_v2  ;;  %11356 = vrot.lane.b32.xlu1 %v11267_v53, %s16164_s12  ;;  %v11142_v61 = vpop.f32.mrb[59].mxu0 }
 0x8e3   : > { %v11236_v14 = vadd.f32 %v19190_v2, %v11142_v61  ;;  %11354 = vrot.lane.b32.xlu0 %v11266_v51, %s16164_s12 }
 0x8e4   : > { %v11269_v40 = vmax.f32 %v11237_v49, 0.0 }
 0x8e5   : > { %v11268_v52 = vmax.f32 %v11236_v14, 0.0  ;;  %v15233_v47 = vpop.f32.mrb[60].mxu0 }
 0x8e6   : > { %v11239_v42 = vadd.f32 %v15233_v47, %v19190_v2  ;;  %11360 = vrot.lane.b32.xlu1 %v11269_v40, %s16164_s12  ;;  %v11152_v0 = vpop.f32.mrb[61].mxu0 }
 0x8e7   : > { %v11238_v29 = vadd.f32 %v19190_v2, %v11152_v0  ;;  %11358 = vrot.lane.b32.xlu0 %v11268_v52, %s16164_s12 }
 0x8e8   : > { %v11271_v58 = vmax.f32 %v11239_v42, 0.0 }
 0x8e9   : > { %v11270_v39 = vmax.f32 %v11238_v29, 0.0  ;;  %v15236_v34 = vpop.f32.mrb[62].mxu0 }
 0x8ea   : > { %v11241_v63 = vadd.f32 %v15236_v34, %v19190_v2  ;;  %11364 = vrot.lane.b32.xlu1 %v11271_v58, %s16164_s12  ;;  %v11162_v12 = vpop.f32.mrb[63].mxu0 }
 0x8eb   : > { %v11240_v20 = vadd.f32 %v19190_v2, %v11162_v12  ;;  %11362 = vrot.lane.b32.xlu0 %v11270_v39, %s16164_s12 }
 0x8ec   : > { %v11273_v27 = vmax.f32 %v11241_v63, 0.0 }
 0x8ed   : > { %v11272_v32 = vmax.f32 %v11240_v20, 0.0 }
 0x8ee   : > { %11368 = vrot.lane.b32.xlu1 %v11273_v27, %s16164_s12 }
 0x8ef   : > { %11366 = vrot.lane.b32.xlu0 %v11272_v32, %s16164_s12 }
 0x924   : > { %v11309_v35 = vpop.permute.xlu1 %11308 }
 0x925   : > { %v11307_v59 = vpop.permute.xlu0 %11306  ;;  %11404 = vst.msk [vmem:[#allocation2 + $0x21] sm:$0xff] %vm11402_vm7, %v11309_v35  ;;  %v19323_v35 = vld [vmem:[%s19471_s8] ss:$0 sm:$0xff] }
 0x926   : > { %11403 = vst.msk [vmem:[#allocation2 + $0x19] sm:$0xff] %vm11402_vm7, %v11307_v59 }
 0x928   : > { %v11313_v33 = vpop.permute.xlu1 %11312 }
 0x929   : > { %v11311_v36 = vpop.permute.xlu0 %11310  ;;  %11406 = vst.msk [vmem:[#allocation2 + $0x39] sm:$0xff] %vm11402_vm7, %v11313_v33 }
 0x92a   : > { %11405 = vst.msk [vmem:[#allocation2 + $0x31] sm:$0xff] %vm11402_vm7, %v11311_v36 }
 0x92c   : > { %v11317_v2 = vpop.permute.xlu1 %11316  ;;  %v11436_v1 = vld [vmem:[#allocation2 + $0x21] sm:$0xff] }
 0x92d   : > { %v11315_v19 = vpop.permute.xlu0 %11314  ;;  %v11435_v24 = vld [vmem:[#allocation2 + $0x19] sm:$0xff]  ;;  %11408 = vst.msk [vmem:[#allocation2 + $0x51] sm:$0xff] %vm11402_vm7, %v11317_v2 }
 0x92e   : > { %15245 = vmatprep.mubr.msk.f32.mxu1 %vm333_vm0, %v11435_v24  ;;  %11407 = vst.msk [vmem:[#allocation2 + $0x49] sm:$0xff] %vm11402_vm7, %v11315_v19  ;;  %v19929_v19 = vld [vmem:[#allocation4_spill] sm:$0xff] }
 0x92f   : > { %15246 = vmatmul.mubr.msk.f32.vlgmr.msra.gmra.mrb[64].mxu1 %vm333_vm0, %v11436_v1  ;;  %v19930_v1 = vld [vmem:[#allocation3_spill] sm:$0xff] }
 0x930   : > { %v11321_v23 = vpop.permute.xlu1 %11320  ;;  %v11438_v38 = vld [vmem:[#allocation2 + $0x39] sm:$0xff] }
 0x931   : > { %11410 = vst.msk [vmem:[#allocation2 + $0x69] sm:$0xff] %vm11402_vm7, %v11321_v23  ;;  %v11319_v8 = vpop.permute.xlu0 %11318  ;;  %v11437_v10 = vld [vmem:[#allocation2 + $0x31] sm:$0xff] }
 0x932   : > { %11409 = vst.msk [vmem:[#allocation2 + $0x61] sm:$0xff] %vm11402_vm7, %v11319_v8  ;;  %15248 = vmatprep.mubr.msk.f32.mxu1 %vm333_vm0, %v11437_v10 }
 0x933   : > { %15249 = vmatmul.mubr.msk.f32.gmra.mrb[66].mxu1 %vm333_vm0, %v11438_v38 }
 0x934   : > { %v11325_v46 = vpop.permute.xlu1 %11324  ;;  %v11440_v28 = vld [vmem:[#allocation2 + $0x51] sm:$0xff] }
 0x935   : > { %11412 = vst.msk [vmem:[#allocation2 + $0x81] sm:$0xff] %vm11402_vm7, %v11325_v46  ;;  %v11323_v15 = vpop.permute.xlu0 %11322  ;;  %v11439_v50 = vld [vmem:[#allocation2 + $0x49] sm:$0xff] }
 0x936   : > { %11411 = vst.msk [vmem:[#allocation2 + $0x79] sm:$0xff] %vm11402_vm7, %v11323_v15  ;;  %15251 = vmatprep.mubr.msk.f32.mxu1 %vm333_vm0, %v11439_v50  ;;  %v19931_v15 = vld [vmem:[#allocation6_spill] sm:$0xff] }
 0x937   : > { %15252 = vmatmul.mubr.msk.f32.gmra.mrb[68].mxu1 %vm333_vm0, %v11440_v28  ;;  %v19932_v28 = vld [vmem:[#allocation5_spill] sm:$0xff] }
 0x938   : > { %v11329_v37 = vpop.permute.xlu1 %11328  ;;  %v11442_v7 = vld [vmem:[#allocation2 + $0x69] sm:$0xff] }
 0x939   : > { %11414 = vst.msk [vmem:[#allocation2 + $0x99] sm:$0xff] %vm11402_vm7, %v11329_v37  ;;  %v11327_v21 = vpop.permute.xlu0 %11326  ;;  %v11441_v48 = vld [vmem:[#allocation2 + $0x61] sm:$0xff] }
 0x93a   : > { %11413 = vst.msk [vmem:[#allocation2 + $0x91] sm:$0xff] %vm11402_vm7, %v11327_v21  ;;  %15254 = vmatprep.mubr.msk.f32.mxu1 %vm333_vm0, %v11441_v48 }
 0x93b   : > { %15255 = vmatmul.mubr.msk.f32.gmra.mrb[70].mxu1 %vm333_vm0, %v11442_v7 }
 0x93c   : > { %v11333_v41 = vpop.permute.xlu1 %11332  ;;  %v11444_v44 = vld [vmem:[#allocation2 + $0x81] sm:$0xff] }
 0x93d   : > { %11416 = vst.msk [vmem:[#allocation2 + $0xb1] sm:$0xff] %vm11402_vm7, %v11333_v41  ;;  %v11331_v62 = vpop.permute.xlu0 %11330  ;;  %v11443_v43 = vld [vmem:[#allocation2 + $0x79] sm:$0xff] }
 0x93e   : > { %11415 = vst.msk [vmem:[#allocation2 + $0xa9] sm:$0xff] %vm11402_vm7, %v11331_v62  ;;  %15257 = vmatprep.mubr.msk.f32.mxu1 %vm333_vm0, %v11443_v43  ;;  %v19933_v62 = vld [vmem:[#allocation8_spill] sm:$0xff] }
 0x93f   : > { %15258 = vmatmul.mubr.msk.f32.gmra.mrb[72].mxu1 %vm333_vm0, %v11444_v44  ;;  %v19934_v44 = vld [vmem:[#allocation7_spill] sm:$0xff] }
 0x940   : > { %v11337_v60 = vpop.permute.xlu1 %11336  ;;  %v11446_v6 = vld [vmem:[#allocation2 + $0x99] sm:$0xff] }
 0x941   : > { %11418 = vst.msk [vmem:[#allocation2 + $0xc9] sm:$0xff] %vm11402_vm7, %v11337_v60  ;;  %v11335_v17 = vpop.permute.xlu0 %11334  ;;  %v11445_v57 = vld [vmem:[#allocation2 + $0x91] sm:$0xff] }
 0x942   : > { %11417 = vst.msk [vmem:[#allocation2 + $0xc1] sm:$0xff] %vm11402_vm7, %v11335_v17  ;;  %15260 = vmatprep.mubr.msk.f32.mxu1 %vm333_vm0, %v11445_v57 }
 0x943   : > { %15261 = vmatmul.mubr.msk.f32.gmra.mrb[74].mxu1 %vm333_vm0, %v11446_v6 }
 0x944   : > { %v11341_v11 = vpop.permute.xlu1 %11340  ;;  %v11448_v56 = vld [vmem:[#allocation2 + $0xb1] sm:$0xff] }
 0x945   : > { %11420 = vst.msk [vmem:[#allocation2 + $0xe1] sm:$0xff] %vm11402_vm7, %v11341_v11  ;;  %v11339_v5 = vpop.permute.xlu0 %11338  ;;  %v11447_v4 = vld [vmem:[#allocation2 + $0xa9] sm:$0xff] }
 0x946   : > { %11419 = vst.msk [vmem:[#allocation2 + $0xd9] sm:$0xff] %vm11402_vm7, %v11339_v5  ;;  %15263 = vmatprep.mubr.msk.f32.mxu1 %vm333_vm0, %v11447_v4  ;;  %v19935_v5 = vld [vmem:[#allocation10_spill] sm:$0xff] }
 0x947   : > { %15264 = vmatmul.mubr.msk.f32.gmra.mrb[76].mxu1 %vm333_vm0, %v11448_v56  ;;  %v19936_v56 = vld [vmem:[#allocation9_spill] sm:$0xff] }
 0x948   : > { %v11345_v55 = vpop.permute.xlu1 %11344  ;;  %v11450_v26 = vld [vmem:[#allocation2 + $0xc9] sm:$0xff] }
 0x949   : > { %11422 = vst.msk [vmem:[#allocation2 + $0xf9] sm:$0xff] %vm11402_vm7, %v11345_v55  ;;  %v11343_v18 = vpop.permute.xlu0 %11342  ;;  %v11449_v3 = vld [vmem:[#allocation2 + $0xc1] sm:$0xff] }
 0x94a   : > { %11421 = vst.msk [vmem:[#allocation2 + $0xf1] sm:$0xff] %vm11402_vm7, %v11343_v18  ;;  %15266 = vmatprep.mubr.msk.f32.mxu1 %vm333_vm0, %v11449_v3 }
 0x94b   : > { %15267 = vmatmul.mubr.msk.f32.gmra.mrb[78].mxu1 %vm333_vm0, %v11450_v26 }
 0x94c   : > { %v11349_v30 = vpop.permute.xlu1 %11348  ;;  %v11452_v16 = vld [vmem:[#allocation2 + $0xe1] sm:$0xff] }
 0x94d   : > { %11424 = vst.msk [vmem:[#allocation2 + $0x111] sm:$0xff] %vm11402_vm7, %v11349_v30  ;;  %v11347_v25 = vpop.permute.xlu0 %11346  ;;  %v11451_v22 = vld [vmem:[#allocation2 + $0xd9] sm:$0xff] }
 0x94e   : > { %11423 = vst.msk [vmem:[#allocation2 + $0x109] sm:$0xff] %vm11402_vm7, %v11347_v25  ;;  %15269 = vmatprep.mubr.msk.f32.mxu1 %vm333_vm0, %v11451_v22  ;;  %v19937_v25 = vld [vmem:[#allocation12_spill] sm:$0xff] }
 0x94f   : > { %15270 = vmatmul.mubr.msk.f32.gmra.mrb[80].mxu1 %vm333_vm0, %v11452_v16  ;;  %v19938_v16 = vld [vmem:[#allocation11_spill] sm:$0xff] }
 0x950   : > { %v11353_v9 = vpop.permute.xlu1 %11352  ;;  %v11454_v45 = vld [vmem:[#allocation2 + $0xf9] sm:$0xff] }
 0x951   : > { %11426 = vst.msk [vmem:[#allocation2 + $0x129] sm:$0xff] %vm11402_vm7, %v11353_v9  ;;  %v11351_v54 = vpop.permute.xlu0 %11350  ;;  %v11453_v13 = vld [vmem:[#allocation2 + $0xf1] sm:$0xff] }
 0x952   : > { %11425 = vst.msk [vmem:[#allocation2 + $0x121] sm:$0xff] %vm11402_vm7, %v11351_v54  ;;  %15272 = vmatprep.mubr.msk.f32.mxu1 %vm333_vm0, %v11453_v13 }
 0x953   : > { %15273 = vmatmul.mubr.msk.f32.gmra.mrb[82].mxu1 %vm333_vm0, %v11454_v45 }
 0x954   : > { %v11357_v53 = vpop.permute.xlu1 %11356  ;;  %v11456_v49 = vld [vmem:[#allocation2 + $0x111] sm:$0xff] }
 0x955   : > { %11428 = vst.msk [vmem:[#allocation2 + $0x141] sm:$0xff] %vm11402_vm7, %v11357_v53  ;;  %v11355_v51 = vpop.permute.xlu0 %11354  ;;  %v11455_v31 = vld [vmem:[#allocation2 + $0x109] sm:$0xff] }
 0x956   : > { %11427 = vst.msk [vmem:[#allocation2 + $0x139] sm:$0xff] %vm11402_vm7, %v11355_v51  ;;  %15275 = vmatprep.mubr.msk.f32.mxu1 %vm333_vm0, %v11455_v31  ;;  %v19939_v51 = vld [vmem:[#allocation14_spill] sm:$0xff] }
 0x957   : > { %15276 = vmatmul.mubr.msk.f32.gmra.mrb[84].mxu1 %vm333_vm0, %v11456_v49  ;;  %v19940_v49 = vld [vmem:[#allocation13_spill] sm:$0xff] }
 0x958   : > { %v11361_v61 = vpop.permute.xlu1 %11360  ;;  %v11458_v52 = vld [vmem:[#allocation2 + $0x129] sm:$0xff] }
 0x959   : > { %11430 = vst.msk [vmem:[#allocation2 + $0x159] sm:$0xff] %vm11402_vm7, %v11361_v61  ;;  %v11359_v14 = vpop.permute.xlu0 %11358  ;;  %v11457_v40 = vld [vmem:[#allocation2 + $0x121] sm:$0xff] }
 0x95a   : > { %11429 = vst.msk [vmem:[#allocation2 + $0x151] sm:$0xff] %vm11402_vm7, %v11359_v14  ;;  %15278 = vmatprep.mubr.msk.f32.mxu1 %vm333_vm0, %v11457_v40 }
 0x95b   : > { %15279 = vmatmul.mubr.msk.f32.gmra.mrb[86].mxu1 %vm333_vm0, %v11458_v52 }
 0x95c   : > { %v11365_v47 = vpop.permute.xlu1 %11364  ;;  %v11460_v29 = vld [vmem:[#allocation2 + $0x141] sm:$0xff] }
 0x95d   : > { %11432 = vst.msk [vmem:[#allocation2 + $0x171] sm:$0xff] %vm11402_vm7, %v11365_v47  ;;  %v11363_v42 = vpop.permute.xlu0 %11362  ;;  %v11459_v0 = vld [vmem:[#allocation2 + $0x139] sm:$0xff] }
 0x95e   : > { %11431 = vst.msk [vmem:[#allocation2 + $0x169] sm:$0xff] %vm11402_vm7, %v11363_v42  ;;  %15281 = vmatprep.mubr.msk.f32.mxu1 %vm333_vm0, %v11459_v0  ;;  %v19941_v42 = vld [vmem:[#allocation16_spill] sm:$0xff] }
 0x95f   : > { %15282 = vmatmul.mubr.msk.f32.gmra.mrb[88].mxu1 %vm333_vm0, %v11460_v29  ;;  %v19942_v29 = vld [vmem:[#allocation15_spill] sm:$0xff] }
 0x960   : > { %v11369_v58 = vpop.permute.xlu1 %11368  ;;  %v11462_v63 = vld [vmem:[#allocation2 + $0x159] sm:$0xff] }
 0x961   : > { %11434 = vst.msk [vmem:[#allocation2 + $0x189] sm:$0xff] %vm11402_vm7, %v11369_v58  ;;  %v11367_v39 = vpop.permute.xlu0 %11366  ;;  %v11461_v34 = vld [vmem:[#allocation2 + $0x151] sm:$0xff] }
 0x962   : > { %11433 = vst.msk [vmem:[#allocation2 + $0x181] sm:$0xff] %vm11402_vm7, %v11367_v39  ;;  %15284 = vmatprep.mubr.msk.f32.mxu1 %vm333_vm0, %v11461_v34 }
 0x963   : > { %15285 = vmatmul.mubr.msk.f32.gmra.mrb[90].mxu1 %vm333_vm0, %v11462_v63 }
 0x964   : > { %v11464_v20 = vld [vmem:[#allocation2 + $0x171] sm:$0xff] }
 0x965   : > { %v11463_v12 = vld [vmem:[#allocation2 + $0x169] sm:$0xff] }
 0x966   : > { %15287 = vmatprep.mubr.msk.f32.mxu1 %vm333_vm0, %v11463_v12 }
 0x967   : > { %15288 = vmatmul.mubr.msk.f32.gmra.mrb[92].mxu1 %vm333_vm0, %v11464_v20  ;;  %v19943_v20 = vld [vmem:[#allocation18_spill] sm:$0xff] }
 0x968   : > { %v11466_v32 = vld [vmem:[#allocation2 + $0x189] sm:$0xff] }
 0x969   : > { %v11465_v27 = vld [vmem:[#allocation2 + $0x181] sm:$0xff] }
 0x96a   : > { %15290 = vmatprep.mubr.msk.f32.mxu1 %vm333_vm0, %v11465_v27 }
 0x96b   : > { %15291 = vmatmul.mubr.msk.f32.gmra.mrb[94].mxu1 %vm333_vm0, %v11466_v32  ;;  %v19944_v32 = vld [vmem:[#allocation17_spill] sm:$0xff] }
 0xa02   : > { %v15247_v59 = vpop.f32.mrb[64].mxu1 }
 0xa03   : > { %v11646_v33 = vadd.f32 %v15247_v59, %v19323_v35  ;;  %v11640_v36 = vpop.f32.mrb[65].mxu1 }
 0xa04   : > { %v11641_v2 = vadd.f32 %v19323_v35, %v11640_v36 }
 0xa05   : > { %v11800_v24 = vadd.f32 %v11646_v33, %v19929_v19 }
 0xa06   : > { %v11799_v23 = vadd.f32 %v11641_v2, %v19930_v1  ;;  %v15250_v8 = vpop.f32.mrb[66].mxu1 }
 0xa07   : > { %11832 = vst.msk [vmem:[%s19331_s17 + $0x8] sm:$0xff] %vm422_vm2, %v11800_v24  ;;  %v11656_v10 = vadd.f32 %v15250_v8, %v19323_v35  ;;  %v11650_v38 = vpop.f32.mrb[67].mxu1  ;;  %v19945_v24 = vld [vmem:[#allocation20_spill] sm:$0xff] }
 0xa08   : > { %11831 = vst.msk [vmem:[%s19331_s17] sm:$0xff] %vm422_vm2, %v11799_v23  ;;  %v11651_v46 = vadd.f32 %v19323_v35, %v11650_v38  ;;  %v19946_v23 = vld [vmem:[#allocation19_spill] sm:$0xff] }
 0xa09   : > { %v11802_v50 = vadd.f32 %v11656_v10, %v19931_v15 }
 0xa0a   : > { %v11801_v37 = vadd.f32 %v11651_v46, %v19932_v28  ;;  %v15253_v21 = vpop.f32.mrb[68].mxu1 }
 0xa0b   : > { %11834 = vst.msk [vmem:[%s19331_s17 + $0x18] sm:$0xff] %vm422_vm2, %v11802_v50  ;;  %v11666_v48 = vadd.f32 %v15253_v21, %v19323_v35  ;;  %v11660_v7 = vpop.f32.mrb[69].mxu1  ;;  %v19947_v50 = vld [vmem:[#allocation22_spill] sm:$0xff] }
 0xa0c   : > { %11833 = vst.msk [vmem:[%s19331_s17 + $0x10] sm:$0xff] %vm422_vm2, %v11801_v37  ;;  %v11661_v41 = vadd.f32 %v19323_v35, %v11660_v7  ;;  %v19948_v37 = vld [vmem:[#allocation21_spill] sm:$0xff] }
 0xa0d   : > { %v11804_v43 = vadd.f32 %v11666_v48, %v19933_v62 }
 0xa0e   : > { %v11803_v60 = vadd.f32 %v11661_v41, %v19934_v44  ;;  %v15256_v17 = vpop.f32.mrb[70].mxu1 }
 0xa0f   : > { %11836 = vst.msk [vmem:[%s19331_s17 + $0x28] sm:$0xff] %vm422_vm2, %v11804_v43  ;;  %v11676_v57 = vadd.f32 %v15256_v17, %v19323_v35  ;;  %v11670_v6 = vpop.f32.mrb[71].mxu1  ;;  %v19949_v43 = vld [vmem:[#allocation24_spill] sm:$0xff] }
 0xa10   : > { %11835 = vst.msk [vmem:[%s19331_s17 + $0x20] sm:$0xff] %vm422_vm2, %v11803_v60  ;;  %v11671_v11 = vadd.f32 %v19323_v35, %v11670_v6  ;;  %v19950_v60 = vld [vmem:[#allocation23_spill] sm:$0xff] }
 0xa11   : > { %v11806_v4 = vadd.f32 %v11676_v57, %v19935_v5 }
 0xa12   : > { %v11805_v55 = vadd.f32 %v11671_v11, %v19936_v56  ;;  %v15259_v18 = vpop.f32.mrb[72].mxu1 }
 0xa13   : > { %11838 = vst.msk [vmem:[%s19331_s17 + $0x38] sm:$0xff] %vm422_vm2, %v11806_v4  ;;  %v11686_v3 = vadd.f32 %v15259_v18, %v19323_v35  ;;  %v11680_v26 = vpop.f32.mrb[73].mxu1  ;;  %v19951_v4 = vld [vmem:[#allocation27_spill] sm:$0xff] }
 0xa14   : > { %11837 = vst.msk [vmem:[%s19331_s17 + $0x30] sm:$0xff] %vm422_vm2, %v11805_v55  ;;  %v11681_v30 = vadd.f32 %v19323_v35, %v11680_v26  ;;  %v19952_v55 = vld [vmem:[#allocation26_spill] sm:$0xff] }
 0xa15   : > { %v11808_v22 = vadd.f32 %v11686_v3, %v19937_v25 }
 0xa16   : > { %v11807_v9 = vadd.f32 %v11681_v30, %v19938_v16  ;;  %v15262_v54 = vpop.f32.mrb[74].mxu1 }
 0xa17   : > { %11840 = vst.msk [vmem:[%s19331_s17 + $0x48] sm:$0xff] %vm422_vm2, %v11808_v22  ;;  %v11696_v13 = vadd.f32 %v15262_v54, %v19323_v35  ;;  %v11690_v45 = vpop.f32.mrb[75].mxu1  ;;  %v19953_v22 = vld [vmem:[#allocation33_spill] sm:$0xff] }
 0xa18   : > { %11839 = vst.msk [vmem:[%s19331_s17 + $0x40] sm:$0xff] %vm422_vm2, %v11807_v9  ;;  %v11691_v53 = vadd.f32 %v19323_v35, %v11690_v45  ;;  %v19954_v9 = vld [vmem:[#allocation32_spill] sm:$0xff] }
 0xa19   : > { %v11810_v31 = vadd.f32 %v11696_v13, %v19939_v51 }
 0xa1a   : > { %v11809_v61 = vadd.f32 %v11691_v53, %v19940_v49  ;;  %v15265_v14 = vpop.f32.mrb[76].mxu1 }
 0xa1b   : > { %11842 = vst.msk [vmem:[%s19331_s17 + $0x58] sm:$0xff] %vm422_vm2, %v11810_v31  ;;  %v11706_v40 = vadd.f32 %v15265_v14, %v19323_v35  ;;  %v11700_v52 = vpop.f32.mrb[77].mxu1  ;;  %v19955_v31 = vld [vmem:[#allocation35_spill] sm:$0xff] }
 0xa1c   : > { %11841 = vst.msk [vmem:[%s19331_s17 + $0x50] sm:$0xff] %vm422_vm2, %v11809_v61  ;;  %v11701_v47 = vadd.f32 %v19323_v35, %v11700_v52  ;;  %v19956_v61 = vld [vmem:[#allocation34_spill] sm:$0xff] }
 0xa1d   : > { %v11812_v0 = vadd.f32 %v11706_v40, %v19941_v42 }
 0xa1e   : > { %v11811_v58 = vadd.f32 %v11701_v47, %v19942_v29  ;;  %v15268_v39 = vpop.f32.mrb[78].mxu1 }
 0xa1f   : > { %11844 = vst.msk [vmem:[%s19331_s17 + $0x68] sm:$0xff] %vm422_vm2, %v11812_v0  ;;  %v11716_v34 = vadd.f32 %v15268_v39, %v19323_v35  ;;  %v11710_v63 = vpop.f32.mrb[79].mxu1  ;;  %v19957_v0 = vld [vmem:[#allocation37_spill] sm:$0xff] }
 0xa20   : > { %11843 = vst.msk [vmem:[%s19331_s17 + $0x60] sm:$0xff] %vm422_vm2, %v11811_v58  ;;  %v11711_v12 = vadd.f32 %v19323_v35, %v11710_v63  ;;  %v19958_v58 = vld [vmem:[#allocation36_spill] sm:$0xff] }
 0xa21   : > { %v11814_v27 = vadd.f32 %v11716_v34, %v19943_v20 }
 0xa22   : > { %v11813_v59 = vadd.f32 %v11711_v12, %v19944_v32  ;;  %v15271_v33 = vpop.f32.mrb[80].mxu1 }
 0xa23   : > { %11846 = vst.msk [vmem:[%s19331_s17 + $0x78] sm:$0xff] %vm422_vm2, %v11814_v27  ;;  %v11726_v36 = vadd.f32 %v15271_v33, %v19323_v35  ;;  %v11720_v2 = vpop.f32.mrb[81].mxu1  ;;  %v19959_v27 = vld [vmem:[#allocation40_spill] sm:$0xff] }
 0xa24   : > { %11845 = vst.msk [vmem:[%s19331_s17 + $0x70] sm:$0xff] %vm422_vm2, %v11813_v59  ;;  %v11721_v19 = vadd.f32 %v19323_v35, %v11720_v2  ;;  %v19960_v59 = vld [vmem:[#allocation39_spill] sm:$0xff] }
 0xa25   : > { %v11816_v1 = vadd.f32 %v11726_v36, %v19945_v24 }
 0xa26   : > { %v11815_v8 = vadd.f32 %v11721_v19, %v19946_v23  ;;  %v15274_v10 = vpop.f32.mrb[82].mxu1 }
 0xa27   : > { %11848 = vst.msk [vmem:[%s19331_s17 + $0x88] sm:$0xff] %vm422_vm2, %v11816_v1  ;;  %v11736_v38 = vadd.f32 %v15274_v10, %v19323_v35  ;;  %v11730_v46 = vpop.f32.mrb[83].mxu1 }
 0xa28   : > { %11847 = vst.msk [vmem:[%s19331_s17 + $0x80] sm:$0xff] %vm422_vm2, %v11815_v8  ;;  %v11731_v15 = vadd.f32 %v19323_v35, %v11730_v46 }
 0xa29   : > { %v11818_v28 = vadd.f32 %v11736_v38, %v19947_v50 }
 0xa2a   : > { %v11817_v21 = vadd.f32 %v11731_v15, %v19948_v37  ;;  %v15277_v48 = vpop.f32.mrb[84].mxu1 }
 0xa2b   : > { %11850 = vst.msk [vmem:[%s19331_s17 + $0x98] sm:$0xff] %vm422_vm2, %v11818_v28  ;;  %v11746_v7 = vadd.f32 %v15277_v48, %v19323_v35  ;;  %v11740_v41 = vpop.f32.mrb[85].mxu1 }
 0xa2c   : > { %11849 = vst.msk [vmem:[%s19331_s17 + $0x90] sm:$0xff] %vm422_vm2, %v11817_v21  ;;  %v11741_v62 = vadd.f32 %v19323_v35, %v11740_v41 }
 0xa2d   : > { %v11820_v44 = vadd.f32 %v11746_v7, %v19949_v43 }
 0xa2e   : > { %v11819_v17 = vadd.f32 %v11741_v62, %v19950_v60  ;;  %v15280_v57 = vpop.f32.mrb[86].mxu1 }
 0xa2f   : > { %11852 = vst.msk [vmem:[%s19331_s17 + $0xa8] sm:$0xff] %vm422_vm2, %v11820_v44  ;;  %v11756_v6 = vadd.f32 %v15280_v57, %v19323_v35  ;;  %v11750_v11 = vpop.f32.mrb[87].mxu1 }
 0xa30   : > { %11851 = vst.msk [vmem:[%s19331_s17 + $0xa0] sm:$0xff] %vm422_vm2, %v11819_v17  ;;  %v11751_v5 = vadd.f32 %v19323_v35, %v11750_v11 }
 0xa31   : > { %v11822_v56 = vadd.f32 %v11756_v6, %v19951_v4 }
 0xa32   : > { %v11821_v18 = vadd.f32 %v11751_v5, %v19952_v55  ;;  %v15283_v3 = vpop.f32.mrb[88].mxu1 }
 0xa33   : > { %11854 = vst.msk [vmem:[%s19331_s17 + $0xb8] sm:$0xff] %vm422_vm2, %v11822_v56  ;;  %v11766_v26 = vadd.f32 %v15283_v3, %v19323_v35  ;;  %v11760_v30 = vpop.f32.mrb[89].mxu1 }
 0xa34   : > { %11853 = vst.msk [vmem:[%s19331_s17 + $0xb0] sm:$0xff] %vm422_vm2, %v11821_v18  ;;  %v11761_v25 = vadd.f32 %v19323_v35, %v11760_v30 }
 0xa35   : > { %v11824_v16 = vadd.f32 %v11766_v26, %v19953_v22 }
 0xa36   : > { %v11823_v54 = vadd.f32 %v11761_v25, %v19954_v9  ;;  %v15286_v13 = vpop.f32.mrb[90].mxu1 }
 0xa37   : > { %11856 = vst.msk [vmem:[%s19331_s17 + $0xc8] sm:$0xff] %vm422_vm2, %v11824_v16  ;;  %v11776_v45 = vadd.f32 %v15286_v13, %v19323_v35  ;;  %v11770_v53 = vpop.f32.mrb[91].mxu1 }
 0xa38   : > { %11855 = vst.msk [vmem:[%s19331_s17 + $0xc0] sm:$0xff] %vm422_vm2, %v11823_v54  ;;  %v11771_v51 = vadd.f32 %v19323_v35, %v11770_v53 }
 0xa39   : > { %v11826_v49 = vadd.f32 %v11776_v45, %v19955_v31 }
 0xa3a   : > { %v11825_v14 = vadd.f32 %v11771_v51, %v19956_v61  ;;  %v15289_v40 = vpop.f32.mrb[92].mxu1 }
 0xa3b   : > { %11858 = vst.msk [vmem:[%s19331_s17 + $0xd8] sm:$0xff] %vm422_vm2, %v11826_v49  ;;  %v11786_v52 = vadd.f32 %v15289_v40, %v19323_v35  ;;  %v11780_v47 = vpop.f32.mrb[93].mxu1 }
 0xa3c   : > { %11857 = vst.msk [vmem:[%s19331_s17 + $0xd0] sm:$0xff] %vm422_vm2, %v11825_v14  ;;  %v11781_v42 = vadd.f32 %v19323_v35, %v11780_v47 }
 0xa3d   : > { %v11828_v29 = vadd.f32 %v11786_v52, %v19957_v0 }
 0xa3e   : > { %v11827_v39 = vadd.f32 %v11781_v42, %v19958_v58  ;;  %v15292_v34 = vpop.f32.mrb[94].mxu1 }
 0xa3f   : > { %11860 = vst.msk [vmem:[%s19331_s17 + $0xe8] sm:$0xff] %vm422_vm2, %v11828_v29  ;;  %v11796_v63 = vadd.f32 %v15292_v34, %v19323_v35  ;;  %v11790_v12 = vpop.f32.mrb[95].mxu1 }
 0xa40   : > { %11859 = vst.msk [vmem:[%s19331_s17 + $0xe0] sm:$0xff] %vm422_vm2, %v11827_v39  ;;  %v11791_v20 = vadd.f32 %v19323_v35, %v11790_v12 }
 0xa41   : > { %v11830_v32 = vadd.f32 %v11796_v63, %v19959_v27 }
 0xa42   : > { %v11829_v33 = vadd.f32 %v11791_v20, %v19960_v59 }
 0xa43   : > { %11862 = vst.msk [vmem:[%s19331_s17 + $0xf8] sm:$0xff] %vm422_vm2, %v11830_v32 }
 0xa44   : > { %11861 = vst.msk [vmem:[%s19331_s17 + $0xf0] sm:$0xff] %vm422_vm2, %v11829_v33 }
 0xa45 PF: > { %s19_s30 = sadd.s32 1, %s16159_s30  }
 0xa46   : > { %p16_p4 = scmp.ge.s32.totalorder %s19_s30, 4  }
 0xa48   :  { %18 = sbr.rel (!%p16_p4) target bundleno = 1 (0x1), region = 112 }

</bundles_post_ra>
